<compile_context>
chip_gen: v7x
topology: tpu7x:2x2x1
jax: 0.10.0
libtpu: 0.0.40
codegen_flags: <defaults>
</compile_context>

<pallas_src>
import functools

import jax
import jax.numpy as jnp
from jax.experimental import pallas as pl
from jax.experimental.pallas import tpu as pltpu


def make_fused_kernel(T, B_pad, H, L, D):
    """Build the fused GRU(+head) kernel.

    Kernel ref order (all full-array VMEM blocks, gridless call):
      x [T*B_pad, E],
      for each (layer l, direction d) in PyTorch h_n order:
        w_ih3 [in_dim, 3H]   (lane-stacked gates, order r|z|n, pre-transposed),
        w_hh3 [H, 3H],
        b_i3  [1, 3H]        (b_ih with b_hh_r / b_hh_z pre-added),
        b_hn  [1, H]         (b_hh_n kept separate: sits inside r*(...)),
      w_head [L*D*H, C], b_head [1, C]   (both head Linears folded),
      output o [B_pad, C],
      scratch: D gi buffers [T*B_pad, 3H] + n_seq_sets*D seq buffers [T*B_pad, H].
    """
    n_gru = L * D
    n_inputs = 1 + 4 * n_gru + 2
    n_seq_sets = min(max(L - 1, 0), 2)   # ping-pong sets of inter-layer buffers

    def kernel(*refs):
        x_ref = refs[0]
        gru_refs = [refs[1 + 4 * i: 1 + 4 * (i + 1)] for i in range(n_gru)]
        w_head_ref, b_head_ref = refs[1 + 4 * n_gru: n_inputs]
        o_ref = refs[n_inputs]
        scratch = refs[n_inputs + 1:]
        gi_refs = scratch[:D]            # per-direction input-projection stream
        seq_refs = scratch[D:]           # inter-layer sequence ping-pong

        last_states = [None] * n_gru     # PyTorch h_n order: (l0,f),(l0,b),(l1,f),...
        for l in range(L):
            # Layer input = lane-concat of these [T*B_pad, width] blocks; summing
            # per-block matmuls against row-slices of W_ih3 avoids materializing
            # the fwd|bwd concatenation.
            if l == 0:
                blk_vals = [x_ref[...]]
            else:
                prev = ((l - 1) % n_seq_sets) * D
                blk_vals = [seq_refs[prev + j][...] for j in range(D)]

            write_seq = l + 1 < L
            out_base = (l % n_seq_sets) * D if write_seq else 0

            # ---- hoisted, gate-stacked input projection: one matmul per block
            # per direction for all T timesteps, streamed into VMEM scratch so
            # no big live SSA values span the unrolled recurrence below.
            whh3 = []
            bhn = []
            for d in range(D):
                wih3_ref, whh3_ref, bi3_ref, bhn_ref = gru_refs[l * D + d]
                acc = bi3_ref[...]                               # [1, 3H] broadcast
                off = 0
                for blk in blk_vals:
                    w = blk.shape[-1]
                    acc = acc + jnp.dot(blk, wih3_ref[off:off + w, :],
                                        preferred_element_type=jnp.float32)
                    off += w
                gi_refs[d][...] = acc                            # [T*B_pad, 3H]
                whh3.append(whh3_ref[...])                       # [H, 3H]
                bhn.append(bhn_ref[...])                         # [1, H]

            # ---- serial recurrence: ONE h @ W_hh3 per direction per step.
            # fwd (d=0) handles t = s, bwd (d=1) handles t = T-1-s in the same
            # unrolled body so the two independent chains overlap on MXU/EUP.
            # PyTorch GRU (gate order r, z, n):
            #   r = sig(gi_r + h W_hr); z = sig(gi_z + h W_hz)
            #   n = tanh(gi_n + r * (h W_hn + b_hn)); h' = (1-z)*n + z*h
            h = [jnp.zeros((B_pad, H), jnp.float32) for _ in range(D)]
            for s in range(T):
                for d in range(D):
                    t = s if d == 0 else T - 1 - s
                    gh = jnp.dot(h[d], whh3[d],
                                 preferred_element_type=jnp.float32)   # [B_pad, 3H]
                    gi = gi_refs[d][t * B_pad:(t + 1) * B_pad, :]      # aligned vld
                    r = jax.nn.sigmoid(gi[:, :H] + gh[:, :H])
                    z = jax.nn.sigmoid(gi[:, H:2 * H] + gh[:, H:2 * H])
                    n = jnp.tanh(gi[:, 2 * H:] + r * (gh[:, 2 * H:] + bhn[d]))
                    h[d] = (1.0 - z) * n + z * h[d]
                    if write_seq:
                        seq_refs[out_base + d][t * B_pad:(t + 1) * B_pad, :] = h[d]

            for d in range(D):
                last_states[l * D + d] = h[d]                    # final processed step

        # ---- output head: both Linears pre-folded to W_head/b_head; the matmul
        # is split into H-row blocks of W_head so h_n never needs a
        # stack/transpose/reshape or lane concatenation.
        logits = b_head_ref[...]                                 # [1, C]
        for i, hs in enumerate(last_states):
            logits = logits + jnp.dot(hs, w_head_ref[i * H:(i + 1) * H, :],
                                      preferred_element_type=jnp.float32)
        o_ref[...] = logits.astype(o_ref.dtype)

    return kernel, n_seq_sets * D


def model_forward(tokens, params, config):
    """tokens: [B, T] int32. Returns logits [B, n_classes]."""
    B, T = tokens.shape
    H = config["gru_hidden_size"]
    L = config["gru_num_layers"]
    D = 2 if config["gru_bidirectional"] else 1
    F = config["fc_size"]
    C = config["n_classes"]
    # gru_dropout only applies between layers in training mode -> no-op here.

    # Pad batch to a sublane multiple so every per-step kernel slice is aligned.
    B_pad = max(8, ((B + 7) // 8) * 8)

    # Embedding gather (XLA glue).  Indexing with tokens.T produces the
    # time-major layout directly; only the tiny int32 token grid is transposed.
    # TODO(synk): PackedSequence variable-length batching (batch_sizes /
    # sorted_indices) has no dense analog; sequences are equal length T here.
    x = jnp.take(params["emb_matrix"], tokens.T, axis=0)          # [T, B, E]
    E = x.shape[-1]
    x = jnp.pad(x, ((0, 0), (0, B_pad - B), (0, 0)))              # [T, B_pad, E]
    x2 = x.reshape(T * B_pad, E)                                  # row t*B_pad + b

    # Gate-stacked / pre-folded weight prep (tiny, stays under jit).
    args = [x2]
    for l in range(L):
        for d in range(D):
            w_ih, w_hh, b_ih, b_hh = params["gru"][(l, d)]
            w_ih3 = jnp.concatenate([w_ih[0], w_ih[1], w_ih[2]], axis=-1)  # [in,3H]
            w_hh3 = jnp.concatenate([w_hh[0], w_hh[1], w_hh[2]], axis=-1)  # [H,3H]
            b_i3 = jnp.concatenate(
                [b_ih[0] + b_hh[0], b_ih[1] + b_hh[1], b_ih[2]], axis=-1)  # [1,3H]
            b_hn = b_hh[2]                                                  # [1,H]
            args += [w_ih3, w_hh3, b_i3, b_hn]

    # Fold the two head Linears (no activation between them) into one affine.
    w_head = jnp.dot(params["fc_w"], params["out_w"])             # [L*D*H, C]
    b_head = (jnp.dot(params["fc_b"].reshape(1, F), params["out_w"])
              + params["out_b"].reshape(1, C))                    # [1, C]
    args += [w_head, b_head]

    kernel, n_seq_bufs = make_fused_kernel(T=T, B_pad=B_pad, H=H, L=L, D=D)
    out = pl.pallas_call(
        kernel,
        out_shape=jax.ShapeDtypeStruct((B_pad, C), jnp.float32),
        scratch_shapes=(
            [pltpu.VMEM((T * B_pad, 3 * H), jnp.float32) for _ in range(D)]
            + [pltpu.VMEM((T * B_pad, H), jnp.float32) for _ in range(n_seq_bufs)]),
    )(*args)
    return out[:B]


# ----------------------------------------------------------------------------
# Deterministic synthetic parameter construction (stand-in for gensim/lang).
# Gate-stacked, pre-transposed layout: index 0=r, 1=z, 2=n, i.e.
# w_ih[g] == W_i{g}.T of PyTorch's weight_ih_l{l}(_reverse).  Keep this gate
# ordering invariant if the layout is ever changed.
# ----------------------------------------------------------------------------
def make_params(key, vocab, emb_dim, config):
    H = config["gru_hidden_size"]
    L = config["gru_num_layers"]
    D = 2 if config["gru_bidirectional"] else 1
    F = config["fc_size"]
    C = config["n_classes"]

    keys = jax.random.split(key, 1 + 4 * L * D + 4)
    ki = iter(keys)

    params = {}
    params["emb_matrix"] = 0.1 * jax.random.normal(next(ki), (vocab, emb_dim), jnp.float32)

    gru = {}
    for l in range(L):
        in_dim = emb_dim if l == 0 else D * H
        for d in range(D):
            w_ih = 0.1 * jax.random.normal(next(ki), (3, in_dim, H), jnp.float32)
            w_hh = 0.1 * jax.random.normal(next(ki), (3, H, H), jnp.float32)
            b_ih = 0.1 * jax.random.normal(next(ki), (3, 1, H), jnp.float32)
            b_hh = 0.1 * jax.random.normal(next(ki), (3, 1, H), jnp.float32)
            gru[(l, d)] = (w_ih, w_hh, b_ih, b_hh)
    params["gru"] = gru

    lin_in = H * L * D
    params["fc_w"] = 0.1 * jax.random.normal(next(ki), (lin_in, F), jnp.float32)
    params["fc_b"] = 0.1 * jax.random.normal(next(ki), (F,), jnp.float32)
    params["out_w"] = 0.1 * jax.random.normal(next(ki), (F, C), jnp.float32)
    params["out_b"] = 0.1 * jax.random.normal(next(ki), (C,), jnp.float32)
    return params


if __name__ == "__main__":
    config = {
        "embedding_freeze": True,
        "gru_hidden_size": 32,
        "gru_num_layers": 2,
        "gru_dropout": 0.0,
        "gru_bidirectional": True,
        "fc_size": 16,
        "n_classes": 4,
    }
    vocab, emb_dim = 32, 32
    B, T = 4, 8

    key = jax.random.PRNGKey(0)
    kp, kt = jax.random.split(key)
    params = make_params(kp, vocab, emb_dim, config)
    tokens = jax.random.randint(kt, (B, T), 0, vocab, dtype=jnp.int32)

    fwd = jax.jit(functools.partial(model_forward, config=config))
    logits = fwd(tokens, params)
    jax.block_until_ready(logits)
    assert logits.shape == (B, config["n_classes"])
    print("KERNEL_OK")
</pallas_src>

<mosaic_0001>
module attributes {stable_mosaic.version = 11 : i64} {
  func.func @kernel(%arg0: memref<64x32xf32, #tpu.memory_space<vmem>>, %arg1: memref<32x96xf32, #tpu.memory_space<vmem>>, %arg2: memref<32x96xf32, #tpu.memory_space<vmem>>, %arg3: memref<1x96xf32, #tpu.memory_space<vmem>>, %arg4: memref<1x32xf32, #tpu.memory_space<vmem>>, %arg5: memref<32x96xf32, #tpu.memory_space<vmem>>, %arg6: memref<32x96xf32, #tpu.memory_space<vmem>>, %arg7: memref<1x96xf32, #tpu.memory_space<vmem>>, %arg8: memref<1x32xf32, #tpu.memory_space<vmem>>, %arg9: memref<64x96xf32, #tpu.memory_space<vmem>>, %arg10: memref<32x96xf32, #tpu.memory_space<vmem>>, %arg11: memref<1x96xf32, #tpu.memory_space<vmem>>, %arg12: memref<1x32xf32, #tpu.memory_space<vmem>>, %arg13: memref<64x96xf32, #tpu.memory_space<vmem>>, %arg14: memref<32x96xf32, #tpu.memory_space<vmem>>, %arg15: memref<1x96xf32, #tpu.memory_space<vmem>>, %arg16: memref<1x32xf32, #tpu.memory_space<vmem>>, %arg17: memref<128x4xf32, #tpu.memory_space<vmem>>, %arg18: memref<1x4xf32, #tpu.memory_space<vmem>>, %arg19: memref<8x4xf32, #tpu.memory_space<vmem>>, %arg20: memref<64x96xf32, #tpu.memory_space<vmem>>, %arg21: memref<64x96xf32, #tpu.memory_space<vmem>>, %arg22: memref<64x32xf32, #tpu.memory_space<vmem>>, %arg23: memref<64x32xf32, #tpu.memory_space<vmem>>) attributes {dimension_semantics = [], scalar_prefetch = 0 : i64, scratch_operands = 4 : i64, tpu.core_type = #tpu.core_type<tc>} {
    %c0 = arith.constant 0 : index
    %c0_0 = arith.constant 0 : index
    %0 = vector.load %arg0[%c0, %c0_0] : memref<64x32xf32, #tpu.memory_space<vmem>>, vector<64x32xf32>
    %c0_1 = arith.constant 0 : index
    %c0_2 = arith.constant 0 : index
    %1 = vector.load %arg3[%c0_1, %c0_2] : memref<1x96xf32, #tpu.memory_space<vmem>>, vector<1x96xf32>
    %c0_3 = arith.constant 0 : index
    %c0_4 = arith.constant 0 : index
    %2 = vector.load %arg1[%c0_3, %c0_4] : memref<32x96xf32, #tpu.memory_space<vmem>>, vector<32x96xf32>
    %cst = arith.constant dense<0.000000e+00> : vector<64x96xf32>
    %3 = tpu.matmul %0, %2, %cst {dimension_numbers = #tpu.dot_dimension_numbers<[1], [0], [0], [1], [0, 0, 1, 1], [], []>} : vector<64x32xf32>, vector<32x96xf32>, vector<64x96xf32> -> vector<64x96xf32>
    %4 = vector.broadcast %1 : vector<1x96xf32> to vector<64x96xf32>
    %5 = arith.addf %4, %3 : vector<64x96xf32>
    %c0_5 = arith.constant 0 : index
    %c0_6 = arith.constant 0 : index
    %6 = vector.load %arg20[%c0_5, %c0_6] : memref<64x96xf32, #tpu.memory_space<vmem>>, vector<64x96xf32>
    tpu.vector_store %arg20[%c0_5, %c0_6], %5 {strides = array<i32>} : memref<64x96xf32, #tpu.memory_space<vmem>>, vector<64x96xf32>,
    %c0_7 = arith.constant 0 : index
    %c0_8 = arith.constant 0 : index
    %7 = vector.load %arg2[%c0_7, %c0_8] : memref<32x96xf32, #tpu.memory_space<vmem>>, vector<32x96xf32>
    %c0_9 = arith.constant 0 : index
    %c0_10 = arith.constant 0 : index
    %8 = vector.load %arg4[%c0_9, %c0_10] : memref<1x32xf32, #tpu.memory_space<vmem>>, vector<1x32xf32>
    %c0_11 = arith.constant 0 : index
    %c0_12 = arith.constant 0 : index
    %9 = vector.load %arg7[%c0_11, %c0_12] : memref<1x96xf32, #tpu.memory_space<vmem>>, vector<1x96xf32>
    %c0_13 = arith.constant 0 : index
    %c0_14 = arith.constant 0 : index
    %10 = vector.load %arg5[%c0_13, %c0_14] : memref<32x96xf32, #tpu.memory_space<vmem>>, vector<32x96xf32>
    %cst_15 = arith.constant dense<0.000000e+00> : vector<64x96xf32>
    %11 = tpu.matmul %0, %10, %cst_15 {dimension_numbers = #tpu.dot_dimension_numbers<[1], [0], [0], [1], [0, 0, 1, 1], [], []>} : vector<64x32xf32>, vector<32x96xf32>, vector<64x96xf32> -> vector<64x96xf32>
    %12 = vector.broadcast %9 : vector<1x96xf32> to vector<64x96xf32>
    %13 = arith.addf %12, %11 : vector<64x96xf32>
    %c0_16 = arith.constant 0 : index
    %c0_17 = arith.constant 0 : index
    %14 = vector.load %arg21[%c0_16, %c0_17] : memref<64x96xf32, #tpu.memory_space<vmem>>, vector<64x96xf32>
    tpu.vector_store %arg21[%c0_16, %c0_17], %13 {strides = array<i32>} : memref<64x96xf32, #tpu.memory_space<vmem>>, vector<64x96xf32>,
    %c0_18 = arith.constant 0 : index
    %c0_19 = arith.constant 0 : index
    %15 = vector.load %arg6[%c0_18, %c0_19] : memref<32x96xf32, #tpu.memory_space<vmem>>, vector<32x96xf32>
    %c0_20 = arith.constant 0 : index
    %c0_21 = arith.constant 0 : index
    %16 = vector.load %arg8[%c0_20, %c0_21] : memref<1x32xf32, #tpu.memory_space<vmem>>, vector<1x32xf32>
    %cst_22 = arith.constant 0.000000e+00 : f32
    %17 = vector.broadcast %cst_22 : f32 to vector<8x32xf32>
    %cst_23 = arith.constant 0.000000e+00 : f32
    %18 = vector.broadcast %cst_23 : f32 to vector<8x32xf32>
    %cst_24 = arith.constant dense<0.000000e+00> : vector<8x96xf32>
    %19 = tpu.matmul %17, %7, %cst_24 {dimension_numbers = #tpu.dot_dimension_numbers<[1], [0], [0], [1], [0, 0, 1, 1], [], []>} : vector<8x32xf32>, vector<32x96xf32>, vector<8x96xf32> -> vector<8x96xf32>
    %c0_25 = arith.constant 0 : index
    %c0_26 = arith.constant 0 : index
    %20 = vector.load %arg20[%c0_25, %c0_26] : memref<64x96xf32, #tpu.memory_space<vmem>>, vector<8x96xf32>
    %21 = vector.extract_strided_slice %20 {offsets = [0, 0], sizes = [8, 32], strides = [1, 1]} : vector<8x96xf32> to vector<8x32xf32>
    %22 = vector.extract_strided_slice %19 {offsets = [0, 0], sizes = [8, 32], strides = [1, 1]} : vector<8x96xf32> to vector<8x32xf32>
    %23 = arith.addf %21, %22 : vector<8x32xf32>
    %24 = arith.negf %23 : vector<8x32xf32>
    %25 = math.exp %24 : vector<8x32xf32>
    %cst_27 = arith.constant 1.000000e+00 : f32
    %26 = vector.broadcast %cst_27 : f32 to vector<8x32xf32>
    %27 = arith.addf %26, %25 : vector<8x32xf32>
    %28 = arith.divf %26, %27 : vector<8x32xf32>
    %29 = vector.extract_strided_slice %20 {offsets = [0, 32], sizes = [8, 32], strides = [1, 1]} : vector<8x96xf32> to vector<8x32xf32>
    %30 = vector.extract_strided_slice %19 {offsets = [0, 32], sizes = [8, 32], strides = [1, 1]} : vector<8x96xf32> to vector<8x32xf32>
    %31 = arith.addf %29, %30 : vector<8x32xf32>
    %32 = arith.negf %31 : vector<8x32xf32>
    %33 = math.exp %32 : vector<8x32xf32>
    %cst_28 = arith.constant 1.000000e+00 : f32
    %34 = vector.broadcast %cst_28 : f32 to vector<8x32xf32>
    %35 = arith.addf %34, %33 : vector<8x32xf32>
    %36 = arith.divf %34, %35 : vector<8x32xf32>
    %37 = vector.extract_strided_slice %20 {offsets = [0, 64], sizes = [8, 32], strides = [1, 1]} : vector<8x96xf32> to vector<8x32xf32>
    %38 = vector.extract_strided_slice %19 {offsets = [0, 64], sizes = [8, 32], strides = [1, 1]} : vector<8x96xf32> to vector<8x32xf32>
    %39 = vector.broadcast %8 : vector<1x32xf32> to vector<8x32xf32>
    %40 = arith.addf %38, %39 : vector<8x32xf32>
    %41 = arith.mulf %28, %40 : vector<8x32xf32>
    %42 = arith.addf %37, %41 : vector<8x32xf32>
    %43 = math.tanh %42 : vector<8x32xf32>
    %cst_29 = arith.constant 1.000000e+00 : f32
    %44 = vector.broadcast %cst_29 : f32 to vector<8x32xf32>
    %45 = arith.subf %44, %36 : vector<8x32xf32>
    %46 = arith.mulf %45, %43 : vector<8x32xf32>
    %47 = arith.mulf %36, %17 : vector<8x32xf32>
    %48 = arith.addf %46, %47 : vector<8x32xf32>
    %c0_30 = arith.constant 0 : index
    %c0_31 = arith.constant 0 : index
    %49 = vector.load %arg22[%c0_30, %c0_31] : memref<64x32xf32, #tpu.memory_space<vmem>>, vector<8x32xf32>
    tpu.vector_store %arg22[%c0_30, %c0_31], %48 {strides = array<i32>} : memref<64x32xf32, #tpu.memory_space<vmem>>, vector<8x32xf32>,
    %cst_32 = arith.constant dense<0.000000e+00> : vector<8x96xf32>
    %50 = tpu.matmul %18, %15, %cst_32 {dimension_numbers = #tpu.dot_dimension_numbers<[1], [0], [0], [1], [0, 0, 1, 1], [], []>} : vector<8x32xf32>, vector<32x96xf32>, vector<8x96xf32> -> vector<8x96xf32>
    %c56 = arith.constant 56 : index
    %c0_33 = arith.constant 0 : index
    %51 = vector.load %arg21[%c56, %c0_33] : memref<64x96xf32, #tpu.memory_space<vmem>>, vector<8x96xf32>
    %52 = vector.extract_strided_slice %51 {offsets = [0, 0], sizes = [8, 32], strides = [1, 1]} : vector<8x96xf32> to vector<8x32xf32>
    %53 = vector.extract_strided_slice %50 {offsets = [0, 0], sizes = [8, 32], strides = [1, 1]} : vector<8x96xf32> to vector<8x32xf32>
    %54 = arith.addf %52, %53 : vector<8x32xf32>
    %55 = arith.negf %54 : vector<8x32xf32>
    %56 = math.exp %55 : vector<8x32xf32>
    %cst_34 = arith.constant 1.000000e+00 : f32
    %57 = vector.broadcast %cst_34 : f32 to vector<8x32xf32>
    %58 = arith.addf %57, %56 : vector<8x32xf32>
    %59 = arith.divf %57, %58 : vector<8x32xf32>
    %60 = vector.extract_strided_slice %51 {offsets = [0, 32], sizes = [8, 32], strides = [1, 1]} : vector<8x96xf32> to vector<8x32xf32>
    %61 = vector.extract_strided_slice %50 {offsets = [0, 32], sizes = [8, 32], strides = [1, 1]} : vector<8x96xf32> to vector<8x32xf32>
    %62 = arith.addf %60, %61 : vector<8x32xf32>
    %63 = arith.negf %62 : vector<8x32xf32>
    %64 = math.exp %63 : vector<8x32xf32>
    %cst_35 = arith.constant 1.000000e+00 : f32
    %65 = vector.broadcast %cst_35 : f32 to vector<8x32xf32>
    %66 = arith.addf %65, %64 : vector<8x32xf32>
    %67 = arith.divf %65, %66 : vector<8x32xf32>
    %68 = vector.extract_strided_slice %51 {offsets = [0, 64], sizes = [8, 32], strides = [1, 1]} : vector<8x96xf32> to vector<8x32xf32>
    %69 = vector.extract_strided_slice %50 {offsets = [0, 64], sizes = [8, 32], strides = [1, 1]} : vector<8x96xf32> to vector<8x32xf32>
    %70 = vector.broadcast %16 : vector<1x32xf32> to vector<8x32xf32>
    %71 = arith.addf %69, %70 : vector<8x32xf32>
    %72 = arith.mulf %59, %71 : vector<8x32xf32>
    %73 = arith.addf %68, %72 : vector<8x32xf32>
    %74 = math.tanh %73 : vector<8x32xf32>
    %cst_36 = arith.constant 1.000000e+00 : f32
    %75 = vector.broadcast %cst_36 : f32 to vector<8x32xf32>
    %76 = arith.subf %75, %67 : vector<8x32xf32>
    %77 = arith.mulf %76, %74 : vector<8x32xf32>
    %78 = arith.mulf %67, %18 : vector<8x32xf32>
    %79 = arith.addf %77, %78 : vector<8x32xf32>
    %c56_37 = arith.constant 56 : index
    %c0_38 = arith.constant 0 : index
    %80 = vector.load %arg23[%c56_37, %c0_38] : memref<64x32xf32, #tpu.memory_space<vmem>>, vector<8x32xf32>
    tpu.vector_store %arg23[%c56_37, %c0_38], %79 {strides = array<i32>} : memref<64x32xf32, #tpu.memory_space<vmem>>, vector<8x32xf32>,
    %cst_39 = arith.constant dense<0.000000e+00> : vector<8x96xf32>
    %81 = tpu.matmul %48, %7, %cst_39 {dimension_numbers = #tpu.dot_dimension_numbers<[1], [0], [0], [1], [0, 0, 1, 1], [], []>} : vector<8x32xf32>, vector<32x96xf32>, vector<8x96xf32> -> vector<8x96xf32>
    %c8 = arith.constant 8 : index
    %c0_40 = arith.constant 0 : index
    %82 = vector.load %arg20[%c8, %c0_40] : memref<64x96xf32, #tpu.memory_space<vmem>>, vector<8x96xf32>
    %83 = vector.extract_strided_slice %82 {offsets = [0, 0], sizes = [8, 32], strides = [1, 1]} : vector<8x96xf32> to vector<8x32xf32>
    %84 = vector.extract_strided_slice %81 {offsets = [0, 0], sizes = [8, 32], strides = [1, 1]} : vector<8x96xf32> to vector<8x32xf32>
    %85 = arith.addf %83, %84 : vector<8x32xf32>
    %86 = arith.negf %85 : vector<8x32xf32>
    %87 = math.exp %86 : vector<8x32xf32>
    %cst_41 = arith.constant 1.000000e+00 : f32
    %88 = vector.broadcast %cst_41 : f32 to vector<8x32xf32>
    %89 = arith.addf %88, %87 : vector<8x32xf32>
    %90 = arith.divf %88, %89 : vector<8x32xf32>
    %91 = vector.extract_strided_slice %82 {offsets = [0, 32], sizes = [8, 32], strides = [1, 1]} : vector<8x96xf32> to vector<8x32xf32>
    %92 = vector.extract_strided_slice %81 {offsets = [0, 32], sizes = [8, 32], strides = [1, 1]} : vector<8x96xf32> to vector<8x32xf32>
    %93 = arith.addf %91, %92 : vector<8x32xf32>
    %94 = arith.negf %93 : vector<8x32xf32>
    %95 = math.exp %94 : vector<8x32xf32>
    %cst_42 = arith.constant 1.000000e+00 : f32
    %96 = vector.broadcast %cst_42 : f32 to vector<8x32xf32>
    %97 = arith.addf %96, %95 : vector<8x32xf32>
    %98 = arith.divf %96, %97 : vector<8x32xf32>
    %99 = vector.extract_strided_slice %82 {offsets = [0, 64], sizes = [8, 32], strides = [1, 1]} : vector<8x96xf32> to vector<8x32xf32>
    %100 = vector.extract_strided_slice %81 {offsets = [0, 64], sizes = [8, 32], strides = [1, 1]} : vector<8x96xf32> to vector<8x32xf32>
    %101 = vector.broadcast %8 : vector<1x32xf32> to vector<8x32xf32>
    %102 = arith.addf %100, %101 : vector<8x32xf32>
    %103 = arith.mulf %90, %102 : vector<8x32xf32>
    %104 = arith.addf %99, %103 : vector<8x32xf32>
    %105 = math.tanh %104 : vector<8x32xf32>
    %cst_43 = arith.constant 1.000000e+00 : f32
    %106 = vector.broadcast %cst_43 : f32 to vector<8x32xf32>
    %107 = arith.subf %106, %98 : vector<8x32xf32>
    %108 = arith.mulf %107, %105 : vector<8x32xf32>
    %109 = arith.mulf %98, %48 : vector<8x32xf32>
    %110 = arith.addf %108, %109 : vector<8x32xf32>
    %c8_44 = arith.constant 8 : index
    %c0_45 = arith.constant 0 : index
    %111 = vector.load %arg22[%c8_44, %c0_45] : memref<64x32xf32, #tpu.memory_space<vmem>>, vector<8x32xf32>
    tpu.vector_store %arg22[%c8_44, %c0_45], %110 {strides = array<i32>} : memref<64x32xf32, #tpu.memory_space<vmem>>, vector<8x32xf32>,
    %cst_46 = arith.constant dense<0.000000e+00> : vector<8x96xf32>
    %112 = tpu.matmul %79, %15, %cst_46 {dimension_numbers = #tpu.dot_dimension_numbers<[1], [0], [0], [1], [0, 0, 1, 1], [], []>} : vector<8x32xf32>, vector<32x96xf32>, vector<8x96xf32> -> vector<8x96xf32>
    %c48 = arith.constant 48 : index
    %c0_47 = arith.constant 0 : index
    %113 = vector.load %arg21[%c48, %c0_47] : memref<64x96xf32, #tpu.memory_space<vmem>>, vector<8x96xf32>
    %114 = vector.extract_strided_slice %113 {offsets = [0, 0], sizes = [8, 32], strides = [1, 1]} : vector<8x96xf32> to vector<8x32xf32>
    %115 = vector.extract_strided_slice %112 {offsets = [0, 0], sizes = [8, 32], strides = [1, 1]} : vector<8x96xf32> to vector<8x32xf32>
    %116 = arith.addf %114, %115 : vector<8x32xf32>
    %117 = arith.negf %116 : vector<8x32xf32>
    %118 = math.exp %117 : vector<8x32xf32>
    %cst_48 = arith.constant 1.000000e+00 : f32
    %119 = vector.broadcast %cst_48 : f32 to vector<8x32xf32>
    %120 = arith.addf %119, %118 : vector<8x32xf32>
    %121 = arith.divf %119, %120 : vector<8x32xf32>
    %122 = vector.extract_strided_slice %113 {offsets = [0, 32], sizes = [8, 32], strides = [1, 1]} : vector<8x96xf32> to vector<8x32xf32>
    %123 = vector.extract_strided_slice %112 {offsets = [0, 32], sizes = [8, 32], strides = [1, 1]} : vector<8x96xf32> to vector<8x32xf32>
    %124 = arith.addf %122, %123 : vector<8x32xf32>
    %125 = arith.negf %124 : vector<8x32xf32>
    %126 = math.exp %125 : vector<8x32xf32>
    %cst_49 = arith.constant 1.000000e+00 : f32
    %127 = vector.broadcast %cst_49 : f32 to vector<8x32xf32>
    %128 = arith.addf %127, %126 : vector<8x32xf32>
    %129 = arith.divf %127, %128 : vector<8x32xf32>
    %130 = vector.extract_strided_slice %113 {offsets = [0, 64], sizes = [8, 32], strides = [1, 1]} : vector<8x96xf32> to vector<8x32xf32>
    %131 = vector.extract_strided_slice %112 {offsets = [0, 64], sizes = [8, 32], strides = [1, 1]} : vector<8x96xf32> to vector<8x32xf32>
    %132 = vector.broadcast %16 : vector<1x32xf32> to vector<8x32xf32>
    %133 = arith.addf %131, %132 : vector<8x32xf32>
    %134 = arith.mulf %121, %133 : vector<8x32xf32>
    %135 = arith.addf %130, %134 : vector<8x32xf32>
    %136 = math.tanh %135 : vector<8x32xf32>
    %cst_50 = arith.constant 1.000000e+00 : f32
    %137 = vector.broadcast %cst_50 : f32 to vector<8x32xf32>
    %138 = arith.subf %137, %129 : vector<8x32xf32>
    %139 = arith.mulf %138, %136 : vector<8x32xf32>
    %140 = arith.mulf %129, %79 : vector<8x32xf32>
    %141 = arith.addf %139, %140 : vector<8x32xf32>
    %c48_51 = arith.constant 48 : index
    %c0_52 = arith.constant 0 : index
    %142 = vector.load %arg23[%c48_51, %c0_52] : memref<64x32xf32, #tpu.memory_space<vmem>>, vector<8x32xf32>
    tpu.vector_store %arg23[%c48_51, %c0_52], %141 {strides = array<i32>} : memref<64x32xf32, #tpu.memory_space<vmem>>, vector<8x32xf32>,
    %cst_53 = arith.constant dense<0.000000e+00> : vector<8x96xf32>
    %143 = tpu.matmul %110, %7, %cst_53 {dimension_numbers = #tpu.dot_dimension_numbers<[1], [0], [0], [1], [0, 0, 1, 1], [], []>} : vector<8x32xf32>, vector<32x96xf32>, vector<8x96xf32> -> vector<8x96xf32>
    %c16 = arith.constant 16 : index
    %c0_54 = arith.constant 0 : index
    %144 = vector.load %arg20[%c16, %c0_54] : memref<64x96xf32, #tpu.memory_space<vmem>>, vector<8x96xf32>
    %145 = vector.extract_strided_slice %144 {offsets = [0, 0], sizes = [8, 32], strides = [1, 1]} : vector<8x96xf32> to vector<8x32xf32>
    %146 = vector.extract_strided_slice %143 {offsets = [0, 0], sizes = [8, 32], strides = [1, 1]} : vector<8x96xf32> to vector<8x32xf32>
    %147 = arith.addf %145, %146 : vector<8x32xf32>
    %148 = arith.negf %147 : vector<8x32xf32>
    %149 = math.exp %148 : vector<8x32xf32>
    %cst_55 = arith.constant 1.000000e+00 : f32
    %150 = vector.broadcast %cst_55 : f32 to vector<8x32xf32>
    %151 = arith.addf %150, %149 : vector<8x32xf32>
    %152 = arith.divf %150, %151 : vector<8x32xf32>
    %153 = vector.extract_strided_slice %144 {offsets = [0, 32], sizes = [8, 32], strides = [1, 1]} : vector<8x96xf32> to vector<8x32xf32>
    %154 = vector.extract_strided_slice %143 {offsets = [0, 32], sizes = [8, 32], strides = [1, 1]} : vector<8x96xf32> to vector<8x32xf32>
    %155 = arith.addf %153, %154 : vector<8x32xf32>
    %156 = arith.negf %155 : vector<8x32xf32>
    %157 = math.exp %156 : vector<8x32xf32>
    %cst_56 = arith.constant 1.000000e+00 : f32
    %158 = vector.broadcast %cst_56 : f32 to vector<8x32xf32>
    %159 = arith.addf %158, %157 : vector<8x32xf32>
    %160 = arith.divf %158, %159 : vector<8x32xf32>
    %161 = vector.extract_strided_slice %144 {offsets = [0, 64], sizes = [8, 32], strides = [1, 1]} : vector<8x96xf32> to vector<8x32xf32>
    %162 = vector.extract_strided_slice %143 {offsets = [0, 64], sizes = [8, 32], strides = [1, 1]} : vector<8x96xf32> to vector<8x32xf32>
    %163 = vector.broadcast %8 : vector<1x32xf32> to vector<8x32xf32>
    %164 = arith.addf %162, %163 : vector<8x32xf32>
    %165 = arith.mulf %152, %164 : vector<8x32xf32>
    %166 = arith.addf %161, %165 : vector<8x32xf32>
    %167 = math.tanh %166 : vector<8x32xf32>
    %cst_57 = arith.constant 1.000000e+00 : f32
    %168 = vector.broadcast %cst_57 : f32 to vector<8x32xf32>
    %169 = arith.subf %168, %160 : vector<8x32xf32>
    %170 = arith.mulf %169, %167 : vector<8x32xf32>
    %171 = arith.mulf %160, %110 : vector<8x32xf32>
    %172 = arith.addf %170, %171 : vector<8x32xf32>
    %c16_58 = arith.constant 16 : index
    %c0_59 = arith.constant 0 : index
    %173 = vector.load %arg22[%c16_58, %c0_59] : memref<64x32xf32, #tpu.memory_space<vmem>>, vector<8x32xf32>
    tpu.vector_store %arg22[%c16_58, %c0_59], %172 {strides = array<i32>} : memref<64x32xf32, #tpu.memory_space<vmem>>, vector<8x32xf32>,
    %cst_60 = arith.constant dense<0.000000e+00> : vector<8x96xf32>
    %174 = tpu.matmul %141, %15, %cst_60 {dimension_numbers = #tpu.dot_dimension_numbers<[1], [0], [0], [1], [0, 0, 1, 1], [], []>} : vector<8x32xf32>, vector<32x96xf32>, vector<8x96xf32> -> vector<8x96xf32>
    %c40 = arith.constant 40 : index
    %c0_61 = arith.constant 0 : index
    %175 = vector.load %arg21[%c40, %c0_61] : memref<64x96xf32, #tpu.memory_space<vmem>>, vector<8x96xf32>
    %176 = vector.extract_strided_slice %175 {offsets = [0, 0], sizes = [8, 32], strides = [1, 1]} : vector<8x96xf32> to vector<8x32xf32>
    %177 = vector.extract_strided_slice %174 {offsets = [0, 0], sizes = [8, 32], strides = [1, 1]} : vector<8x96xf32> to vector<8x32xf32>
    %178 = arith.addf %176, %177 : vector<8x32xf32>
    %179 = arith.negf %178 : vector<8x32xf32>
    %180 = math.exp %179 : vector<8x32xf32>
    %cst_62 = arith.constant 1.000000e+00 : f32
    %181 = vector.broadcast %cst_62 : f32 to vector<8x32xf32>
    %182 = arith.addf %181, %180 : vector<8x32xf32>
    %183 = arith.divf %181, %182 : vector<8x32xf32>
    %184 = vector.extract_strided_slice %175 {offsets = [0, 32], sizes = [8, 32], strides = [1, 1]} : vector<8x96xf32> to vector<8x32xf32>
    %185 = vector.extract_strided_slice %174 {offsets = [0, 32], sizes = [8, 32], strides = [1, 1]} : vector<8x96xf32> to vector<8x32xf32>
    %186 = arith.addf %184, %185 : vector<8x32xf32>
    %187 = arith.negf %186 : vector<8x32xf32>
    %188 = math.exp %187 : vector<8x32xf32>
    %cst_63 = arith.constant 1.000000e+00 : f32
    %189 = vector.broadcast %cst_63 : f32 to vector<8x32xf32>
    %190 = arith.addf %189, %188 : vector<8x32xf32>
    %191 = arith.divf %189, %190 : vector<8x32xf32>
    %192 = vector.extract_strided_slice %175 {offsets = [0, 64], sizes = [8, 32], strides = [1, 1]} : vector<8x96xf32> to vector<8x32xf32>
    %193 = vector.extract_strided_slice %174 {offsets = [0, 64], sizes = [8, 32], strides = [1, 1]} : vector<8x96xf32> to vector<8x32xf32>
    %194 = vector.broadcast %16 : vector<1x32xf32> to vector<8x32xf32>
    %195 = arith.addf %193, %194 : vector<8x32xf32>
    %196 = arith.mulf %183, %195 : vector<8x32xf32>
    %197 = arith.addf %192, %196 : vector<8x32xf32>
    %198 = math.tanh %197 : vector<8x32xf32>
    %cst_64 = arith.constant 1.000000e+00 : f32
    %199 = vector.broadcast %cst_64 : f32 to vector<8x32xf32>
    %200 = arith.subf %199, %191 : vector<8x32xf32>
    %201 = arith.mulf %200, %198 : vector<8x32xf32>
    %202 = arith.mulf %191, %141 : vector<8x32xf32>
    %203 = arith.addf %201, %202 : vector<8x32xf32>
    %c40_65 = arith.constant 40 : index
    %c0_66 = arith.constant 0 : index
    %204 = vector.load %arg23[%c40_65, %c0_66] : memref<64x32xf32, #tpu.memory_space<vmem>>, vector<8x32xf32>
    tpu.vector_store %arg23[%c40_65, %c0_66], %203 {strides = array<i32>} : memref<64x32xf32, #tpu.memory_space<vmem>>, vector<8x32xf32>,
    %cst_67 = arith.constant dense<0.000000e+00> : vector<8x96xf32>
    %205 = tpu.matmul %172, %7, %cst_67 {dimension_numbers = #tpu.dot_dimension_numbers<[1], [0], [0], [1], [0, 0, 1, 1], [], []>} : vector<8x32xf32>, vector<32x96xf32>, vector<8x96xf32> -> vector<8x96xf32>
    %c24 = arith.constant 24 : index
    %c0_68 = arith.constant 0 : index
    %206 = vector.load %arg20[%c24, %c0_68] : memref<64x96xf32, #tpu.memory_space<vmem>>, vector<8x96xf32>
    %207 = vector.extract_strided_slice %206 {offsets = [0, 0], sizes = [8, 32], strides = [1, 1]} : vector<8x96xf32> to vector<8x32xf32>
    %208 = vector.extract_strided_slice %205 {offsets = [0, 0], sizes = [8, 32], strides = [1, 1]} : vector<8x96xf32> to vector<8x32xf32>
    %209 = arith.addf %207, %208 : vector<8x32xf32>
    %210 = arith.negf %209 : vector<8x32xf32>
    %211 = math.exp %210 : vector<8x32xf32>
    %cst_69 = arith.constant 1.000000e+00 : f32
    %212 = vector.broadcast %cst_69 : f32 to vector<8x32xf32>
    %213 = arith.addf %212, %211 : vector<8x32xf32>
    %214 = arith.divf %212, %213 : vector<8x32xf32>
    %215 = vector.extract_strided_slice %206 {offsets = [0, 32], sizes = [8, 32], strides = [1, 1]} : vector<8x96xf32> to vector<8x32xf32>
    %216 = vector.extract_strided_slice %205 {offsets = [0, 32], sizes = [8, 32], strides = [1, 1]} : vector<8x96xf32> to vector<8x32xf32>
    %217 = arith.addf %215, %216 : vector<8x32xf32>
    %218 = arith.negf %217 : vector<8x32xf32>
    %219 = math.exp %218 : vector<8x32xf32>
    %cst_70 = arith.constant 1.000000e+00 : f32
    %220 = vector.broadcast %cst_70 : f32 to vector<8x32xf32>
    %221 = arith.addf %220, %219 : vector<8x32xf32>
    %222 = arith.divf %220, %221 : vector<8x32xf32>
    %223 = vector.extract_strided_slice %206 {offsets = [0, 64], sizes = [8, 32], strides = [1, 1]} : vector<8x96xf32> to vector<8x32xf32>
    %224 = vector.extract_strided_slice %205 {offsets = [0, 64], sizes = [8, 32], strides = [1, 1]} : vector<8x96xf32> to vector<8x32xf32>
    %225 = vector.broadcast %8 : vector<1x32xf32> to vector<8x32xf32>
    %226 = arith.addf %224, %225 : vector<8x32xf32>
    %227 = arith.mulf %214, %226 : vector<8x32xf32>
    %228 = arith.addf %223, %227 : vector<8x32xf32>
    %229 = math.tanh %228 : vector<8x32xf32>
    %cst_71 = arith.constant 1.000000e+00 : f32
    %230 = vector.broadcast %cst_71 : f32 to vector<8x32xf32>
    %231 = arith.subf %230, %222 : vector<8x32xf32>
    %232 = arith.mulf %231, %229 : vector<8x32xf32>
    %233 = arith.mulf %222, %172 : vector<8x32xf32>
    %234 = arith.addf %232, %233 : vector<8x32xf32>
    %c24_72 = arith.constant 24 : index
    %c0_73 = arith.constant 0 : index
    %235 = vector.load %arg22[%c24_72, %c0_73] : memref<64x32xf32, #tpu.memory_space<vmem>>, vector<8x32xf32>
    tpu.vector_store %arg22[%c24_72, %c0_73], %234 {strides = array<i32>} : memref<64x32xf32, #tpu.memory_space<vmem>>, vector<8x32xf32>,
    %cst_74 = arith.constant dense<0.000000e+00> : vector<8x96xf32>
    %236 = tpu.matmul %203, %15, %cst_74 {dimension_numbers = #tpu.dot_dimension_numbers<[1], [0], [0], [1], [0, 0, 1, 1], [], []>} : vector<8x32xf32>, vector<32x96xf32>, vector<8x96xf32> -> vector<8x96xf32>
    %c32 = arith.constant 32 : index
    %c0_75 = arith.constant 0 : index
    %237 = vector.load %arg21[%c32, %c0_75] : memref<64x96xf32, #tpu.memory_space<vmem>>, vector<8x96xf32>
    %238 = vector.extract_strided_slice %237 {offsets = [0, 0], sizes = [8, 32], strides = [1, 1]} : vector<8x96xf32> to vector<8x32xf32>
    %239 = vector.extract_strided_slice %236 {offsets = [0, 0], sizes = [8, 32], strides = [1, 1]} : vector<8x96xf32> to vector<8x32xf32>
    %240 = arith.addf %238, %239 : vector<8x32xf32>
    %241 = arith.negf %240 : vector<8x32xf32>
    %242 = math.exp %241 : vector<8x32xf32>
    %cst_76 = arith.constant 1.000000e+00 : f32
    %243 = vector.broadcast %cst_76 : f32 to vector<8x32xf32>
    %244 = arith.addf %243, %242 : vector<8x32xf32>
    %245 = arith.divf %243, %244 : vector<8x32xf32>
    %246 = vector.extract_strided_slice %237 {offsets = [0, 32], sizes = [8, 32], strides = [1, 1]} : vector<8x96xf32> to vector<8x32xf32>
    %247 = vector.extract_strided_slice %236 {offsets = [0, 32], sizes = [8, 32], strides = [1, 1]} : vector<8x96xf32> to vector<8x32xf32>
    %248 = arith.addf %246, %247 : vector<8x32xf32>
    %249 = arith.negf %248 : vector<8x32xf32>
    %250 = math.exp %249 : vector<8x32xf32>
    %cst_77 = arith.constant 1.000000e+00 : f32
    %251 = vector.broadcast %cst_77 : f32 to vector<8x32xf32>
    %252 = arith.addf %251, %250 : vector<8x32xf32>
    %253 = arith.divf %251, %252 : vector<8x32xf32>
    %254 = vector.extract_strided_slice %237 {offsets = [0, 64], sizes = [8, 32], strides = [1, 1]} : vector<8x96xf32> to vector<8x32xf32>
    %255 = vector.extract_strided_slice %236 {offsets = [0, 64], sizes = [8, 32], strides = [1, 1]} : vector<8x96xf32> to vector<8x32xf32>
    %256 = vector.broadcast %16 : vector<1x32xf32> to vector<8x32xf32>
    %257 = arith.addf %255, %256 : vector<8x32xf32>
    %258 = arith.mulf %245, %257 : vector<8x32xf32>
    %259 = arith.addf %254, %258 : vector<8x32xf32>
    %260 = math.tanh %259 : vector<8x32xf32>
    %cst_78 = arith.constant 1.000000e+00 : f32
    %261 = vector.broadcast %cst_78 : f32 to vector<8x32xf32>
    %262 = arith.subf %261, %253 : vector<8x32xf32>
    %263 = arith.mulf %262, %260 : vector<8x32xf32>
    %264 = arith.mulf %253, %203 : vector<8x32xf32>
    %265 = arith.addf %263, %264 : vector<8x32xf32>
    %c32_79 = arith.constant 32 : index
    %c0_80 = arith.constant 0 : index
    %266 = vector.load %arg23[%c32_79, %c0_80] : memref<64x32xf32, #tpu.memory_space<vmem>>, vector<8x32xf32>
    tpu.vector_store %arg23[%c32_79, %c0_80], %265 {strides = array<i32>} : memref<64x32xf32, #tpu.memory_space<vmem>>, vector<8x32xf32>,
    %cst_81 = arith.constant dense<0.000000e+00> : vector<8x96xf32>
    %267 = tpu.matmul %234, %7, %cst_81 {dimension_numbers = #tpu.dot_dimension_numbers<[1], [0], [0], [1], [0, 0, 1, 1], [], []>} : vector<8x32xf32>, vector<32x96xf32>, vector<8x96xf32> -> vector<8x96xf32>
    %c32_82 = arith.constant 32 : index
    %c0_83 = arith.constant 0 : index
    %268 = vector.load %arg20[%c32_82, %c0_83] : memref<64x96xf32, #tpu.memory_space<vmem>>, vector<8x96xf32>
    %269 = vector.extract_strided_slice %268 {offsets = [0, 0], sizes = [8, 32], strides = [1, 1]} : vector<8x96xf32> to vector<8x32xf32>
    %270 = vector.extract_strided_slice %267 {offsets = [0, 0], sizes = [8, 32], strides = [1, 1]} : vector<8x96xf32> to vector<8x32xf32>
    %271 = arith.addf %269, %270 : vector<8x32xf32>
    %272 = arith.negf %271 : vector<8x32xf32>
    %273 = math.exp %272 : vector<8x32xf32>
    %cst_84 = arith.constant 1.000000e+00 : f32
    %274 = vector.broadcast %cst_84 : f32 to vector<8x32xf32>
    %275 = arith.addf %274, %273 : vector<8x32xf32>
    %276 = arith.divf %274, %275 : vector<8x32xf32>
    %277 = vector.extract_strided_slice %268 {offsets = [0, 32], sizes = [8, 32], strides = [1, 1]} : vector<8x96xf32> to vector<8x32xf32>
    %278 = vector.extract_strided_slice %267 {offsets = [0, 32], sizes = [8, 32], strides = [1, 1]} : vector<8x96xf32> to vector<8x32xf32>
    %279 = arith.addf %277, %278 : vector<8x32xf32>
    %280 = arith.negf %279 : vector<8x32xf32>
    %281 = math.exp %280 : vector<8x32xf32>
    %cst_85 = arith.constant 1.000000e+00 : f32
    %282 = vector.broadcast %cst_85 : f32 to vector<8x32xf32>
    %283 = arith.addf %282, %281 : vector<8x32xf32>
    %284 = arith.divf %282, %283 : vector<8x32xf32>
    %285 = vector.extract_strided_slice %268 {offsets = [0, 64], sizes = [8, 32], strides = [1, 1]} : vector<8x96xf32> to vector<8x32xf32>
    %286 = vector.extract_strided_slice %267 {offsets = [0, 64], sizes = [8, 32], strides = [1, 1]} : vector<8x96xf32> to vector<8x32xf32>
    %287 = vector.broadcast %8 : vector<1x32xf32> to vector<8x32xf32>
    %288 = arith.addf %286, %287 : vector<8x32xf32>
    %289 = arith.mulf %276, %288 : vector<8x32xf32>
    %290 = arith.addf %285, %289 : vector<8x32xf32>
    %291 = math.tanh %290 : vector<8x32xf32>
    %cst_86 = arith.constant 1.000000e+00 : f32
    %292 = vector.broadcast %cst_86 : f32 to vector<8x32xf32>
    %293 = arith.subf %292, %284 : vector<8x32xf32>
    %294 = arith.mulf %293, %291 : vector<8x32xf32>
    %295 = arith.mulf %284, %234 : vector<8x32xf32>
    %296 = arith.addf %294, %295 : vector<8x32xf32>
    %c32_87 = arith.constant 32 : index
    %c0_88 = arith.constant 0 : index
    %297 = vector.load %arg22[%c32_87, %c0_88] : memref<64x32xf32, #tpu.memory_space<vmem>>, vector<8x32xf32>
    tpu.vector_store %arg22[%c32_87, %c0_88], %296 {strides = array<i32>} : memref<64x32xf32, #tpu.memory_space<vmem>>, vector<8x32xf32>,
    %cst_89 = arith.constant dense<0.000000e+00> : vector<8x96xf32>
    %298 = tpu.matmul %265, %15, %cst_89 {dimension_numbers = #tpu.dot_dimension_numbers<[1], [0], [0], [1], [0, 0, 1, 1], [], []>} : vector<8x32xf32>, vector<32x96xf32>, vector<8x96xf32> -> vector<8x96xf32>
    %c24_90 = arith.constant 24 : index
    %c0_91 = arith.constant 0 : index
    %299 = vector.load %arg21[%c24_90, %c0_91] : memref<64x96xf32, #tpu.memory_space<vmem>>, vector<8x96xf32>
    %300 = vector.extract_strided_slice %299 {offsets = [0, 0], sizes = [8, 32], strides = [1, 1]} : vector<8x96xf32> to vector<8x32xf32>
    %301 = vector.extract_strided_slice %298 {offsets = [0, 0], sizes = [8, 32], strides = [1, 1]} : vector<8x96xf32> to vector<8x32xf32>
    %302 = arith.addf %300, %301 : vector<8x32xf32>
    %303 = arith.negf %302 : vector<8x32xf32>
    %304 = math.exp %303 : vector<8x32xf32>
    %cst_92 = arith.constant 1.000000e+00 : f32
    %305 = vector.broadcast %cst_92 : f32 to vector<8x32xf32>
    %306 = arith.addf %305, %304 : vector<8x32xf32>
    %307 = arith.divf %305, %306 : vector<8x32xf32>
    %308 = vector.extract_strided_slice %299 {offsets = [0, 32], sizes = [8, 32], strides = [1, 1]} : vector<8x96xf32> to vector<8x32xf32>
    %309 = vector.extract_strided_slice %298 {offsets = [0, 32], sizes = [8, 32], strides = [1, 1]} : vector<8x96xf32> to vector<8x32xf32>
    %310 = arith.addf %308, %309 : vector<8x32xf32>
    %311 = arith.negf %310 : vector<8x32xf32>
    %312 = math.exp %311 : vector<8x32xf32>
    %cst_93 = arith.constant 1.000000e+00 : f32
    %313 = vector.broadcast %cst_93 : f32 to vector<8x32xf32>
    %314 = arith.addf %313, %312 : vector<8x32xf32>
    %315 = arith.divf %313, %314 : vector<8x32xf32>
    %316 = vector.extract_strided_slice %299 {offsets = [0, 64], sizes = [8, 32], strides = [1, 1]} : vector<8x96xf32> to vector<8x32xf32>
    %317 = vector.extract_strided_slice %298 {offsets = [0, 64], sizes = [8, 32], strides = [1, 1]} : vector<8x96xf32> to vector<8x32xf32>
    %318 = vector.broadcast %16 : vector<1x32xf32> to vector<8x32xf32>
    %319 = arith.addf %317, %318 : vector<8x32xf32>
    %320 = arith.mulf %307, %319 : vector<8x32xf32>
    %321 = arith.addf %316, %320 : vector<8x32xf32>
    %322 = math.tanh %321 : vector<8x32xf32>
    %cst_94 = arith.constant 1.000000e+00 : f32
    %323 = vector.broadcast %cst_94 : f32 to vector<8x32xf32>
    %324 = arith.subf %323, %315 : vector<8x32xf32>
    %325 = arith.mulf %324, %322 : vector<8x32xf32>
    %326 = arith.mulf %315, %265 : vector<8x32xf32>
    %327 = arith.addf %325, %326 : vector<8x32xf32>
    %c24_95 = arith.constant 24 : index
    %c0_96 = arith.constant 0 : index
    %328 = vector.load %arg23[%c24_95, %c0_96] : memref<64x32xf32, #tpu.memory_space<vmem>>, vector<8x32xf32>
    tpu.vector_store %arg23[%c24_95, %c0_96], %327 {strides = array<i32>} : memref<64x32xf32, #tpu.memory_space<vmem>>, vector<8x32xf32>,
    %cst_97 = arith.constant dense<0.000000e+00> : vector<8x96xf32>
    %329 = tpu.matmul %296, %7, %cst_97 {dimension_numbers = #tpu.dot_dimension_numbers<[1], [0], [0], [1], [0, 0, 1, 1], [], []>} : vector<8x32xf32>, vector<32x96xf32>, vector<8x96xf32> -> vector<8x96xf32>
    %c40_98 = arith.constant 40 : index
    %c0_99 = arith.constant 0 : index
    %330 = vector.load %arg20[%c40_98, %c0_99] : memref<64x96xf32, #tpu.memory_space<vmem>>, vector<8x96xf32>
    %331 = vector.extract_strided_slice %330 {offsets = [0, 0], sizes = [8, 32], strides = [1, 1]} : vector<8x96xf32> to vector<8x32xf32>
    %332 = vector.extract_strided_slice %329 {offsets = [0, 0], sizes = [8, 32], strides = [1, 1]} : vector<8x96xf32> to vector<8x32xf32>
    %333 = arith.addf %331, %332 : vector<8x32xf32>
    %334 = arith.negf %333 : vector<8x32xf32>
    %335 = math.exp %334 : vector<8x32xf32>
    %cst_100 = arith.constant 1.000000e+00 : f32
    %336 = vector.broadcast %cst_100 : f32 to vector<8x32xf32>
    %337 = arith.addf %336, %335 : vector<8x32xf32>
    %338 = arith.divf %336, %337 : vector<8x32xf32>
    %339 = vector.extract_strided_slice %330 {offsets = [0, 32], sizes = [8, 32], strides = [1, 1]} : vector<8x96xf32> to vector<8x32xf32>
    %340 = vector.extract_strided_slice %329 {offsets = [0, 32], sizes = [8, 32], strides = [1, 1]} : vector<8x96xf32> to vector<8x32xf32>
    %341 = arith.addf %339, %340 : vector<8x32xf32>
    %342 = arith.negf %341 : vector<8x32xf32>
    %343 = math.exp %342 : vector<8x32xf32>
    %cst_101 = arith.constant 1.000000e+00 : f32
    %344 = vector.broadcast %cst_101 : f32 to vector<8x32xf32>
    %345 = arith.addf %344, %343 : vector<8x32xf32>
    %346 = arith.divf %344, %345 : vector<8x32xf32>
    %347 = vector.extract_strided_slice %330 {offsets = [0, 64], sizes = [8, 32], strides = [1, 1]} : vector<8x96xf32> to vector<8x32xf32>
    %348 = vector.extract_strided_slice %329 {offsets = [0, 64], sizes = [8, 32], strides = [1, 1]} : vector<8x96xf32> to vector<8x32xf32>
    %349 = vector.broadcast %8 : vector<1x32xf32> to vector<8x32xf32>
    %350 = arith.addf %348, %349 : vector<8x32xf32>
    %351 = arith.mulf %338, %350 : vector<8x32xf32>
    %352 = arith.addf %347, %351 : vector<8x32xf32>
    %353 = math.tanh %352 : vector<8x32xf32>
    %cst_102 = arith.constant 1.000000e+00 : f32
    %354 = vector.broadcast %cst_102 : f32 to vector<8x32xf32>
    %355 = arith.subf %354, %346 : vector<8x32xf32>
    %356 = arith.mulf %355, %353 : vector<8x32xf32>
    %357 = arith.mulf %346, %296 : vector<8x32xf32>
    %358 = arith.addf %356, %357 : vector<8x32xf32>
    %c40_103 = arith.constant 40 : index
    %c0_104 = arith.constant 0 : index
    %359 = vector.load %arg22[%c40_103, %c0_104] : memref<64x32xf32, #tpu.memory_space<vmem>>, vector<8x32xf32>
    tpu.vector_store %arg22[%c40_103, %c0_104], %358 {strides = array<i32>} : memref<64x32xf32, #tpu.memory_space<vmem>>, vector<8x32xf32>,
    %cst_105 = arith.constant dense<0.000000e+00> : vector<8x96xf32>
    %360 = tpu.matmul %327, %15, %cst_105 {dimension_numbers = #tpu.dot_dimension_numbers<[1], [0], [0], [1], [0, 0, 1, 1], [], []>} : vector<8x32xf32>, vector<32x96xf32>, vector<8x96xf32> -> vector<8x96xf32>
    %c16_106 = arith.constant 16 : index
    %c0_107 = arith.constant 0 : index
    %361 = vector.load %arg21[%c16_106, %c0_107] : memref<64x96xf32, #tpu.memory_space<vmem>>, vector<8x96xf32>
    %362 = vector.extract_strided_slice %361 {offsets = [0, 0], sizes = [8, 32], strides = [1, 1]} : vector<8x96xf32> to vector<8x32xf32>
    %363 = vector.extract_strided_slice %360 {offsets = [0, 0], sizes = [8, 32], strides = [1, 1]} : vector<8x96xf32> to vector<8x32xf32>
    %364 = arith.addf %362, %363 : vector<8x32xf32>
    %365 = arith.negf %364 : vector<8x32xf32>
    %366 = math.exp %365 : vector<8x32xf32>
    %cst_108 = arith.constant 1.000000e+00 : f32
    %367 = vector.broadcast %cst_108 : f32 to vector<8x32xf32>
    %368 = arith.addf %367, %366 : vector<8x32xf32>
    %369 = arith.divf %367, %368 : vector<8x32xf32>
    %370 = vector.extract_strided_slice %361 {offsets = [0, 32], sizes = [8, 32], strides = [1, 1]} : vector<8x96xf32> to vector<8x32xf32>
    %371 = vector.extract_strided_slice %360 {offsets = [0, 32], sizes = [8, 32], strides = [1, 1]} : vector<8x96xf32> to vector<8x32xf32>
    %372 = arith.addf %370, %371 : vector<8x32xf32>
    %373 = arith.negf %372 : vector<8x32xf32>
    %374 = math.exp %373 : vector<8x32xf32>
    %cst_109 = arith.constant 1.000000e+00 : f32
    %375 = vector.broadcast %cst_109 : f32 to vector<8x32xf32>
    %376 = arith.addf %375, %374 : vector<8x32xf32>
    %377 = arith.divf %375, %376 : vector<8x32xf32>
    %378 = vector.extract_strided_slice %361 {offsets = [0, 64], sizes = [8, 32], strides = [1, 1]} : vector<8x96xf32> to vector<8x32xf32>
    %379 = vector.extract_strided_slice %360 {offsets = [0, 64], sizes = [8, 32], strides = [1, 1]} : vector<8x96xf32> to vector<8x32xf32>
    %380 = vector.broadcast %16 : vector<1x32xf32> to vector<8x32xf32>
    %381 = arith.addf %379, %380 : vector<8x32xf32>
    %382 = arith.mulf %369, %381 : vector<8x32xf32>
    %383 = arith.addf %378, %382 : vector<8x32xf32>
    %384 = math.tanh %383 : vector<8x32xf32>
    %cst_110 = arith.constant 1.000000e+00 : f32
    %385 = vector.broadcast %cst_110 : f32 to vector<8x32xf32>
    %386 = arith.subf %385, %377 : vector<8x32xf32>
    %387 = arith.mulf %386, %384 : vector<8x32xf32>
    %388 = arith.mulf %377, %327 : vector<8x32xf32>
    %389 = arith.addf %387, %388 : vector<8x32xf32>
    %c16_111 = arith.constant 16 : index
    %c0_112 = arith.constant 0 : index
    %390 = vector.load %arg23[%c16_111, %c0_112] : memref<64x32xf32, #tpu.memory_space<vmem>>, vector<8x32xf32>
    tpu.vector_store %arg23[%c16_111, %c0_112], %389 {strides = array<i32>} : memref<64x32xf32, #tpu.memory_space<vmem>>, vector<8x32xf32>,
    %cst_113 = arith.constant dense<0.000000e+00> : vector<8x96xf32>
    %391 = tpu.matmul %358, %7, %cst_113 {dimension_numbers = #tpu.dot_dimension_numbers<[1], [0], [0], [1], [0, 0, 1, 1], [], []>} : vector<8x32xf32>, vector<32x96xf32>, vector<8x96xf32> -> vector<8x96xf32>
    %c48_114 = arith.constant 48 : index
    %c0_115 = arith.constant 0 : index
    %392 = vector.load %arg20[%c48_114, %c0_115] : memref<64x96xf32, #tpu.memory_space<vmem>>, vector<8x96xf32>
    %393 = vector.extract_strided_slice %392 {offsets = [0, 0], sizes = [8, 32], strides = [1, 1]} : vector<8x96xf32> to vector<8x32xf32>
    %394 = vector.extract_strided_slice %391 {offsets = [0, 0], sizes = [8, 32], strides = [1, 1]} : vector<8x96xf32> to vector<8x32xf32>
    %395 = arith.addf %393, %394 : vector<8x32xf32>
    %396 = arith.negf %395 : vector<8x32xf32>
    %397 = math.exp %396 : vector<8x32xf32>
    %cst_116 = arith.constant 1.000000e+00 : f32
    %398 = vector.broadcast %cst_116 : f32 to vector<8x32xf32>
    %399 = arith.addf %398, %397 : vector<8x32xf32>
    %400 = arith.divf %398, %399 : vector<8x32xf32>
    %401 = vector.extract_strided_slice %392 {offsets = [0, 32], sizes = [8, 32], strides = [1, 1]} : vector<8x96xf32> to vector<8x32xf32>
    %402 = vector.extract_strided_slice %391 {offsets = [0, 32], sizes = [8, 32], strides = [1, 1]} : vector<8x96xf32> to vector<8x32xf32>
    %403 = arith.addf %401, %402 : vector<8x32xf32>
    %404 = arith.negf %403 : vector<8x32xf32>
    %405 = math.exp %404 : vector<8x32xf32>
    %cst_117 = arith.constant 1.000000e+00 : f32
    %406 = vector.broadcast %cst_117 : f32 to vector<8x32xf32>
    %407 = arith.addf %406, %405 : vector<8x32xf32>
    %408 = arith.divf %406, %407 : vector<8x32xf32>
    %409 = vector.extract_strided_slice %392 {offsets = [0, 64], sizes = [8, 32], strides = [1, 1]} : vector<8x96xf32> to vector<8x32xf32>
    %410 = vector.extract_strided_slice %391 {offsets = [0, 64], sizes = [8, 32], strides = [1, 1]} : vector<8x96xf32> to vector<8x32xf32>
    %411 = vector.broadcast %8 : vector<1x32xf32> to vector<8x32xf32>
    %412 = arith.addf %410, %411 : vector<8x32xf32>
    %413 = arith.mulf %400, %412 : vector<8x32xf32>
    %414 = arith.addf %409, %413 : vector<8x32xf32>
    %415 = math.tanh %414 : vector<8x32xf32>
    %cst_118 = arith.constant 1.000000e+00 : f32
    %416 = vector.broadcast %cst_118 : f32 to vector<8x32xf32>
    %417 = arith.subf %416, %408 : vector<8x32xf32>
    %418 = arith.mulf %417, %415 : vector<8x32xf32>
    %419 = arith.mulf %408, %358 : vector<8x32xf32>
    %420 = arith.addf %418, %419 : vector<8x32xf32>
    %c48_119 = arith.constant 48 : index
    %c0_120 = arith.constant 0 : index
    %421 = vector.load %arg22[%c48_119, %c0_120] : memref<64x32xf32, #tpu.memory_space<vmem>>, vector<8x32xf32>
    tpu.vector_store %arg22[%c48_119, %c0_120], %420 {strides = array<i32>} : memref<64x32xf32, #tpu.memory_space<vmem>>, vector<8x32xf32>,
    %cst_121 = arith.constant dense<0.000000e+00> : vector<8x96xf32>
    %422 = tpu.matmul %389, %15, %cst_121 {dimension_numbers = #tpu.dot_dimension_numbers<[1], [0], [0], [1], [0, 0, 1, 1], [], []>} : vector<8x32xf32>, vector<32x96xf32>, vector<8x96xf32> -> vector<8x96xf32>
    %c8_122 = arith.constant 8 : index
    %c0_123 = arith.constant 0 : index
    %423 = vector.load %arg21[%c8_122, %c0_123] : memref<64x96xf32, #tpu.memory_space<vmem>>, vector<8x96xf32>
    %424 = vector.extract_strided_slice %423 {offsets = [0, 0], sizes = [8, 32], strides = [1, 1]} : vector<8x96xf32> to vector<8x32xf32>
    %425 = vector.extract_strided_slice %422 {offsets = [0, 0], sizes = [8, 32], strides = [1, 1]} : vector<8x96xf32> to vector<8x32xf32>
    %426 = arith.addf %424, %425 : vector<8x32xf32>
    %427 = arith.negf %426 : vector<8x32xf32>
    %428 = math.exp %427 : vector<8x32xf32>
    %cst_124 = arith.constant 1.000000e+00 : f32
    %429 = vector.broadcast %cst_124 : f32 to vector<8x32xf32>
    %430 = arith.addf %429, %428 : vector<8x32xf32>
    %431 = arith.divf %429, %430 : vector<8x32xf32>
    %432 = vector.extract_strided_slice %423 {offsets = [0, 32], sizes = [8, 32], strides = [1, 1]} : vector<8x96xf32> to vector<8x32xf32>
    %433 = vector.extract_strided_slice %422 {offsets = [0, 32], sizes = [8, 32], strides = [1, 1]} : vector<8x96xf32> to vector<8x32xf32>
    %434 = arith.addf %432, %433 : vector<8x32xf32>
    %435 = arith.negf %434 : vector<8x32xf32>
    %436 = math.exp %435 : vector<8x32xf32>
    %cst_125 = arith.constant 1.000000e+00 : f32
    %437 = vector.broadcast %cst_125 : f32 to vector<8x32xf32>
    %438 = arith.addf %437, %436 : vector<8x32xf32>
    %439 = arith.divf %437, %438 : vector<8x32xf32>
    %440 = vector.extract_strided_slice %423 {offsets = [0, 64], sizes = [8, 32], strides = [1, 1]} : vector<8x96xf32> to vector<8x32xf32>
    %441 = vector.extract_strided_slice %422 {offsets = [0, 64], sizes = [8, 32], strides = [1, 1]} : vector<8x96xf32> to vector<8x32xf32>
    %442 = vector.broadcast %16 : vector<1x32xf32> to vector<8x32xf32>
    %443 = arith.addf %441, %442 : vector<8x32xf32>
    %444 = arith.mulf %431, %443 : vector<8x32xf32>
    %445 = arith.addf %440, %444 : vector<8x32xf32>
    %446 = math.tanh %445 : vector<8x32xf32>
    %cst_126 = arith.constant 1.000000e+00 : f32
    %447 = vector.broadcast %cst_126 : f32 to vector<8x32xf32>
    %448 = arith.subf %447, %439 : vector<8x32xf32>
    %449 = arith.mulf %448, %446 : vector<8x32xf32>
    %450 = arith.mulf %439, %389 : vector<8x32xf32>
    %451 = arith.addf %449, %450 : vector<8x32xf32>
    %c8_127 = arith.constant 8 : index
    %c0_128 = arith.constant 0 : index
    %452 = vector.load %arg23[%c8_127, %c0_128] : memref<64x32xf32, #tpu.memory_space<vmem>>, vector<8x32xf32>
    tpu.vector_store %arg23[%c8_127, %c0_128], %451 {strides = array<i32>} : memref<64x32xf32, #tpu.memory_space<vmem>>, vector<8x32xf32>,
    %cst_129 = arith.constant dense<0.000000e+00> : vector<8x96xf32>
    %453 = tpu.matmul %420, %7, %cst_129 {dimension_numbers = #tpu.dot_dimension_numbers<[1], [0], [0], [1], [0, 0, 1, 1], [], []>} : vector<8x32xf32>, vector<32x96xf32>, vector<8x96xf32> -> vector<8x96xf32>
    %c56_130 = arith.constant 56 : index
    %c0_131 = arith.constant 0 : index
    %454 = vector.load %arg20[%c56_130, %c0_131] : memref<64x96xf32, #tpu.memory_space<vmem>>, vector<8x96xf32>
    %455 = vector.extract_strided_slice %454 {offsets = [0, 0], sizes = [8, 32], strides = [1, 1]} : vector<8x96xf32> to vector<8x32xf32>
    %456 = vector.extract_strided_slice %453 {offsets = [0, 0], sizes = [8, 32], strides = [1, 1]} : vector<8x96xf32> to vector<8x32xf32>
    %457 = arith.addf %455, %456 : vector<8x32xf32>
    %458 = arith.negf %457 : vector<8x32xf32>
    %459 = math.exp %458 : vector<8x32xf32>
    %cst_132 = arith.constant 1.000000e+00 : f32
    %460 = vector.broadcast %cst_132 : f32 to vector<8x32xf32>
    %461 = arith.addf %460, %459 : vector<8x32xf32>
    %462 = arith.divf %460, %461 : vector<8x32xf32>
    %463 = vector.extract_strided_slice %454 {offsets = [0, 32], sizes = [8, 32], strides = [1, 1]} : vector<8x96xf32> to vector<8x32xf32>
    %464 = vector.extract_strided_slice %453 {offsets = [0, 32], sizes = [8, 32], strides = [1, 1]} : vector<8x96xf32> to vector<8x32xf32>
    %465 = arith.addf %463, %464 : vector<8x32xf32>
    %466 = arith.negf %465 : vector<8x32xf32>
    %467 = math.exp %466 : vector<8x32xf32>
    %cst_133 = arith.constant 1.000000e+00 : f32
    %468 = vector.broadcast %cst_133 : f32 to vector<8x32xf32>
    %469 = arith.addf %468, %467 : vector<8x32xf32>
    %470 = arith.divf %468, %469 : vector<8x32xf32>
    %471 = vector.extract_strided_slice %454 {offsets = [0, 64], sizes = [8, 32], strides = [1, 1]} : vector<8x96xf32> to vector<8x32xf32>
    %472 = vector.extract_strided_slice %453 {offsets = [0, 64], sizes = [8, 32], strides = [1, 1]} : vector<8x96xf32> to vector<8x32xf32>
    %473 = vector.broadcast %8 : vector<1x32xf32> to vector<8x32xf32>
    %474 = arith.addf %472, %473 : vector<8x32xf32>
    %475 = arith.mulf %462, %474 : vector<8x32xf32>
    %476 = arith.addf %471, %475 : vector<8x32xf32>
    %477 = math.tanh %476 : vector<8x32xf32>
    %cst_134 = arith.constant 1.000000e+00 : f32
    %478 = vector.broadcast %cst_134 : f32 to vector<8x32xf32>
    %479 = arith.subf %478, %470 : vector<8x32xf32>
    %480 = arith.mulf %479, %477 : vector<8x32xf32>
    %481 = arith.mulf %470, %420 : vector<8x32xf32>
    %482 = arith.addf %480, %481 : vector<8x32xf32>
    %c56_135 = arith.constant 56 : index
    %c0_136 = arith.constant 0 : index
    %483 = vector.load %arg22[%c56_135, %c0_136] : memref<64x32xf32, #tpu.memory_space<vmem>>, vector<8x32xf32>
    tpu.vector_store %arg22[%c56_135, %c0_136], %482 {strides = array<i32>} : memref<64x32xf32, #tpu.memory_space<vmem>>, vector<8x32xf32>,
    %cst_137 = arith.constant dense<0.000000e+00> : vector<8x96xf32>
    %484 = tpu.matmul %451, %15, %cst_137 {dimension_numbers = #tpu.dot_dimension_numbers<[1], [0], [0], [1], [0, 0, 1, 1], [], []>} : vector<8x32xf32>, vector<32x96xf32>, vector<8x96xf32> -> vector<8x96xf32>
    %c0_138 = arith.constant 0 : index
    %c0_139 = arith.constant 0 : index
    %485 = vector.load %arg21[%c0_138, %c0_139] : memref<64x96xf32, #tpu.memory_space<vmem>>, vector<8x96xf32>
    %486 = vector.extract_strided_slice %485 {offsets = [0, 0], sizes = [8, 32], strides = [1, 1]} : vector<8x96xf32> to vector<8x32xf32>
    %487 = vector.extract_strided_slice %484 {offsets = [0, 0], sizes = [8, 32], strides = [1, 1]} : vector<8x96xf32> to vector<8x32xf32>
    %488 = arith.addf %486, %487 : vector<8x32xf32>
    %489 = arith.negf %488 : vector<8x32xf32>
    %490 = math.exp %489 : vector<8x32xf32>
    %cst_140 = arith.constant 1.000000e+00 : f32
    %491 = vector.broadcast %cst_140 : f32 to vector<8x32xf32>
    %492 = arith.addf %491, %490 : vector<8x32xf32>
    %493 = arith.divf %491, %492 : vector<8x32xf32>
    %494 = vector.extract_strided_slice %485 {offsets = [0, 32], sizes = [8, 32], strides = [1, 1]} : vector<8x96xf32> to vector<8x32xf32>
    %495 = vector.extract_strided_slice %484 {offsets = [0, 32], sizes = [8, 32], strides = [1, 1]} : vector<8x96xf32> to vector<8x32xf32>
    %496 = arith.addf %494, %495 : vector<8x32xf32>
    %497 = arith.negf %496 : vector<8x32xf32>
    %498 = math.exp %497 : vector<8x32xf32>
    %cst_141 = arith.constant 1.000000e+00 : f32
    %499 = vector.broadcast %cst_141 : f32 to vector<8x32xf32>
    %500 = arith.addf %499, %498 : vector<8x32xf32>
    %501 = arith.divf %499, %500 : vector<8x32xf32>
    %502 = vector.extract_strided_slice %485 {offsets = [0, 64], sizes = [8, 32], strides = [1, 1]} : vector<8x96xf32> to vector<8x32xf32>
    %503 = vector.extract_strided_slice %484 {offsets = [0, 64], sizes = [8, 32], strides = [1, 1]} : vector<8x96xf32> to vector<8x32xf32>
    %504 = vector.broadcast %16 : vector<1x32xf32> to vector<8x32xf32>
    %505 = arith.addf %503, %504 : vector<8x32xf32>
    %506 = arith.mulf %493, %505 : vector<8x32xf32>
    %507 = arith.addf %502, %506 : vector<8x32xf32>
    %508 = math.tanh %507 : vector<8x32xf32>
    %cst_142 = arith.constant 1.000000e+00 : f32
    %509 = vector.broadcast %cst_142 : f32 to vector<8x32xf32>
    %510 = arith.subf %509, %501 : vector<8x32xf32>
    %511 = arith.mulf %510, %508 : vector<8x32xf32>
    %512 = arith.mulf %501, %451 : vector<8x32xf32>
    %513 = arith.addf %511, %512 : vector<8x32xf32>
    %c0_143 = arith.constant 0 : index
    %c0_144 = arith.constant 0 : index
    %514 = vector.load %arg23[%c0_143, %c0_144] : memref<64x32xf32, #tpu.memory_space<vmem>>, vector<8x32xf32>
    tpu.vector_store %arg23[%c0_143, %c0_144], %513 {strides = array<i32>} : memref<64x32xf32, #tpu.memory_space<vmem>>, vector<8x32xf32>,
    %c0_145 = arith.constant 0 : index
    %c0_146 = arith.constant 0 : index
    %515 = vector.load %arg22[%c0_145, %c0_146] : memref<64x32xf32, #tpu.memory_space<vmem>>, vector<64x32xf32>
    %c0_147 = arith.constant 0 : index
    %c0_148 = arith.constant 0 : index
    %516 = vector.load %arg23[%c0_147, %c0_148] : memref<64x32xf32, #tpu.memory_space<vmem>>, vector<64x32xf32>
    %c0_149 = arith.constant 0 : index
    %c0_150 = arith.constant 0 : index
    %517 = vector.load %arg11[%c0_149, %c0_150] : memref<1x96xf32, #tpu.memory_space<vmem>>, vector<1x96xf32>
    %c0_151 = arith.constant 0 : index
    %c0_152 = arith.constant 0 : index
    %518 = vector.load %arg9[%c0_151, %c0_152] : memref<64x96xf32, #tpu.memory_space<vmem>>, vector<32x96xf32>
    %cst_153 = arith.constant dense<0.000000e+00> : vector<64x96xf32>
    %519 = tpu.matmul %515, %518, %cst_153 {dimension_numbers = #tpu.dot_dimension_numbers<[1], [0], [0], [1], [0, 0, 1, 1], [], []>} : vector<64x32xf32>, vector<32x96xf32>, vector<64x96xf32> -> vector<64x96xf32>
    %520 = vector.broadcast %517 : vector<1x96xf32> to vector<64x96xf32>
    %521 = arith.addf %520, %519 : vector<64x96xf32>
    %c32_154 = arith.constant 32 : index
    %c0_155 = arith.constant 0 : index
    %522 = vector.load %arg9[%c32_154, %c0_155] : memref<64x96xf32, #tpu.memory_space<vmem>>, vector<32x96xf32>
    %cst_156 = arith.constant dense<0.000000e+00> : vector<64x96xf32>
    %523 = tpu.matmul %516, %522, %cst_156 {dimension_numbers = #tpu.dot_dimension_numbers<[1], [0], [0], [1], [0, 0, 1, 1], [], []>} : vector<64x32xf32>, vector<32x96xf32>, vector<64x96xf32> -> vector<64x96xf32>
    %524 = arith.addf %521, %523 : vector<64x96xf32>
    %c0_157 = arith.constant 0 : index
    %c0_158 = arith.constant 0 : index
    %525 = vector.load %arg20[%c0_157, %c0_158] : memref<64x96xf32, #tpu.memory_space<vmem>>, vector<64x96xf32>
    tpu.vector_store %arg20[%c0_157, %c0_158], %524 {strides = array<i32>} : memref<64x96xf32, #tpu.memory_space<vmem>>, vector<64x96xf32>,
    %c0_159 = arith.constant 0 : index
    %c0_160 = arith.constant 0 : index
    %526 = vector.load %arg10[%c0_159, %c0_160] : memref<32x96xf32, #tpu.memory_space<vmem>>, vector<32x96xf32>
    %c0_161 = arith.constant 0 : index
    %c0_162 = arith.constant 0 : index
    %527 = vector.load %arg12[%c0_161, %c0_162] : memref<1x32xf32, #tpu.memory_space<vmem>>, vector<1x32xf32>
    %c0_163 = arith.constant 0 : index
    %c0_164 = arith.constant 0 : index
    %528 = vector.load %arg15[%c0_163, %c0_164] : memref<1x96xf32, #tpu.memory_space<vmem>>, vector<1x96xf32>
    %c0_165 = arith.constant 0 : index
    %c0_166 = arith.constant 0 : index
    %529 = vector.load %arg13[%c0_165, %c0_166] : memref<64x96xf32, #tpu.memory_space<vmem>>, vector<32x96xf32>
    %cst_167 = arith.constant dense<0.000000e+00> : vector<64x96xf32>
    %530 = tpu.matmul %515, %529, %cst_167 {dimension_numbers = #tpu.dot_dimension_numbers<[1], [0], [0], [1], [0, 0, 1, 1], [], []>} : vector<64x32xf32>, vector<32x96xf32>, vector<64x96xf32> -> vector<64x96xf32>
    %531 = vector.broadcast %528 : vector<1x96xf32> to vector<64x96xf32>
    %532 = arith.addf %531, %530 : vector<64x96xf32>
    %c32_168 = arith.constant 32 : index
    %c0_169 = arith.constant 0 : index
    %533 = vector.load %arg13[%c32_168, %c0_169] : memref<64x96xf32, #tpu.memory_space<vmem>>, vector<32x96xf32>
    %cst_170 = arith.constant dense<0.000000e+00> : vector<64x96xf32>
    %534 = tpu.matmul %516, %533, %cst_170 {dimension_numbers = #tpu.dot_dimension_numbers<[1], [0], [0], [1], [0, 0, 1, 1], [], []>} : vector<64x32xf32>, vector<32x96xf32>, vector<64x96xf32> -> vector<64x96xf32>
    %535 = arith.addf %532, %534 : vector<64x96xf32>
    %c0_171 = arith.constant 0 : index
    %c0_172 = arith.constant 0 : index
    %536 = vector.load %arg21[%c0_171, %c0_172] : memref<64x96xf32, #tpu.memory_space<vmem>>, vector<64x96xf32>
    tpu.vector_store %arg21[%c0_171, %c0_172], %535 {strides = array<i32>} : memref<64x96xf32, #tpu.memory_space<vmem>>, vector<64x96xf32>,
    %c0_173 = arith.constant 0 : index
    %c0_174 = arith.constant 0 : index
    %537 = vector.load %arg14[%c0_173, %c0_174] : memref<32x96xf32, #tpu.memory_space<vmem>>, vector<32x96xf32>
    %c0_175 = arith.constant 0 : index
    %c0_176 = arith.constant 0 : index
    %538 = vector.load %arg16[%c0_175, %c0_176] : memref<1x32xf32, #tpu.memory_space<vmem>>, vector<1x32xf32>
    %cst_177 = arith.constant 0.000000e+00 : f32
    %539 = vector.broadcast %cst_177 : f32 to vector<8x32xf32>
    %cst_178 = arith.constant 0.000000e+00 : f32
    %540 = vector.broadcast %cst_178 : f32 to vector<8x32xf32>
    %cst_179 = arith.constant dense<0.000000e+00> : vector<8x96xf32>
    %541 = tpu.matmul %539, %526, %cst_179 {dimension_numbers = #tpu.dot_dimension_numbers<[1], [0], [0], [1], [0, 0, 1, 1], [], []>} : vector<8x32xf32>, vector<32x96xf32>, vector<8x96xf32> -> vector<8x96xf32>
    %c0_180 = arith.constant 0 : index
    %c0_181 = arith.constant 0 : index
    %542 = vector.load %arg20[%c0_180, %c0_181] : memref<64x96xf32, #tpu.memory_space<vmem>>, vector<8x96xf32>
    %543 = vector.extract_strided_slice %542 {offsets = [0, 0], sizes = [8, 32], strides = [1, 1]} : vector<8x96xf32> to vector<8x32xf32>
    %544 = vector.extract_strided_slice %541 {offsets = [0, 0], sizes = [8, 32], strides = [1, 1]} : vector<8x96xf32> to vector<8x32xf32>
    %545 = arith.addf %543, %544 : vector<8x32xf32>
    %546 = arith.negf %545 : vector<8x32xf32>
    %547 = math.exp %546 : vector<8x32xf32>
    %cst_182 = arith.constant 1.000000e+00 : f32
    %548 = vector.broadcast %cst_182 : f32 to vector<8x32xf32>
    %549 = arith.addf %548, %547 : vector<8x32xf32>
    %550 = arith.divf %548, %549 : vector<8x32xf32>
    %551 = vector.extract_strided_slice %542 {offsets = [0, 32], sizes = [8, 32], strides = [1, 1]} : vector<8x96xf32> to vector<8x32xf32>
    %552 = vector.extract_strided_slice %541 {offsets = [0, 32], sizes = [8, 32], strides = [1, 1]} : vector<8x96xf32> to vector<8x32xf32>
    %553 = arith.addf %551, %552 : vector<8x32xf32>
    %554 = arith.negf %553 : vector<8x32xf32>
    %555 = math.exp %554 : vector<8x32xf32>
    %cst_183 = arith.constant 1.000000e+00 : f32
    %556 = vector.broadcast %cst_183 : f32 to vector<8x32xf32>
    %557 = arith.addf %556, %555 : vector<8x32xf32>
    %558 = arith.divf %556, %557 : vector<8x32xf32>
    %559 = vector.extract_strided_slice %542 {offsets = [0, 64], sizes = [8, 32], strides = [1, 1]} : vector<8x96xf32> to vector<8x32xf32>
    %560 = vector.extract_strided_slice %541 {offsets = [0, 64], sizes = [8, 32], strides = [1, 1]} : vector<8x96xf32> to vector<8x32xf32>
    %561 = vector.broadcast %527 : vector<1x32xf32> to vector<8x32xf32>
    %562 = arith.addf %560, %561 : vector<8x32xf32>
    %563 = arith.mulf %550, %562 : vector<8x32xf32>
    %564 = arith.addf %559, %563 : vector<8x32xf32>
    %565 = math.tanh %564 : vector<8x32xf32>
    %cst_184 = arith.constant 1.000000e+00 : f32
    %566 = vector.broadcast %cst_184 : f32 to vector<8x32xf32>
    %567 = arith.subf %566, %558 : vector<8x32xf32>
    %568 = arith.mulf %567, %565 : vector<8x32xf32>
    %569 = arith.mulf %558, %539 : vector<8x32xf32>
    %570 = arith.addf %568, %569 : vector<8x32xf32>
    %cst_185 = arith.constant dense<0.000000e+00> : vector<8x96xf32>
    %571 = tpu.matmul %540, %537, %cst_185 {dimension_numbers = #tpu.dot_dimension_numbers<[1], [0], [0], [1], [0, 0, 1, 1], [], []>} : vector<8x32xf32>, vector<32x96xf32>, vector<8x96xf32> -> vector<8x96xf32>
    %c56_186 = arith.constant 56 : index
    %c0_187 = arith.constant 0 : index
    %572 = vector.load %arg21[%c56_186, %c0_187] : memref<64x96xf32, #tpu.memory_space<vmem>>, vector<8x96xf32>
    %573 = vector.extract_strided_slice %572 {offsets = [0, 0], sizes = [8, 32], strides = [1, 1]} : vector<8x96xf32> to vector<8x32xf32>
    %574 = vector.extract_strided_slice %571 {offsets = [0, 0], sizes = [8, 32], strides = [1, 1]} : vector<8x96xf32> to vector<8x32xf32>
    %575 = arith.addf %573, %574 : vector<8x32xf32>
    %576 = arith.negf %575 : vector<8x32xf32>
    %577 = math.exp %576 : vector<8x32xf32>
    %cst_188 = arith.constant 1.000000e+00 : f32
    %578 = vector.broadcast %cst_188 : f32 to vector<8x32xf32>
    %579 = arith.addf %578, %577 : vector<8x32xf32>
    %580 = arith.divf %578, %579 : vector<8x32xf32>
    %581 = vector.extract_strided_slice %572 {offsets = [0, 32], sizes = [8, 32], strides = [1, 1]} : vector<8x96xf32> to vector<8x32xf32>
    %582 = vector.extract_strided_slice %571 {offsets = [0, 32], sizes = [8, 32], strides = [1, 1]} : vector<8x96xf32> to vector<8x32xf32>
    %583 = arith.addf %581, %582 : vector<8x32xf32>
    %584 = arith.negf %583 : vector<8x32xf32>
    %585 = math.exp %584 : vector<8x32xf32>
    %cst_189 = arith.constant 1.000000e+00 : f32
    %586 = vector.broadcast %cst_189 : f32 to vector<8x32xf32>
    %587 = arith.addf %586, %585 : vector<8x32xf32>
    %588 = arith.divf %586, %587 : vector<8x32xf32>
    %589 = vector.extract_strided_slice %572 {offsets = [0, 64], sizes = [8, 32], strides = [1, 1]} : vector<8x96xf32> to vector<8x32xf32>
    %590 = vector.extract_strided_slice %571 {offsets = [0, 64], sizes = [8, 32], strides = [1, 1]} : vector<8x96xf32> to vector<8x32xf32>
    %591 = vector.broadcast %538 : vector<1x32xf32> to vector<8x32xf32>
    %592 = arith.addf %590, %591 : vector<8x32xf32>
    %593 = arith.mulf %580, %592 : vector<8x32xf32>
    %594 = arith.addf %589, %593 : vector<8x32xf32>
    %595 = math.tanh %594 : vector<8x32xf32>
    %cst_190 = arith.constant 1.000000e+00 : f32
    %596 = vector.broadcast %cst_190 : f32 to vector<8x32xf32>
    %597 = arith.subf %596, %588 : vector<8x32xf32>
    %598 = arith.mulf %597, %595 : vector<8x32xf32>
    %599 = arith.mulf %588, %540 : vector<8x32xf32>
    %600 = arith.addf %598, %599 : vector<8x32xf32>
    %cst_191 = arith.constant dense<0.000000e+00> : vector<8x96xf32>
    %601 = tpu.matmul %570, %526, %cst_191 {dimension_numbers = #tpu.dot_dimension_numbers<[1], [0], [0], [1], [0, 0, 1, 1], [], []>} : vector<8x32xf32>, vector<32x96xf32>, vector<8x96xf32> -> vector<8x96xf32>
    %c8_192 = arith.constant 8 : index
    %c0_193 = arith.constant 0 : index
    %602 = vector.load %arg20[%c8_192, %c0_193] : memref<64x96xf32, #tpu.memory_space<vmem>>, vector<8x96xf32>
    %603 = vector.extract_strided_slice %602 {offsets = [0, 0], sizes = [8, 32], strides = [1, 1]} : vector<8x96xf32> to vector<8x32xf32>
    %604 = vector.extract_strided_slice %601 {offsets = [0, 0], sizes = [8, 32], strides = [1, 1]} : vector<8x96xf32> to vector<8x32xf32>
    %605 = arith.addf %603, %604 : vector<8x32xf32>
    %606 = arith.negf %605 : vector<8x32xf32>
    %607 = math.exp %606 : vector<8x32xf32>
    %cst_194 = arith.constant 1.000000e+00 : f32
    %608 = vector.broadcast %cst_194 : f32 to vector<8x32xf32>
    %609 = arith.addf %608, %607 : vector<8x32xf32>
    %610 = arith.divf %608, %609 : vector<8x32xf32>
    %611 = vector.extract_strided_slice %602 {offsets = [0, 32], sizes = [8, 32], strides = [1, 1]} : vector<8x96xf32> to vector<8x32xf32>
    %612 = vector.extract_strided_slice %601 {offsets = [0, 32], sizes = [8, 32], strides = [1, 1]} : vector<8x96xf32> to vector<8x32xf32>
    %613 = arith.addf %611, %612 : vector<8x32xf32>
    %614 = arith.negf %613 : vector<8x32xf32>
    %615 = math.exp %614 : vector<8x32xf32>
    %cst_195 = arith.constant 1.000000e+00 : f32
    %616 = vector.broadcast %cst_195 : f32 to vector<8x32xf32>
    %617 = arith.addf %616, %615 : vector<8x32xf32>
    %618 = arith.divf %616, %617 : vector<8x32xf32>
    %619 = vector.extract_strided_slice %602 {offsets = [0, 64], sizes = [8, 32], strides = [1, 1]} : vector<8x96xf32> to vector<8x32xf32>
    %620 = vector.extract_strided_slice %601 {offsets = [0, 64], sizes = [8, 32], strides = [1, 1]} : vector<8x96xf32> to vector<8x32xf32>
    %621 = vector.broadcast %527 : vector<1x32xf32> to vector<8x32xf32>
    %622 = arith.addf %620, %621 : vector<8x32xf32>
    %623 = arith.mulf %610, %622 : vector<8x32xf32>
    %624 = arith.addf %619, %623 : vector<8x32xf32>
    %625 = math.tanh %624 : vector<8x32xf32>
    %cst_196 = arith.constant 1.000000e+00 : f32
    %626 = vector.broadcast %cst_196 : f32 to vector<8x32xf32>
    %627 = arith.subf %626, %618 : vector<8x32xf32>
    %628 = arith.mulf %627, %625 : vector<8x32xf32>
    %629 = arith.mulf %618, %570 : vector<8x32xf32>
    %630 = arith.addf %628, %629 : vector<8x32xf32>
    %cst_197 = arith.constant dense<0.000000e+00> : vector<8x96xf32>
    %631 = tpu.matmul %600, %537, %cst_197 {dimension_numbers = #tpu.dot_dimension_numbers<[1], [0], [0], [1], [0, 0, 1, 1], [], []>} : vector<8x32xf32>, vector<32x96xf32>, vector<8x96xf32> -> vector<8x96xf32>
    %c48_198 = arith.constant 48 : index
    %c0_199 = arith.constant 0 : index
    %632 = vector.load %arg21[%c48_198, %c0_199] : memref<64x96xf32, #tpu.memory_space<vmem>>, vector<8x96xf32>
    %633 = vector.extract_strided_slice %632 {offsets = [0, 0], sizes = [8, 32], strides = [1, 1]} : vector<8x96xf32> to vector<8x32xf32>
    %634 = vector.extract_strided_slice %631 {offsets = [0, 0], sizes = [8, 32], strides = [1, 1]} : vector<8x96xf32> to vector<8x32xf32>
    %635 = arith.addf %633, %634 : vector<8x32xf32>
    %636 = arith.negf %635 : vector<8x32xf32>
    %637 = math.exp %636 : vector<8x32xf32>
    %cst_200 = arith.constant 1.000000e+00 : f32
    %638 = vector.broadcast %cst_200 : f32 to vector<8x32xf32>
    %639 = arith.addf %638, %637 : vector<8x32xf32>
    %640 = arith.divf %638, %639 : vector<8x32xf32>
    %641 = vector.extract_strided_slice %632 {offsets = [0, 32], sizes = [8, 32], strides = [1, 1]} : vector<8x96xf32> to vector<8x32xf32>
    %642 = vector.extract_strided_slice %631 {offsets = [0, 32], sizes = [8, 32], strides = [1, 1]} : vector<8x96xf32> to vector<8x32xf32>
    %643 = arith.addf %641, %642 : vector<8x32xf32>
    %644 = arith.negf %643 : vector<8x32xf32>
    %645 = math.exp %644 : vector<8x32xf32>
    %cst_201 = arith.constant 1.000000e+00 : f32
    %646 = vector.broadcast %cst_201 : f32 to vector<8x32xf32>
    %647 = arith.addf %646, %645 : vector<8x32xf32>
    %648 = arith.divf %646, %647 : vector<8x32xf32>
    %649 = vector.extract_strided_slice %632 {offsets = [0, 64], sizes = [8, 32], strides = [1, 1]} : vector<8x96xf32> to vector<8x32xf32>
    %650 = vector.extract_strided_slice %631 {offsets = [0, 64], sizes = [8, 32], strides = [1, 1]} : vector<8x96xf32> to vector<8x32xf32>
    %651 = vector.broadcast %538 : vector<1x32xf32> to vector<8x32xf32>
    %652 = arith.addf %650, %651 : vector<8x32xf32>
    %653 = arith.mulf %640, %652 : vector<8x32xf32>
    %654 = arith.addf %649, %653 : vector<8x32xf32>
    %655 = math.tanh %654 : vector<8x32xf32>
    %cst_202 = arith.constant 1.000000e+00 : f32
    %656 = vector.broadcast %cst_202 : f32 to vector<8x32xf32>
    %657 = arith.subf %656, %648 : vector<8x32xf32>
    %658 = arith.mulf %657, %655 : vector<8x32xf32>
    %659 = arith.mulf %648, %600 : vector<8x32xf32>
    %660 = arith.addf %658, %659 : vector<8x32xf32>
    %cst_203 = arith.constant dense<0.000000e+00> : vector<8x96xf32>
    %661 = tpu.matmul %630, %526, %cst_203 {dimension_numbers = #tpu.dot_dimension_numbers<[1], [0], [0], [1], [0, 0, 1, 1], [], []>} : vector<8x32xf32>, vector<32x96xf32>, vector<8x96xf32> -> vector<8x96xf32>
    %c16_204 = arith.constant 16 : index
    %c0_205 = arith.constant 0 : index
    %662 = vector.load %arg20[%c16_204, %c0_205] : memref<64x96xf32, #tpu.memory_space<vmem>>, vector<8x96xf32>
    %663 = vector.extract_strided_slice %662 {offsets = [0, 0], sizes = [8, 32], strides = [1, 1]} : vector<8x96xf32> to vector<8x32xf32>
    %664 = vector.extract_strided_slice %661 {offsets = [0, 0], sizes = [8, 32], strides = [1, 1]} : vector<8x96xf32> to vector<8x32xf32>
    %665 = arith.addf %663, %664 : vector<8x32xf32>
    %666 = arith.negf %665 : vector<8x32xf32>
    %667 = math.exp %666 : vector<8x32xf32>
    %cst_206 = arith.constant 1.000000e+00 : f32
    %668 = vector.broadcast %cst_206 : f32 to vector<8x32xf32>
    %669 = arith.addf %668, %667 : vector<8x32xf32>
    %670 = arith.divf %668, %669 : vector<8x32xf32>
    %671 = vector.extract_strided_slice %662 {offsets = [0, 32], sizes = [8, 32], strides = [1, 1]} : vector<8x96xf32> to vector<8x32xf32>
    %672 = vector.extract_strided_slice %661 {offsets = [0, 32], sizes = [8, 32], strides = [1, 1]} : vector<8x96xf32> to vector<8x32xf32>
    %673 = arith.addf %671, %672 : vector<8x32xf32>
    %674 = arith.negf %673 : vector<8x32xf32>
    %675 = math.exp %674 : vector<8x32xf32>
    %cst_207 = arith.constant 1.000000e+00 : f32
    %676 = vector.broadcast %cst_207 : f32 to vector<8x32xf32>
    %677 = arith.addf %676, %675 : vector<8x32xf32>
    %678 = arith.divf %676, %677 : vector<8x32xf32>
    %679 = vector.extract_strided_slice %662 {offsets = [0, 64], sizes = [8, 32], strides = [1, 1]} : vector<8x96xf32> to vector<8x32xf32>
    %680 = vector.extract_strided_slice %661 {offsets = [0, 64], sizes = [8, 32], strides = [1, 1]} : vector<8x96xf32> to vector<8x32xf32>
    %681 = vector.broadcast %527 : vector<1x32xf32> to vector<8x32xf32>
    %682 = arith.addf %680, %681 : vector<8x32xf32>
    %683 = arith.mulf %670, %682 : vector<8x32xf32>
    %684 = arith.addf %679, %683 : vector<8x32xf32>
    %685 = math.tanh %684 : vector<8x32xf32>
    %cst_208 = arith.constant 1.000000e+00 : f32
    %686 = vector.broadcast %cst_208 : f32 to vector<8x32xf32>
    %687 = arith.subf %686, %678 : vector<8x32xf32>
    %688 = arith.mulf %687, %685 : vector<8x32xf32>
    %689 = arith.mulf %678, %630 : vector<8x32xf32>
    %690 = arith.addf %688, %689 : vector<8x32xf32>
    %cst_209 = arith.constant dense<0.000000e+00> : vector<8x96xf32>
    %691 = tpu.matmul %660, %537, %cst_209 {dimension_numbers = #tpu.dot_dimension_numbers<[1], [0], [0], [1], [0, 0, 1, 1], [], []>} : vector<8x32xf32>, vector<32x96xf32>, vector<8x96xf32> -> vector<8x96xf32>
    %c40_210 = arith.constant 40 : index
    %c0_211 = arith.constant 0 : index
    %692 = vector.load %arg21[%c40_210, %c0_211] : memref<64x96xf32, #tpu.memory_space<vmem>>, vector<8x96xf32>
    %693 = vector.extract_strided_slice %692 {offsets = [0, 0], sizes = [8, 32], strides = [1, 1]} : vector<8x96xf32> to vector<8x32xf32>
    %694 = vector.extract_strided_slice %691 {offsets = [0, 0], sizes = [8, 32], strides = [1, 1]} : vector<8x96xf32> to vector<8x32xf32>
    %695 = arith.addf %693, %694 : vector<8x32xf32>
    %696 = arith.negf %695 : vector<8x32xf32>
    %697 = math.exp %696 : vector<8x32xf32>
    %cst_212 = arith.constant 1.000000e+00 : f32
    %698 = vector.broadcast %cst_212 : f32 to vector<8x32xf32>
    %699 = arith.addf %698, %697 : vector<8x32xf32>
    %700 = arith.divf %698, %699 : vector<8x32xf32>
    %701 = vector.extract_strided_slice %692 {offsets = [0, 32], sizes = [8, 32], strides = [1, 1]} : vector<8x96xf32> to vector<8x32xf32>
    %702 = vector.extract_strided_slice %691 {offsets = [0, 32], sizes = [8, 32], strides = [1, 1]} : vector<8x96xf32> to vector<8x32xf32>
    %703 = arith.addf %701, %702 : vector<8x32xf32>
    %704 = arith.negf %703 : vector<8x32xf32>
    %705 = math.exp %704 : vector<8x32xf32>
    %cst_213 = arith.constant 1.000000e+00 : f32
    %706 = vector.broadcast %cst_213 : f32 to vector<8x32xf32>
    %707 = arith.addf %706, %705 : vector<8x32xf32>
    %708 = arith.divf %706, %707 : vector<8x32xf32>
    %709 = vector.extract_strided_slice %692 {offsets = [0, 64], sizes = [8, 32], strides = [1, 1]} : vector<8x96xf32> to vector<8x32xf32>
    %710 = vector.extract_strided_slice %691 {offsets = [0, 64], sizes = [8, 32], strides = [1, 1]} : vector<8x96xf32> to vector<8x32xf32>
    %711 = vector.broadcast %538 : vector<1x32xf32> to vector<8x32xf32>
    %712 = arith.addf %710, %711 : vector<8x32xf32>
    %713 = arith.mulf %700, %712 : vector<8x32xf32>
    %714 = arith.addf %709, %713 : vector<8x32xf32>
    %715 = math.tanh %714 : vector<8x32xf32>
    %cst_214 = arith.constant 1.000000e+00 : f32
    %716 = vector.broadcast %cst_214 : f32 to vector<8x32xf32>
    %717 = arith.subf %716, %708 : vector<8x32xf32>
    %718 = arith.mulf %717, %715 : vector<8x32xf32>
    %719 = arith.mulf %708, %660 : vector<8x32xf32>
    %720 = arith.addf %718, %719 : vector<8x32xf32>
    %cst_215 = arith.constant dense<0.000000e+00> : vector<8x96xf32>
    %721 = tpu.matmul %690, %526, %cst_215 {dimension_numbers = #tpu.dot_dimension_numbers<[1], [0], [0], [1], [0, 0, 1, 1], [], []>} : vector<8x32xf32>, vector<32x96xf32>, vector<8x96xf32> -> vector<8x96xf32>
    %c24_216 = arith.constant 24 : index
    %c0_217 = arith.constant 0 : index
    %722 = vector.load %arg20[%c24_216, %c0_217] : memref<64x96xf32, #tpu.memory_space<vmem>>, vector<8x96xf32>
    %723 = vector.extract_strided_slice %722 {offsets = [0, 0], sizes = [8, 32], strides = [1, 1]} : vector<8x96xf32> to vector<8x32xf32>
    %724 = vector.extract_strided_slice %721 {offsets = [0, 0], sizes = [8, 32], strides = [1, 1]} : vector<8x96xf32> to vector<8x32xf32>
    %725 = arith.addf %723, %724 : vector<8x32xf32>
    %726 = arith.negf %725 : vector<8x32xf32>
    %727 = math.exp %726 : vector<8x32xf32>
    %cst_218 = arith.constant 1.000000e+00 : f32
    %728 = vector.broadcast %cst_218 : f32 to vector<8x32xf32>
    %729 = arith.addf %728, %727 : vector<8x32xf32>
    %730 = arith.divf %728, %729 : vector<8x32xf32>
    %731 = vector.extract_strided_slice %722 {offsets = [0, 32], sizes = [8, 32], strides = [1, 1]} : vector<8x96xf32> to vector<8x32xf32>
    %732 = vector.extract_strided_slice %721 {offsets = [0, 32], sizes = [8, 32], strides = [1, 1]} : vector<8x96xf32> to vector<8x32xf32>
    %733 = arith.addf %731, %732 : vector<8x32xf32>
    %734 = arith.negf %733 : vector<8x32xf32>
    %735 = math.exp %734 : vector<8x32xf32>
    %cst_219 = arith.constant 1.000000e+00 : f32
    %736 = vector.broadcast %cst_219 : f32 to vector<8x32xf32>
    %737 = arith.addf %736, %735 : vector<8x32xf32>
    %738 = arith.divf %736, %737 : vector<8x32xf32>
    %739 = vector.extract_strided_slice %722 {offsets = [0, 64], sizes = [8, 32], strides = [1, 1]} : vector<8x96xf32> to vector<8x32xf32>
    %740 = vector.extract_strided_slice %721 {offsets = [0, 64], sizes = [8, 32], strides = [1, 1]} : vector<8x96xf32> to vector<8x32xf32>
    %741 = vector.broadcast %527 : vector<1x32xf32> to vector<8x32xf32>
    %742 = arith.addf %740, %741 : vector<8x32xf32>
    %743 = arith.mulf %730, %742 : vector<8x32xf32>
    %744 = arith.addf %739, %743 : vector<8x32xf32>
    %745 = math.tanh %744 : vector<8x32xf32>
    %cst_220 = arith.constant 1.000000e+00 : f32
    %746 = vector.broadcast %cst_220 : f32 to vector<8x32xf32>
    %747 = arith.subf %746, %738 : vector<8x32xf32>
    %748 = arith.mulf %747, %745 : vector<8x32xf32>
    %749 = arith.mulf %738, %690 : vector<8x32xf32>
    %750 = arith.addf %748, %749 : vector<8x32xf32>
    %cst_221 = arith.constant dense<0.000000e+00> : vector<8x96xf32>
    %751 = tpu.matmul %720, %537, %cst_221 {dimension_numbers = #tpu.dot_dimension_numbers<[1], [0], [0], [1], [0, 0, 1, 1], [], []>} : vector<8x32xf32>, vector<32x96xf32>, vector<8x96xf32> -> vector<8x96xf32>
    %c32_222 = arith.constant 32 : index
    %c0_223 = arith.constant 0 : index
    %752 = vector.load %arg21[%c32_222, %c0_223] : memref<64x96xf32, #tpu.memory_space<vmem>>, vector<8x96xf32>
    %753 = vector.extract_strided_slice %752 {offsets = [0, 0], sizes = [8, 32], strides = [1, 1]} : vector<8x96xf32> to vector<8x32xf32>
    %754 = vector.extract_strided_slice %751 {offsets = [0, 0], sizes = [8, 32], strides = [1, 1]} : vector<8x96xf32> to vector<8x32xf32>
    %755 = arith.addf %753, %754 : vector<8x32xf32>
    %756 = arith.negf %755 : vector<8x32xf32>
    %757 = math.exp %756 : vector<8x32xf32>
    %cst_224 = arith.constant 1.000000e+00 : f32
    %758 = vector.broadcast %cst_224 : f32 to vector<8x32xf32>
    %759 = arith.addf %758, %757 : vector<8x32xf32>
    %760 = arith.divf %758, %759 : vector<8x32xf32>
    %761 = vector.extract_strided_slice %752 {offsets = [0, 32], sizes = [8, 32], strides = [1, 1]} : vector<8x96xf32> to vector<8x32xf32>
    %762 = vector.extract_strided_slice %751 {offsets = [0, 32], sizes = [8, 32], strides = [1, 1]} : vector<8x96xf32> to vector<8x32xf32>
    %763 = arith.addf %761, %762 : vector<8x32xf32>
    %764 = arith.negf %763 : vector<8x32xf32>
    %765 = math.exp %764 : vector<8x32xf32>
    %cst_225 = arith.constant 1.000000e+00 : f32
    %766 = vector.broadcast %cst_225 : f32 to vector<8x32xf32>
    %767 = arith.addf %766, %765 : vector<8x32xf32>
    %768 = arith.divf %766, %767 : vector<8x32xf32>
    %769 = vector.extract_strided_slice %752 {offsets = [0, 64], sizes = [8, 32], strides = [1, 1]} : vector<8x96xf32> to vector<8x32xf32>
    %770 = vector.extract_strided_slice %751 {offsets = [0, 64], sizes = [8, 32], strides = [1, 1]} : vector<8x96xf32> to vector<8x32xf32>
    %771 = vector.broadcast %538 : vector<1x32xf32> to vector<8x32xf32>
    %772 = arith.addf %770, %771 : vector<8x32xf32>
    %773 = arith.mulf %760, %772 : vector<8x32xf32>
    %774 = arith.addf %769, %773 : vector<8x32xf32>
    %775 = math.tanh %774 : vector<8x32xf32>
    %cst_226 = arith.constant 1.000000e+00 : f32
    %776 = vector.broadcast %cst_226 : f32 to vector<8x32xf32>
    %777 = arith.subf %776, %768 : vector<8x32xf32>
    %778 = arith.mulf %777, %775 : vector<8x32xf32>
    %779 = arith.mulf %768, %720 : vector<8x32xf32>
    %780 = arith.addf %778, %779 : vector<8x32xf32>
    %cst_227 = arith.constant dense<0.000000e+00> : vector<8x96xf32>
    %781 = tpu.matmul %750, %526, %cst_227 {dimension_numbers = #tpu.dot_dimension_numbers<[1], [0], [0], [1], [0, 0, 1, 1], [], []>} : vector<8x32xf32>, vector<32x96xf32>, vector<8x96xf32> -> vector<8x96xf32>
    %c32_228 = arith.constant 32 : index
    %c0_229 = arith.constant 0 : index
    %782 = vector.load %arg20[%c32_228, %c0_229] : memref<64x96xf32, #tpu.memory_space<vmem>>, vector<8x96xf32>
    %783 = vector.extract_strided_slice %782 {offsets = [0, 0], sizes = [8, 32], strides = [1, 1]} : vector<8x96xf32> to vector<8x32xf32>
    %784 = vector.extract_strided_slice %781 {offsets = [0, 0], sizes = [8, 32], strides = [1, 1]} : vector<8x96xf32> to vector<8x32xf32>
    %785 = arith.addf %783, %784 : vector<8x32xf32>
    %786 = arith.negf %785 : vector<8x32xf32>
    %787 = math.exp %786 : vector<8x32xf32>
    %cst_230 = arith.constant 1.000000e+00 : f32
    %788 = vector.broadcast %cst_230 : f32 to vector<8x32xf32>
    %789 = arith.addf %788, %787 : vector<8x32xf32>
    %790 = arith.divf %788, %789 : vector<8x32xf32>
    %791 = vector.extract_strided_slice %782 {offsets = [0, 32], sizes = [8, 32], strides = [1, 1]} : vector<8x96xf32> to vector<8x32xf32>
    %792 = vector.extract_strided_slice %781 {offsets = [0, 32], sizes = [8, 32], strides = [1, 1]} : vector<8x96xf32> to vector<8x32xf32>
    %793 = arith.addf %791, %792 : vector<8x32xf32>
    %794 = arith.negf %793 : vector<8x32xf32>
    %795 = math.exp %794 : vector<8x32xf32>
    %cst_231 = arith.constant 1.000000e+00 : f32
    %796 = vector.broadcast %cst_231 : f32 to vector<8x32xf32>
    %797 = arith.addf %796, %795 : vector<8x32xf32>
    %798 = arith.divf %796, %797 : vector<8x32xf32>
    %799 = vector.extract_strided_slice %782 {offsets = [0, 64], sizes = [8, 32], strides = [1, 1]} : vector<8x96xf32> to vector<8x32xf32>
    %800 = vector.extract_strided_slice %781 {offsets = [0, 64], sizes = [8, 32], strides = [1, 1]} : vector<8x96xf32> to vector<8x32xf32>
    %801 = vector.broadcast %527 : vector<1x32xf32> to vector<8x32xf32>
    %802 = arith.addf %800, %801 : vector<8x32xf32>
    %803 = arith.mulf %790, %802 : vector<8x32xf32>
    %804 = arith.addf %799, %803 : vector<8x32xf32>
    %805 = math.tanh %804 : vector<8x32xf32>
    %cst_232 = arith.constant 1.000000e+00 : f32
    %806 = vector.broadcast %cst_232 : f32 to vector<8x32xf32>
    %807 = arith.subf %806, %798 : vector<8x32xf32>
    %808 = arith.mulf %807, %805 : vector<8x32xf32>
    %809 = arith.mulf %798, %750 : vector<8x32xf32>
    %810 = arith.addf %808, %809 : vector<8x32xf32>
    %cst_233 = arith.constant dense<0.000000e+00> : vector<8x96xf32>
    %811 = tpu.matmul %780, %537, %cst_233 {dimension_numbers = #tpu.dot_dimension_numbers<[1], [0], [0], [1], [0, 0, 1, 1], [], []>} : vector<8x32xf32>, vector<32x96xf32>, vector<8x96xf32> -> vector<8x96xf32>
    %c24_234 = arith.constant 24 : index
    %c0_235 = arith.constant 0 : index
    %812 = vector.load %arg21[%c24_234, %c0_235] : memref<64x96xf32, #tpu.memory_space<vmem>>, vector<8x96xf32>
    %813 = vector.extract_strided_slice %812 {offsets = [0, 0], sizes = [8, 32], strides = [1, 1]} : vector<8x96xf32> to vector<8x32xf32>
    %814 = vector.extract_strided_slice %811 {offsets = [0, 0], sizes = [8, 32], strides = [1, 1]} : vector<8x96xf32> to vector<8x32xf32>
    %815 = arith.addf %813, %814 : vector<8x32xf32>
    %816 = arith.negf %815 : vector<8x32xf32>
    %817 = math.exp %816 : vector<8x32xf32>
    %cst_236 = arith.constant 1.000000e+00 : f32
    %818 = vector.broadcast %cst_236 : f32 to vector<8x32xf32>
    %819 = arith.addf %818, %817 : vector<8x32xf32>
    %820 = arith.divf %818, %819 : vector<8x32xf32>
    %821 = vector.extract_strided_slice %812 {offsets = [0, 32], sizes = [8, 32], strides = [1, 1]} : vector<8x96xf32> to vector<8x32xf32>
    %822 = vector.extract_strided_slice %811 {offsets = [0, 32], sizes = [8, 32], strides = [1, 1]} : vector<8x96xf32> to vector<8x32xf32>
    %823 = arith.addf %821, %822 : vector<8x32xf32>
    %824 = arith.negf %823 : vector<8x32xf32>
    %825 = math.exp %824 : vector<8x32xf32>
    %cst_237 = arith.constant 1.000000e+00 : f32
    %826 = vector.broadcast %cst_237 : f32 to vector<8x32xf32>
    %827 = arith.addf %826, %825 : vector<8x32xf32>
    %828 = arith.divf %826, %827 : vector<8x32xf32>
    %829 = vector.extract_strided_slice %812 {offsets = [0, 64], sizes = [8, 32], strides = [1, 1]} : vector<8x96xf32> to vector<8x32xf32>
    %830 = vector.extract_strided_slice %811 {offsets = [0, 64], sizes = [8, 32], strides = [1, 1]} : vector<8x96xf32> to vector<8x32xf32>
    %831 = vector.broadcast %538 : vector<1x32xf32> to vector<8x32xf32>
    %832 = arith.addf %830, %831 : vector<8x32xf32>
    %833 = arith.mulf %820, %832 : vector<8x32xf32>
    %834 = arith.addf %829, %833 : vector<8x32xf32>
    %835 = math.tanh %834 : vector<8x32xf32>
    %cst_238 = arith.constant 1.000000e+00 : f32
    %836 = vector.broadcast %cst_238 : f32 to vector<8x32xf32>
    %837 = arith.subf %836, %828 : vector<8x32xf32>
    %838 = arith.mulf %837, %835 : vector<8x32xf32>
    %839 = arith.mulf %828, %780 : vector<8x32xf32>
    %840 = arith.addf %838, %839 : vector<8x32xf32>
    %cst_239 = arith.constant dense<0.000000e+00> : vector<8x96xf32>
    %841 = tpu.matmul %810, %526, %cst_239 {dimension_numbers = #tpu.dot_dimension_numbers<[1], [0], [0], [1], [0, 0, 1, 1], [], []>} : vector<8x32xf32>, vector<32x96xf32>, vector<8x96xf32> -> vector<8x96xf32>
    %c40_240 = arith.constant 40 : index
    %c0_241 = arith.constant 0 : index
    %842 = vector.load %arg20[%c40_240, %c0_241] : memref<64x96xf32, #tpu.memory_space<vmem>>, vector<8x96xf32>
    %843 = vector.extract_strided_slice %842 {offsets = [0, 0], sizes = [8, 32], strides = [1, 1]} : vector<8x96xf32> to vector<8x32xf32>
    %844 = vector.extract_strided_slice %841 {offsets = [0, 0], sizes = [8, 32], strides = [1, 1]} : vector<8x96xf32> to vector<8x32xf32>
    %845 = arith.addf %843, %844 : vector<8x32xf32>
    %846 = arith.negf %845 : vector<8x32xf32>
    %847 = math.exp %846 : vector<8x32xf32>
    %cst_242 = arith.constant 1.000000e+00 : f32
    %848 = vector.broadcast %cst_242 : f32 to vector<8x32xf32>
    %849 = arith.addf %848, %847 : vector<8x32xf32>
    %850 = arith.divf %848, %849 : vector<8x32xf32>
    %851 = vector.extract_strided_slice %842 {offsets = [0, 32], sizes = [8, 32], strides = [1, 1]} : vector<8x96xf32> to vector<8x32xf32>
    %852 = vector.extract_strided_slice %841 {offsets = [0, 32], sizes = [8, 32], strides = [1, 1]} : vector<8x96xf32> to vector<8x32xf32>
    %853 = arith.addf %851, %852 : vector<8x32xf32>
    %854 = arith.negf %853 : vector<8x32xf32>
    %855 = math.exp %854 : vector<8x32xf32>
    %cst_243 = arith.constant 1.000000e+00 : f32
    %856 = vector.broadcast %cst_243 : f32 to vector<8x32xf32>
    %857 = arith.addf %856, %855 : vector<8x32xf32>
    %858 = arith.divf %856, %857 : vector<8x32xf32>
    %859 = vector.extract_strided_slice %842 {offsets = [0, 64], sizes = [8, 32], strides = [1, 1]} : vector<8x96xf32> to vector<8x32xf32>
    %860 = vector.extract_strided_slice %841 {offsets = [0, 64], sizes = [8, 32], strides = [1, 1]} : vector<8x96xf32> to vector<8x32xf32>
    %861 = vector.broadcast %527 : vector<1x32xf32> to vector<8x32xf32>
    %862 = arith.addf %860, %861 : vector<8x32xf32>
    %863 = arith.mulf %850, %862 : vector<8x32xf32>
    %864 = arith.addf %859, %863 : vector<8x32xf32>
    %865 = math.tanh %864 : vector<8x32xf32>
    %cst_244 = arith.constant 1.000000e+00 : f32
    %866 = vector.broadcast %cst_244 : f32 to vector<8x32xf32>
    %867 = arith.subf %866, %858 : vector<8x32xf32>
    %868 = arith.mulf %867, %865 : vector<8x32xf32>
    %869 = arith.mulf %858, %810 : vector<8x32xf32>
    %870 = arith.addf %868, %869 : vector<8x32xf32>
    %cst_245 = arith.constant dense<0.000000e+00> : vector<8x96xf32>
    %871 = tpu.matmul %840, %537, %cst_245 {dimension_numbers = #tpu.dot_dimension_numbers<[1], [0], [0], [1], [0, 0, 1, 1], [], []>} : vector<8x32xf32>, vector<32x96xf32>, vector<8x96xf32> -> vector<8x96xf32>
    %c16_246 = arith.constant 16 : index
    %c0_247 = arith.constant 0 : index
    %872 = vector.load %arg21[%c16_246, %c0_247] : memref<64x96xf32, #tpu.memory_space<vmem>>, vector<8x96xf32>
    %873 = vector.extract_strided_slice %872 {offsets = [0, 0], sizes = [8, 32], strides = [1, 1]} : vector<8x96xf32> to vector<8x32xf32>
    %874 = vector.extract_strided_slice %871 {offsets = [0, 0], sizes = [8, 32], strides = [1, 1]} : vector<8x96xf32> to vector<8x32xf32>
    %875 = arith.addf %873, %874 : vector<8x32xf32>
    %876 = arith.negf %875 : vector<8x32xf32>
    %877 = math.exp %876 : vector<8x32xf32>
    %cst_248 = arith.constant 1.000000e+00 : f32
    %878 = vector.broadcast %cst_248 : f32 to vector<8x32xf32>
    %879 = arith.addf %878, %877 : vector<8x32xf32>
    %880 = arith.divf %878, %879 : vector<8x32xf32>
    %881 = vector.extract_strided_slice %872 {offsets = [0, 32], sizes = [8, 32], strides = [1, 1]} : vector<8x96xf32> to vector<8x32xf32>
    %882 = vector.extract_strided_slice %871 {offsets = [0, 32], sizes = [8, 32], strides = [1, 1]} : vector<8x96xf32> to vector<8x32xf32>
    %883 = arith.addf %881, %882 : vector<8x32xf32>
    %884 = arith.negf %883 : vector<8x32xf32>
    %885 = math.exp %884 : vector<8x32xf32>
    %cst_249 = arith.constant 1.000000e+00 : f32
    %886 = vector.broadcast %cst_249 : f32 to vector<8x32xf32>
    %887 = arith.addf %886, %885 : vector<8x32xf32>
    %888 = arith.divf %886, %887 : vector<8x32xf32>
    %889 = vector.extract_strided_slice %872 {offsets = [0, 64], sizes = [8, 32], strides = [1, 1]} : vector<8x96xf32> to vector<8x32xf32>
    %890 = vector.extract_strided_slice %871 {offsets = [0, 64], sizes = [8, 32], strides = [1, 1]} : vector<8x96xf32> to vector<8x32xf32>
    %891 = vector.broadcast %538 : vector<1x32xf32> to vector<8x32xf32>
    %892 = arith.addf %890, %891 : vector<8x32xf32>
    %893 = arith.mulf %880, %892 : vector<8x32xf32>
    %894 = arith.addf %889, %893 : vector<8x32xf32>
    %895 = math.tanh %894 : vector<8x32xf32>
    %cst_250 = arith.constant 1.000000e+00 : f32
    %896 = vector.broadcast %cst_250 : f32 to vector<8x32xf32>
    %897 = arith.subf %896, %888 : vector<8x32xf32>
    %898 = arith.mulf %897, %895 : vector<8x32xf32>
    %899 = arith.mulf %888, %840 : vector<8x32xf32>
    %900 = arith.addf %898, %899 : vector<8x32xf32>
    %cst_251 = arith.constant dense<0.000000e+00> : vector<8x96xf32>
    %901 = tpu.matmul %870, %526, %cst_251 {dimension_numbers = #tpu.dot_dimension_numbers<[1], [0], [0], [1], [0, 0, 1, 1], [], []>} : vector<8x32xf32>, vector<32x96xf32>, vector<8x96xf32> -> vector<8x96xf32>
    %c48_252 = arith.constant 48 : index
    %c0_253 = arith.constant 0 : index
    %902 = vector.load %arg20[%c48_252, %c0_253] : memref<64x96xf32, #tpu.memory_space<vmem>>, vector<8x96xf32>
    %903 = vector.extract_strided_slice %902 {offsets = [0, 0], sizes = [8, 32], strides = [1, 1]} : vector<8x96xf32> to vector<8x32xf32>
    %904 = vector.extract_strided_slice %901 {offsets = [0, 0], sizes = [8, 32], strides = [1, 1]} : vector<8x96xf32> to vector<8x32xf32>
    %905 = arith.addf %903, %904 : vector<8x32xf32>
    %906 = arith.negf %905 : vector<8x32xf32>
    %907 = math.exp %906 : vector<8x32xf32>
    %cst_254 = arith.constant 1.000000e+00 : f32
    %908 = vector.broadcast %cst_254 : f32 to vector<8x32xf32>
    %909 = arith.addf %908, %907 : vector<8x32xf32>
    %910 = arith.divf %908, %909 : vector<8x32xf32>
    %911 = vector.extract_strided_slice %902 {offsets = [0, 32], sizes = [8, 32], strides = [1, 1]} : vector<8x96xf32> to vector<8x32xf32>
    %912 = vector.extract_strided_slice %901 {offsets = [0, 32], sizes = [8, 32], strides = [1, 1]} : vector<8x96xf32> to vector<8x32xf32>
    %913 = arith.addf %911, %912 : vector<8x32xf32>
    %914 = arith.negf %913 : vector<8x32xf32>
    %915 = math.exp %914 : vector<8x32xf32>
    %cst_255 = arith.constant 1.000000e+00 : f32
    %916 = vector.broadcast %cst_255 : f32 to vector<8x32xf32>
    %917 = arith.addf %916, %915 : vector<8x32xf32>
    %918 = arith.divf %916, %917 : vector<8x32xf32>
    %919 = vector.extract_strided_slice %902 {offsets = [0, 64], sizes = [8, 32], strides = [1, 1]} : vector<8x96xf32> to vector<8x32xf32>
    %920 = vector.extract_strided_slice %901 {offsets = [0, 64], sizes = [8, 32], strides = [1, 1]} : vector<8x96xf32> to vector<8x32xf32>
    %921 = vector.broadcast %527 : vector<1x32xf32> to vector<8x32xf32>
    %922 = arith.addf %920, %921 : vector<8x32xf32>
    %923 = arith.mulf %910, %922 : vector<8x32xf32>
    %924 = arith.addf %919, %923 : vector<8x32xf32>
    %925 = math.tanh %924 : vector<8x32xf32>
    %cst_256 = arith.constant 1.000000e+00 : f32
    %926 = vector.broadcast %cst_256 : f32 to vector<8x32xf32>
    %927 = arith.subf %926, %918 : vector<8x32xf32>
    %928 = arith.mulf %927, %925 : vector<8x32xf32>
    %929 = arith.mulf %918, %870 : vector<8x32xf32>
    %930 = arith.addf %928, %929 : vector<8x32xf32>
    %cst_257 = arith.constant dense<0.000000e+00> : vector<8x96xf32>
    %931 = tpu.matmul %900, %537, %cst_257 {dimension_numbers = #tpu.dot_dimension_numbers<[1], [0], [0], [1], [0, 0, 1, 1], [], []>} : vector<8x32xf32>, vector<32x96xf32>, vector<8x96xf32> -> vector<8x96xf32>
    %c8_258 = arith.constant 8 : index
    %c0_259 = arith.constant 0 : index
    %932 = vector.load %arg21[%c8_258, %c0_259] : memref<64x96xf32, #tpu.memory_space<vmem>>, vector<8x96xf32>
    %933 = vector.extract_strided_slice %932 {offsets = [0, 0], sizes = [8, 32], strides = [1, 1]} : vector<8x96xf32> to vector<8x32xf32>
    %934 = vector.extract_strided_slice %931 {offsets = [0, 0], sizes = [8, 32], strides = [1, 1]} : vector<8x96xf32> to vector<8x32xf32>
    %935 = arith.addf %933, %934 : vector<8x32xf32>
    %936 = arith.negf %935 : vector<8x32xf32>
    %937 = math.exp %936 : vector<8x32xf32>
    %cst_260 = arith.constant 1.000000e+00 : f32
    %938 = vector.broadcast %cst_260 : f32 to vector<8x32xf32>
    %939 = arith.addf %938, %937 : vector<8x32xf32>
    %940 = arith.divf %938, %939 : vector<8x32xf32>
    %941 = vector.extract_strided_slice %932 {offsets = [0, 32], sizes = [8, 32], strides = [1, 1]} : vector<8x96xf32> to vector<8x32xf32>
    %942 = vector.extract_strided_slice %931 {offsets = [0, 32], sizes = [8, 32], strides = [1, 1]} : vector<8x96xf32> to vector<8x32xf32>
    %943 = arith.addf %941, %942 : vector<8x32xf32>
    %944 = arith.negf %943 : vector<8x32xf32>
    %945 = math.exp %944 : vector<8x32xf32>
    %cst_261 = arith.constant 1.000000e+00 : f32
    %946 = vector.broadcast %cst_261 : f32 to vector<8x32xf32>
    %947 = arith.addf %946, %945 : vector<8x32xf32>
    %948 = arith.divf %946, %947 : vector<8x32xf32>
    %949 = vector.extract_strided_slice %932 {offsets = [0, 64], sizes = [8, 32], strides = [1, 1]} : vector<8x96xf32> to vector<8x32xf32>
    %950 = vector.extract_strided_slice %931 {offsets = [0, 64], sizes = [8, 32], strides = [1, 1]} : vector<8x96xf32> to vector<8x32xf32>
    %951 = vector.broadcast %538 : vector<1x32xf32> to vector<8x32xf32>
    %952 = arith.addf %950, %951 : vector<8x32xf32>
    %953 = arith.mulf %940, %952 : vector<8x32xf32>
    %954 = arith.addf %949, %953 : vector<8x32xf32>
    %955 = math.tanh %954 : vector<8x32xf32>
    %cst_262 = arith.constant 1.000000e+00 : f32
    %956 = vector.broadcast %cst_262 : f32 to vector<8x32xf32>
    %957 = arith.subf %956, %948 : vector<8x32xf32>
    %958 = arith.mulf %957, %955 : vector<8x32xf32>
    %959 = arith.mulf %948, %900 : vector<8x32xf32>
    %960 = arith.addf %958, %959 : vector<8x32xf32>
    %cst_263 = arith.constant dense<0.000000e+00> : vector<8x96xf32>
    %961 = tpu.matmul %930, %526, %cst_263 {dimension_numbers = #tpu.dot_dimension_numbers<[1], [0], [0], [1], [0, 0, 1, 1], [], []>} : vector<8x32xf32>, vector<32x96xf32>, vector<8x96xf32> -> vector<8x96xf32>
    %c56_264 = arith.constant 56 : index
    %c0_265 = arith.constant 0 : index
    %962 = vector.load %arg20[%c56_264, %c0_265] : memref<64x96xf32, #tpu.memory_space<vmem>>, vector<8x96xf32>
    %963 = vector.extract_strided_slice %962 {offsets = [0, 0], sizes = [8, 32], strides = [1, 1]} : vector<8x96xf32> to vector<8x32xf32>
    %964 = vector.extract_strided_slice %961 {offsets = [0, 0], sizes = [8, 32], strides = [1, 1]} : vector<8x96xf32> to vector<8x32xf32>
    %965 = arith.addf %963, %964 : vector<8x32xf32>
    %966 = arith.negf %965 : vector<8x32xf32>
    %967 = math.exp %966 : vector<8x32xf32>
    %cst_266 = arith.constant 1.000000e+00 : f32
    %968 = vector.broadcast %cst_266 : f32 to vector<8x32xf32>
    %969 = arith.addf %968, %967 : vector<8x32xf32>
    %970 = arith.divf %968, %969 : vector<8x32xf32>
    %971 = vector.extract_strided_slice %962 {offsets = [0, 32], sizes = [8, 32], strides = [1, 1]} : vector<8x96xf32> to vector<8x32xf32>
    %972 = vector.extract_strided_slice %961 {offsets = [0, 32], sizes = [8, 32], strides = [1, 1]} : vector<8x96xf32> to vector<8x32xf32>
    %973 = arith.addf %971, %972 : vector<8x32xf32>
    %974 = arith.negf %973 : vector<8x32xf32>
    %975 = math.exp %974 : vector<8x32xf32>
    %cst_267 = arith.constant 1.000000e+00 : f32
    %976 = vector.broadcast %cst_267 : f32 to vector<8x32xf32>
    %977 = arith.addf %976, %975 : vector<8x32xf32>
    %978 = arith.divf %976, %977 : vector<8x32xf32>
    %979 = vector.extract_strided_slice %962 {offsets = [0, 64], sizes = [8, 32], strides = [1, 1]} : vector<8x96xf32> to vector<8x32xf32>
    %980 = vector.extract_strided_slice %961 {offsets = [0, 64], sizes = [8, 32], strides = [1, 1]} : vector<8x96xf32> to vector<8x32xf32>
    %981 = vector.broadcast %527 : vector<1x32xf32> to vector<8x32xf32>
    %982 = arith.addf %980, %981 : vector<8x32xf32>
    %983 = arith.mulf %970, %982 : vector<8x32xf32>
    %984 = arith.addf %979, %983 : vector<8x32xf32>
    %985 = math.tanh %984 : vector<8x32xf32>
    %cst_268 = arith.constant 1.000000e+00 : f32
    %986 = vector.broadcast %cst_268 : f32 to vector<8x32xf32>
    %987 = arith.subf %986, %978 : vector<8x32xf32>
    %988 = arith.mulf %987, %985 : vector<8x32xf32>
    %989 = arith.mulf %978, %930 : vector<8x32xf32>
    %990 = arith.addf %988, %989 : vector<8x32xf32>
    %cst_269 = arith.constant dense<0.000000e+00> : vector<8x96xf32>
    %991 = tpu.matmul %960, %537, %cst_269 {dimension_numbers = #tpu.dot_dimension_numbers<[1], [0], [0], [1], [0, 0, 1, 1], [], []>} : vector<8x32xf32>, vector<32x96xf32>, vector<8x96xf32> -> vector<8x96xf32>
    %c0_270 = arith.constant 0 : index
    %c0_271 = arith.constant 0 : index
    %992 = vector.load %arg21[%c0_270, %c0_271] : memref<64x96xf32, #tpu.memory_space<vmem>>, vector<8x96xf32>
    %993 = vector.extract_strided_slice %992 {offsets = [0, 0], sizes = [8, 32], strides = [1, 1]} : vector<8x96xf32> to vector<8x32xf32>
    %994 = vector.extract_strided_slice %991 {offsets = [0, 0], sizes = [8, 32], strides = [1, 1]} : vector<8x96xf32> to vector<8x32xf32>
    %995 = arith.addf %993, %994 : vector<8x32xf32>
    %996 = arith.negf %995 : vector<8x32xf32>
    %997 = math.exp %996 : vector<8x32xf32>
    %cst_272 = arith.constant 1.000000e+00 : f32
    %998 = vector.broadcast %cst_272 : f32 to vector<8x32xf32>
    %999 = arith.addf %998, %997 : vector<8x32xf32>
    %1000 = arith.divf %998, %999 : vector<8x32xf32>
    %1001 = vector.extract_strided_slice %992 {offsets = [0, 32], sizes = [8, 32], strides = [1, 1]} : vector<8x96xf32> to vector<8x32xf32>
    %1002 = vector.extract_strided_slice %991 {offsets = [0, 32], sizes = [8, 32], strides = [1, 1]} : vector<8x96xf32> to vector<8x32xf32>
    %1003 = arith.addf %1001, %1002 : vector<8x32xf32>
    %1004 = arith.negf %1003 : vector<8x32xf32>
    %1005 = math.exp %1004 : vector<8x32xf32>
    %cst_273 = arith.constant 1.000000e+00 : f32
    %1006 = vector.broadcast %cst_273 : f32 to vector<8x32xf32>
    %1007 = arith.addf %1006, %1005 : vector<8x32xf32>
    %1008 = arith.divf %1006, %1007 : vector<8x32xf32>
    %1009 = vector.extract_strided_slice %992 {offsets = [0, 64], sizes = [8, 32], strides = [1, 1]} : vector<8x96xf32> to vector<8x32xf32>
    %1010 = vector.extract_strided_slice %991 {offsets = [0, 64], sizes = [8, 32], strides = [1, 1]} : vector<8x96xf32> to vector<8x32xf32>
    %1011 = vector.broadcast %538 : vector<1x32xf32> to vector<8x32xf32>
    %1012 = arith.addf %1010, %1011 : vector<8x32xf32>
    %1013 = arith.mulf %1000, %1012 : vector<8x32xf32>
    %1014 = arith.addf %1009, %1013 : vector<8x32xf32>
    %1015 = math.tanh %1014 : vector<8x32xf32>
    %cst_274 = arith.constant 1.000000e+00 : f32
    %1016 = vector.broadcast %cst_274 : f32 to vector<8x32xf32>
    %1017 = arith.subf %1016, %1008 : vector<8x32xf32>
    %1018 = arith.mulf %1017, %1015 : vector<8x32xf32>
    %1019 = arith.mulf %1008, %960 : vector<8x32xf32>
    %1020 = arith.addf %1018, %1019 : vector<8x32xf32>
    %c0_275 = arith.constant 0 : index
    %c0_276 = arith.constant 0 : index
    %1021 = vector.load %arg18[%c0_275, %c0_276] : memref<1x4xf32, #tpu.memory_space<vmem>>, vector<1x4xf32>
    %c0_277 = arith.constant 0 : index
    %c0_278 = arith.constant 0 : index
    %1022 = vector.load %arg17[%c0_277, %c0_278] : memref<128x4xf32, #tpu.memory_space<vmem>>, vector<32x4xf32>
    %cst_279 = arith.constant dense<0.000000e+00> : vector<8x4xf32>
    %1023 = tpu.matmul %482, %1022, %cst_279 {dimension_numbers = #tpu.dot_dimension_numbers<[1], [0], [0], [1], [0, 0, 1, 1], [], []>} : vector<8x32xf32>, vector<32x4xf32>, vector<8x4xf32> -> vector<8x4xf32>
    %1024 = vector.broadcast %1021 : vector<1x4xf32> to vector<8x4xf32>
    %1025 = arith.addf %1024, %1023 : vector<8x4xf32>
    %c32_280 = arith.constant 32 : index
    %c0_281 = arith.constant 0 : index
    %1026 = vector.load %arg17[%c32_280, %c0_281] : memref<128x4xf32, #tpu.memory_space<vmem>>, vector<32x4xf32>
    %cst_282 = arith.constant dense<0.000000e+00> : vector<8x4xf32>
    %1027 = tpu.matmul %513, %1026, %cst_282 {dimension_numbers = #tpu.dot_dimension_numbers<[1], [0], [0], [1], [0, 0, 1, 1], [], []>} : vector<8x32xf32>, vector<32x4xf32>, vector<8x4xf32> -> vector<8x4xf32>
    %1028 = arith.addf %1025, %1027 : vector<8x4xf32>
    %c64 = arith.constant 64 : index
    %c0_283 = arith.constant 0 : index
    %1029 = vector.load %arg17[%c64, %c0_283] : memref<128x4xf32, #tpu.memory_space<vmem>>, vector<32x4xf32>
    %cst_284 = arith.constant dense<0.000000e+00> : vector<8x4xf32>
    %1030 = tpu.matmul %990, %1029, %cst_284 {dimension_numbers = #tpu.dot_dimension_numbers<[1], [0], [0], [1], [0, 0, 1, 1], [], []>} : vector<8x32xf32>, vector<32x4xf32>, vector<8x4xf32> -> vector<8x4xf32>
    %1031 = arith.addf %1028, %1030 : vector<8x4xf32>
    %c96 = arith.constant 96 : index
    %c0_285 = arith.constant 0 : index
    %1032 = vector.load %arg17[%c96, %c0_285] : memref<128x4xf32, #tpu.memory_space<vmem>>, vector<32x4xf32>
    %cst_286 = arith.constant dense<0.000000e+00> : vector<8x4xf32>
    %1033 = tpu.matmul %1020, %1032, %cst_286 {dimension_numbers = #tpu.dot_dimension_numbers<[1], [0], [0], [1], [0, 0, 1, 1], [], []>} : vector<8x32xf32>, vector<32x4xf32>, vector<8x4xf32> -> vector<8x4xf32>
    %1034 = arith.addf %1031, %1033 : vector<8x4xf32>
    %c0_287 = arith.constant 0 : index
    %c0_288 = arith.constant 0 : index
    %1035 = vector.load %arg19[%c0_287, %c0_288] : memref<8x4xf32, #tpu.memory_space<vmem>>, vector<8x4xf32>
    tpu.vector_store %arg19[%c0_287, %c0_288], %1034 {strides = array<i32>} : memref<8x4xf32, #tpu.memory_space<vmem>>, vector<8x4xf32>,
    return
  }
}

</mosaic_0001>

<bundles_post_ra>
// kernel: model_forward.1
= control target key start
LH: loop header
LB: loop body
LE: loop exit
PB: predicated region body
PF: predicated region fallthrough
CT: control target
= control target key end

     0   :  { %v6007_v0 = vmov 0.0|0.0   ;;  %vm6008_vm0 = vmmov 0   ;;  %v6009_v4 = vmov 0.0   ;;  %vm75_vm1 = vcmask 261120   ;;  %s6954_s1 = inlined_call_operand.vmem [shape: f32[32,96], index: 1, kind: input, shape index: {}]   ;;  %s6955_s2 = inlined_call_operand.vmem [shape: f32[32,96], index: 2, kind: input, shape index: {}]   ;;  %s6956_s0 = inlined_call_operand.vmem [shape: f32[64,32], index: 0, kind: input, shape index: {}]   ;;  %s6957_s5 = inlined_call_operand.vmem [shape: f32[32,96], index: 5, kind: input, shape index: {}]   ;;  %s6958_s4 = inlined_call_operand.vmem [shape: f32[1,32], index: 4, kind: input, shape index: {}]   ;;  %s6959_s8 = inlined_call_operand.vmem [shape: f32[1,32], index: 8, kind: input, shape index: {}]   ;;  %s6960_s6 = inlined_call_operand.vmem [shape: f32[32,96], index: 6, kind: input, shape index: {}]   ;;  %s6961_s3 = inlined_call_operand.vmem [shape: f32[1,96], index: 3, kind: input, shape index: {}]   ;;  %s6962_s7 = inlined_call_operand.vmem [shape: f32[1,96], index: 7, kind: input, shape index: {}]   ;;  %s6963_s9 = inlined_call_operand.vmem [shape: f32[64,96], index: 9, kind: input, shape index: {}]   ;;  %s6964_s13 = inlined_call_operand.vmem [shape: f32[64,96], index: 13, kind: input, shape index: {}]   ;;  %s6965_s16 = inlined_call_operand.vmem [shape: f32[1,32], index: 16, kind: input, shape index: {}]   ;;  %s6966_s12 = inlined_call_operand.vmem [shape: f32[1,32], index: 12, kind: input, shape index: {}]   ;;  %s6967_s10 = inlined_call_operand.vmem [shape: f32[32,96], index: 10, kind: input, shape index: {}]   ;;  %s6968_s14 = inlined_call_operand.vmem [shape: f32[32,96], index: 14, kind: input, shape index: {}]   ;;  %s6969_s11 = inlined_call_operand.vmem [shape: f32[1,96], index: 11, kind: input, shape index: {}]   ;;  %s6970_s15 = inlined_call_operand.vmem [shape: f32[1,96], index: 15, kind: input, shape index: {}]   ;;  %s6971_s17 = inlined_call_operand.vmem [shape: f32[128,4], index: 17, kind: input, shape index: {}]   ;;  %s6972_s18 = inlined_call_operand.vmem [shape: f32[1,4], index: 18, kind: input, shape index: {}]   ;;  %s6973_s19 = inlined_call_operand.vmem [shape: f32[8,4], index: 19, kind: output, shape index: {}]  }
   0x1   :  { %6978 = sst [smem:[#allocation6_spill]] %s6954_s1  ;;  %5523 = vmatprep.subr.bf16.mxu0 %v6007_v0  ;;  %5039 = vmatprep.mubr.msk.f32.mxu0 %vm6008_vm0, %v6009_v4  ;;  %v4637_v21 = vld [vmem:[%s6958_s4] ss:$0 sm:$0xff]  ;;  %v366_v31 = vld [vmem:[%s6960_s6 + $0x8] sm:$0xff]  ;;  %v367_v33 = vld [vmem:[%s6960_s6 + $0x10] sm:$0xff]  ;;  %vm219_vm2 = vcmask 785408  }
   0x2   :  { %6979 = sst [smem:[#allocation7_spill]] %s6955_s2  ;;  %s6982_s20 = sld [smem:[#allocation6_spill]]  ;;  %v4639_v24 = vld [vmem:[%s6959_s8] ss:$0 sm:$0xff]  ;;  %v368_v34 = vld [vmem:[%s6960_s6 + $0x18] sm:$0xff]  ;;  %vm4612_vm3 = vcmask 31744  }
   0x3   :  { %6980 = sst [smem:[#allocation8_spill]] %s6956_s0  ;;  %s6983_s23 = sld [smem:[#allocation7_spill]]  ;;  %v365_v30 = vld [vmem:[%s6960_s6] sm:$0xff]  ;;  %v6225_v35 = vpack.c.bf16 %v368_v34, %v367_v33 }
   0x4   :  { %6981 = sst [smem:[#allocation9_spill]] %s6957_s5  ;;  %s6984_s0 = sld [smem:[#allocation8_spill]]  ;;  %v6214_v32 = vpack.c.bf16 %v366_v31, %v365_v30  ;;  %v4626_v37 = vld [vmem:[%s6961_s3] ss:$0 sm:$0xff] }
   0x5   :  { %s6985_s25 = sld [smem:[#allocation9_spill]]  ;;  %v4635_v57 = vld [vmem:[%s6962_s7] ss:$0 sm:$0xff]  ;;  %s6011_s7 = smov 96  }
   0x8   :  { %v71_v1 = vld [vmem:[%s6982_s20] sm:$0xff]  ;;  %v72_v2 = vld [vmem:[%s6982_s20 + $0x8] sm:$0xff]  ;;  %v73_v7 = vld [vmem:[%s6982_s20 + $0x10] sm:$0xff] }
   0x9   :  { %v228_v3 = vld [vmem:[%s6983_s23] sm:$0xff]  ;;  %v5507_v5 = vpack.c.bf16 %v72_v2, %v71_v1  ;;  %v229_v6 = vld [vmem:[%s6983_s23 + $0x8] sm:$0xff]  ;;  %v74_v8 = vld [vmem:[%s6982_s20 + $0x18] sm:$0xff]  ;;  %s6010_s20 = smov 64  }
   0xa   :  { %v6133_v9 = vpack.c.bf16 %v229_v6, %v228_v3  ;;  %v5511_v10 = vpack.c.bf16 %v74_v8, %v73_v7  ;;  %v230_v11 = vld [vmem:[%s6983_s23 + $0x10] sm:$0xff]  ;;  %v231_v12 = vld [vmem:[%s6983_s23 + $0x18] sm:$0xff]  ;;  %v62_v13 = vld [vmem:[%s6984_s0] sm:$0xff]  ;;  %456 = vrot.lane.b32.xlu0 %v4637_v21, %s6010_s20 }
   0xb   :  { %5508 = vmatprep.subr.bf16.mxu1 %v5507_v5  ;;  %4999 = vmatprep.mubr.msk.f32.mxu1 %vm75_vm1, %v62_v13  ;;  %v234_v14 = vld [vmem:[%s6985_s25] sm:$0xff]  ;;  %v235_v15 = vld [vmem:[%s6985_s25 + $0x8] sm:$0xff]  ;;  %v6152_v16 = vpack.c.bf16 %v231_v12, %v230_v11  ;;  %v236_v18 = vld [vmem:[%s6985_s25 + $0x10] sm:$0xff] }
   0xc   :  { %5525 = vmatpush3.bf16.msra.mxu0 %v6133_v9  ;;  %5510 = vmatpush3.bf16.msra.mxu1 %v5507_v5  ;;  %v5515_v17 = vpack.c.bf16 %v235_v15, %v234_v14  ;;  %v237_v19 = vld [vmem:[%s6985_s25 + $0x18] sm:$0xff]  ;;  %v63_v20 = vld [vmem:[%s6984_s0 + $0x8] sm:$0xff]  ;;  %v64_v22 = vld [vmem:[%s6984_s0 + $0x10] sm:$0xff] }
   0xd   :  { %5526 = vmatprep.subr.bf16.mxu0 %v6007_v0  ;;  %5512 = vmatprep.subr.bf16.mxu1 %v5511_v10  ;;  %v5519_v23 = vpack.c.bf16 %v237_v19, %v236_v18  ;;  %v65_v25 = vld [vmem:[%s6984_s0 + $0x18] sm:$0xff]  ;;  %v66_v26 = vld [vmem:[%s6984_s0 + $0x20] sm:$0xff]  ;;  %v67_v27 = vld [vmem:[%s6984_s0 + $0x28] sm:$0xff] }
   0xe   :  { %567 = vrot.lane.b32.xlu0 %v4639_v24, %s6010_s20  ;;  %v68_v28 = vld [vmem:[%s6984_s0 + $0x30] sm:$0xff]  ;;  %v69_v29 = vld [vmem:[%s6984_s0 + $0x38] sm:$0xff] }
  0x10   :  { %5528 = vmatpush3.bf16.msra.mxu0 %v6152_v16  ;;  %5514 = vmatpush3.bf16.msra.mxu1 %v5511_v10 }
  0x11   :  { %5516 = vmatprep.subr.bf16.mxu1 %v5515_v17  ;;  %5535 = vmatprep.subr.bf16.mxu0 %v6007_v0 }
  0x13   :  { %5040 = vmatmul.mubr.f32.vlgmr.msra.gmra.mrb[0].mxu0 %v6009_v4  ;;  %5000 = vmatmul.mubr.msk.f32.vlgmr.msra.gmra.mrb[0].mxu1 %vm75_vm1, %v63_v20 }
  0x14   :  { %5518 = vmatpush3.bf16.msra.mxu1 %v5515_v17  ;;  %5002 = vmatprep.mubr.msk.f32.mxu1 %vm75_vm1, %v64_v22 }
  0x15   :  { %5520 = vmatprep.subr.bf16.mxu1 %v5519_v23  ;;  %5537 = vmatpush3.bf16.msra.mxu0 %v6133_v9 }
  0x16   :  { %5061 = vmatprep.mubr.msk.f32.mxu0 %vm6008_vm0, %v6009_v4  ;;  %5538 = vmatprep.subr.bf16.mxu0 %v6007_v0 }
  0x17   :  { %5003 = vmatmul.mubr.msk.f32.gmra.mrb[2].mxu1 %vm75_vm1, %v65_v25 }
  0x18   :  { %5005 = vmatprep.mubr.msk.f32.mxu1 %vm75_vm1, %v66_v26  ;;  %5522 = vmatpush3.bf16.msra.mxu1 %v5519_v23 }
  0x19   :  { %5529 = vmatprep.subr.bf16.mxu1 %v6007_v0  ;;  %5540 = vmatpush3.bf16.msra.mxu0 %v6152_v16 }
  0x1a   :  { %5547 = vmatprep.subr.bf16.mxu0 %v6007_v0 }
  0x1b   :  { %5006 = vmatmul.mubr.msk.f32.gmra.mrb[4].mxu1 %vm75_vm1, %v67_v27 }
  0x1c   :  { %5008 = vmatprep.mubr.msk.f32.mxu1 %vm75_vm1, %v68_v28 }
  0x1f   :  { %5009 = vmatmul.mubr.msk.f32.gmra.mrb[6].mxu1 %vm75_vm1, %v69_v29 }
  0x20   :  { %5019 = vmatprep.mubr.msk.f32.mxu1 %vm75_vm1, %v62_v13 }
  0x23   :  { %5020 = vmatmul.mubr.msk.f32.vlgmr.msra.gmra.mrb[8].mxu1 %vm75_vm1, %v63_v20 }
  0x24   :  { %5531 = vmatpush3.bf16.msra.mxu1 %v6214_v32  ;;  %5022 = vmatprep.mubr.msk.f32.mxu1 %vm75_vm1, %v64_v22 }
  0x25   :  { %5532 = vmatprep.subr.bf16.mxu1 %v6007_v0 }
  0x27   :  { %5023 = vmatmul.mubr.msk.f32.gmra.mrb[10].mxu1 %vm75_vm1, %v65_v25 }
  0x28   :  { %5025 = vmatprep.mubr.msk.f32.mxu1 %vm75_vm1, %v66_v26  ;;  %5534 = vmatpush3.bf16.msra.mxu1 %v6225_v35 }
  0x29   :  { %5541 = vmatprep.subr.bf16.mxu1 %v6007_v0 }
  0x2b   :  { %5026 = vmatmul.mubr.msk.f32.gmra.mrb[12].mxu1 %vm75_vm1, %v67_v27 }
  0x2c   :  { %5028 = vmatprep.mubr.msk.f32.mxu1 %vm75_vm1, %v68_v28 }
  0x2f   :  { %5029 = vmatmul.mubr.msk.f32.gmra.mrb[14].mxu1 %vm75_vm1, %v69_v29 }
  0x30   :  { %5050 = vmatprep.mubr.msk.f32.mxu1 %vm6008_vm0, %v6009_v4 }
  0x33   :  { %5051 = vmatmul.mubr.f32.vlgmr.msra.gmra.mrb[16].mxu1 %v6009_v4 }
  0x34   :  { %5543 = vmatpush3.bf16.msra.mxu1 %v6214_v32  ;;  %5072 = vmatprep.mubr.msk.f32.mxu1 %vm6008_vm0, %v6009_v4 }
  0x35   :  { %5544 = vmatprep.subr.bf16.mxu1 %v6007_v0 }
  0x38   :  { %5546 = vmatpush3.bf16.msra.mxu1 %v6225_v35 }
  0x39   :  { %5553 = vmatprep.subr.bf16.mxu1 %v6007_v0 }
  0x7c   :  { %v6244_v36 = vpop.permute.xlu0 %456 }
  0x80   :  { %v6268_v13 = vpop.permute.xlu0 %567 }
  0xe6   :  { %v439_v38 = vpop.f32.mrb[0].mxu0  ;;  %v5001_v39 = vpop.f32.mrb[0].mxu1 }
  0xe7   :  { %v212_v40 = vadd.f32 %v5001_v39, %v4626_v37  ;;  %v166_v41 = vpop.f32.mrb[1].mxu1  ;;  %v459_v42 = vadd.f32 %v6244_v36, %v439_v38  ;;  %v5041_v43 = vpop.f32.mrb[1].mxu0 }
  0xe8   :  { %v211_v44 = vadd.f32 %v4626_v37, %v166_v41 }
  0xe9   :  { %221 = vst.msk [vmem:[#allocation2 + $0x8] sm:$0xff] %vm219_vm2, %v212_v40  ;;  %461 = vrot.lane.b32.xlu1 %v459_v42, %s6010_s20 }
  0xea   :  { %220 = vst.msk [vmem:[#allocation2] sm:$0xff] %vm219_vm2, %v211_v44  ;;  %v5004_v45 = vpop.f32.mrb[2].mxu1 }
  0xeb   :  { %v214_v46 = vadd.f32 %v5004_v45, %v4626_v37  ;;  %v176_v47 = vpop.f32.mrb[3].mxu1 }
  0xec   :  { %v213_v48 = vadd.f32 %v4626_v37, %v176_v47 }
  0xed   :  { %223 = vst.msk [vmem:[#allocation2 + $0x18] sm:$0xff] %vm219_vm2, %v214_v46 }
  0xee   :  { %222 = vst.msk [vmem:[#allocation2 + $0x10] sm:$0xff] %vm219_vm2, %v213_v48  ;;  %v5007_v49 = vpop.f32.mrb[4].mxu1 }
  0xef   :  { %v216_v50 = vadd.f32 %v5007_v49, %v4626_v37  ;;  %v186_v51 = vpop.f32.mrb[5].mxu1 }
  0xf0   :  { %v215_v52 = vadd.f32 %v4626_v37, %v186_v51 }
  0xf1   :  { %225 = vst.msk [vmem:[#allocation2 + $0x28] sm:$0xff] %vm219_vm2, %v216_v50  ;;  %v443_v18 = vld [vmem:[#allocation2] sm:$0xff] }
  0xf2   :  { %224 = vst.msk [vmem:[#allocation2 + $0x20] sm:$0xff] %vm219_vm2, %v215_v52  ;;  %v5010_v53 = vpop.f32.mrb[6].mxu1  ;;  %v444_v19 = vadd.f32 %v443_v18, %v439_v38 }
  0xf3   :  { %v218_v54 = vadd.f32 %v5010_v53, %v4626_v37  ;;  %v196_v55 = vpop.f32.mrb[7].mxu1 }
  0xf4   :  { %v217_v56 = vadd.f32 %v4626_v37, %v196_v55  ;;  %v4636_v20 = vmul.f32 -1.442695, %v444_v19 }
  0xf5   :  { %227 = vst.msk [vmem:[#allocation2 + $0x38] sm:$0xff] %vm219_vm2, %v218_v54 }
  0xf6   :  { %226 = vst.msk [vmem:[#allocation2 + $0x30] sm:$0xff] %vm219_vm2, %v217_v56  ;;  %v5021_v58 = vpop.f32.mrb[8].mxu1  ;;  %5815 = vpow2.f32 %v4636_v20 }
  0xf7   :  { %v350_v59 = vadd.f32 %v5021_v58, %v4635_v57  ;;  %v304_v60 = vpop.f32.mrb[9].mxu1 }
  0xf8   :  { %v349_v61 = vadd.f32 %v4635_v57, %v304_v60 }
  0xf9   :  { %358 = vst.msk [vmem:[#allocation3 + $0x8] sm:$0xff] %vm219_vm2, %v350_v59 }
  0xfa   :  { %357 = vst.msk [vmem:[#allocation3] sm:$0xff] %vm219_vm2, %v349_v61  ;;  %v5024_v62 = vpop.f32.mrb[10].mxu1  ;;  %v667_v61 = vld [vmem:[#allocation2 + $0x8] sm:$0xff] }
  0xfb   :  { %v352_v63 = vadd.f32 %v5024_v62, %v4635_v57  ;;  %v314_v1 = vpop.f32.mrb[11].mxu1 }
  0xfc   :  { %v351_v2 = vadd.f32 %v4635_v57, %v314_v1 }
  0xfd   :  { %360 = vst.msk [vmem:[#allocation3 + $0x18] sm:$0xff] %vm219_vm2, %v352_v63 }
  0xfe   :  { %359 = vst.msk [vmem:[#allocation3 + $0x10] sm:$0xff] %vm219_vm2, %v351_v2  ;;  %v5027_v3 = vpop.f32.mrb[12].mxu1 }
  0xff   :  { %v354_v5 = vadd.f32 %v5027_v3, %v4635_v57  ;;  %v324_v6 = vpop.f32.mrb[13].mxu1 }
 0x100   :  { %v353_v7 = vadd.f32 %v4635_v57, %v324_v6  ;;  %v5816_v21 = vpop.eup %5815 }
 0x101   :  { %362 = vst.msk [vmem:[#allocation3 + $0x28] sm:$0xff] %vm219_vm2, %v354_v5  ;;  %v448_v22 = vadd.f32 1.0, %v5816_v21 }
 0x102   :  { %361 = vst.msk [vmem:[#allocation3 + $0x20] sm:$0xff] %vm219_vm2, %v353_v7  ;;  %v5030_v8 = vpop.f32.mrb[14].mxu1 }
 0x103   :  { %v356_v10 = vadd.f32 %v5030_v8, %v4635_v57  ;;  %v334_v11 = vpop.f32.mrb[15].mxu1  ;;  %5817 = vrcp.f32 %v448_v22 }
 0x104   :  { %v355_v12 = vadd.f32 %v4635_v57, %v334_v11 }
 0x105   :  { %364 = vst.msk [vmem:[#allocation3 + $0x38] sm:$0xff] %vm219_vm2, %v356_v10 }
 0x106   :  { %363 = vst.msk [vmem:[#allocation3 + $0x30] sm:$0xff] %vm219_vm2, %v355_v12  ;;  %v550_v14 = vpop.f32.mrb[16].mxu1 }
 0x107   :  { %v570_v15 = vadd.f32 %v6268_v13, %v550_v14  ;;  %v5052_v17 = vpop.f32.mrb[17].mxu1 }
 0x109   :  { %572 = vrot.lane.b32.xlu1 %v570_v15, %s6010_s20 }
 0x10c   :  { %v554_v23 = vld [vmem:[#allocation3 + $0x38] sm:$0xff] }
 0x10d   :  { %v555_v24 = vadd.f32 %v554_v23, %v550_v14  ;;  %v5818_v25 = vpop.eup %5817  ;;  %v772_v3 = vld [vmem:[#allocation3 + $0x30] sm:$0xff] }
 0x10e   :  { %v471_v43 = vsub.f32 1.0, %v5818_v25  ;;  %v477_v45 = vmul.f32 0.0, %v5818_v25 }
 0x10f   :  { %v4638_v27 = vmul.f32 -1.442695, %v555_v24 }
 0x111   :  { %5819 = vpow2.f32 %v4638_v27 }
 0x11b   :  { %v5820_v29 = vpop.eup %5819 }
 0x11c   :  { %v559_v30 = vadd.f32 1.0, %v5820_v29 }
 0x11e   :  { %5821 = vrcp.f32 %v559_v30 }
 0x128   :  { %v5822_v31 = vpop.eup %5821 }
 0x129   :  { %v582_v48 = vsub.f32 1.0, %v5822_v31  ;;  %v588_v50 = vmul.f32 0.0, %v5822_v31 }
 0x15b   :  { %v462_v26 = vpop.permute.xlu1 %461 }
 0x15c   :  { %v464_v28 = vmul.f32 %v5818_v25, %v462_v26 }
 0x15e   :  { %466 = vrot.lane.b32.xlu0 %v464_v28, %s6010_s20 }
 0x17b   :  { %v573_v33 = vpop.permute.xlu1 %572 }
 0x17c   :  { %v575_v34 = vmul.f32 %v5822_v31, %v573_v33 }
 0x17e   :  { %577 = vrot.lane.b32.xlu1 %v575_v34, %s6010_s20 }
 0x1d0   :  { %v467_v37 = vpop.permute.xlu0 %466 }
 0x1d1   :  { %v469_v38 = vadd.f32 %v467_v37, %v443_v18 }
 0x1d3   :  { %5823 = vtanh.f32 %v469_v38 }
 0x1dd   :  { %v5824_v39 = vpop.eup %5823 }
 0x1de   :  { %473 = vrot.lane.b32.xlu0 %v5824_v39, %s6011_s7 }
 0x1f0   :  { %v578_v40 = vpop.permute.xlu1 %577 }
 0x1f1   :  { %v580_v41 = vadd.f32 %v578_v40, %v554_v23 }
 0x1f3   :  { %5825 = vtanh.f32 %v580_v41 }
 0x1fd   :  { %v5826_v42 = vpop.eup %5825 }
 0x1fe   :  { %584 = vrot.lane.b32.xlu1 %v5826_v42, %s6011_s7 }
 0x250   :  { %v474_v44 = vpop.permute.xlu0 %473 }
 0x251   :  { %v476_v46 = vmul.f32 %v474_v44, %v471_v43 }
 0x253   :  { %v6278_v47 = vadd.f32 %v477_v45, %v476_v46  ;;  %v877_v45 = vld [vmem:[#allocation2 + $0x10] sm:$0xff] }
 0x255   :  { %480 = vrot.lane.b32.xlu0 %v6278_v47, %s6011_s7 }
 0x270   :  { %v585_v49 = vpop.permute.xlu1 %584 }
 0x271   :  { %v587_v51 = vmul.f32 %v585_v49, %v582_v48 }
 0x273   :  { %v6282_v52 = vadd.f32 %v588_v50, %v587_v51  ;;  %v982_v50 = vld [vmem:[#allocation3 + $0x28] sm:$0xff] }
 0x275   :  { %591 = vrot.lane.b32.xlu1 %v6282_v52, %s6011_s7 }
 0x2c7   :  { %v481_v53 = vpop.permute.xlu0 %480 }
 0x2c8   :  { %483 = vst.msk [vmem:[#allocation4] sm:$0xff] %vm75_vm1, %v481_v53  ;;  %5062 = vmatmul.mubr.msk.f32.vlgmr.msra.gmra.mrb[2].mxu0 %vm75_vm1, %v481_v53 }
 0x2c9   :  { %5549 = vmatpush3.bf16.msra.mxu0 %v6133_v9  ;;  %5083 = vmatprep.mubr.msk.f32.mxu0 %vm6008_vm0, %v6009_v4 }
 0x2ca   :  { %5550 = vmatprep.subr.bf16.mxu0 %v6007_v0 }
 0x2cd   :  { %5552 = vmatpush3.bf16.msra.mxu0 %v6152_v16 }
 0x2ce   :  { %5559 = vmatprep.subr.bf16.mxu0 %v6007_v0 }
 0x2e7   :  { %v592_v54 = vpop.permute.xlu1 %591 }
 0x2e8   :  { %594 = vst.msk [vmem:[#allocation5 + $0x38] sm:$0xff] %vm75_vm1, %v592_v54  ;;  %5073 = vmatmul.mubr.msk.f32.vlgmr.msra.gmra.mrb[18].mxu1 %vm75_vm1, %v592_v54 }
 0x2e9   :  { %5555 = vmatpush3.bf16.msra.mxu1 %v6214_v32  ;;  %5094 = vmatprep.mubr.msk.f32.mxu1 %vm6008_vm0, %v6009_v4 }
 0x2ea   :  { %5556 = vmatprep.subr.bf16.mxu1 %v6007_v0 }
 0x2ed   :  { %5558 = vmatpush3.bf16.msra.mxu1 %v6225_v35 }
 0x2ee   :  { %5565 = vmatprep.subr.bf16.mxu1 %v6007_v0 }
 0x39b   :  { %v663_v55 = vpop.f32.mrb[2].mxu0 }
 0x39c   :  { %v675_v56 = vadd.f32 %v663_v55, %v6244_v36  ;;  %v5063_v57 = vpop.f32.mrb[3].mxu0  ;;  %v668_v62 = vadd.f32 %v667_v61, %v663_v55 }
 0x39e   :  { %677 = vrot.lane.b32.xlu0 %v675_v56, %s6010_s20  ;;  %v4641_v63 = vmul.f32 -1.442695, %v668_v62 }
 0x3a0   :  { %5827 = vpow2.f32 %v4641_v63 }
 0x3aa   :  { %v5828_v1 = vpop.eup %5827 }
 0x3ab   :  { %v672_v2 = vadd.f32 1.0, %v5828_v1 }
 0x3ad   :  { %5829 = vrcp.f32 %v672_v2 }
 0x3b7   :  { %v5830_v6 = vpop.eup %5829 }
 0x3b8   :  { %v687_v24 = vsub.f32 1.0, %v5830_v6  ;;  %v693_v26 = vmul.f32 %v5830_v6, %v6278_v47 }
 0x3bb   :  { %v768_v58 = vpop.f32.mrb[18].mxu1 }
 0x3bc   :  { %v780_v59 = vadd.f32 %v768_v58, %v6268_v13  ;;  %v5074_v60 = vpop.f32.mrb[19].mxu1  ;;  %v773_v5 = vadd.f32 %v772_v3, %v768_v58 }
 0x3be   :  { %782 = vrot.lane.b32.xlu1 %v780_v59, %s6010_s20  ;;  %v4643_v8 = vmul.f32 -1.442695, %v773_v5 }
 0x3c0   :  { %5831 = vpow2.f32 %v4643_v8 }
 0x3ca   :  { %v5832_v11 = vpop.eup %5831 }
 0x3cb   :  { %v777_v12 = vadd.f32 1.0, %v5832_v11 }
 0x3cd   :  { %5833 = vrcp.f32 %v777_v12 }
 0x3d7   :  { %v5834_v14 = vpop.eup %5833 }
 0x3d8   :  { %v792_v29 = vsub.f32 1.0, %v5834_v14  ;;  %v798_v31 = vmul.f32 %v5834_v14, %v6282_v52 }
 0x410   :  { %v678_v7 = vpop.permute.xlu0 %677 }
 0x411   :  { %v680_v10 = vmul.f32 %v5830_v6, %v678_v7 }
 0x413   :  { %682 = vrot.lane.b32.xlu0 %v680_v10, %s6010_s20 }
 0x430   :  { %v783_v15 = vpop.permute.xlu1 %782 }
 0x431   :  { %v785_v17 = vmul.f32 %v5834_v14, %v783_v15 }
 0x433   :  { %787 = vrot.lane.b32.xlu1 %v785_v17, %s6010_s20 }
 0x485   :  { %v683_v18 = vpop.permute.xlu0 %682 }
 0x486   :  { %v685_v19 = vadd.f32 %v683_v18, %v667_v61 }
 0x488   :  { %5835 = vtanh.f32 %v685_v19 }
 0x492   :  { %v5836_v20 = vpop.eup %5835 }
 0x493   :  { %689 = vrot.lane.b32.xlu0 %v5836_v20, %s6011_s7 }
 0x4a5   :  { %v788_v21 = vpop.permute.xlu1 %787 }
 0x4a6   :  { %v790_v22 = vadd.f32 %v788_v21, %v772_v3 }
 0x4a8   :  { %5837 = vtanh.f32 %v790_v22 }
 0x4b2   :  { %v5838_v23 = vpop.eup %5837 }
 0x4b3   :  { %794 = vrot.lane.b32.xlu1 %v5838_v23, %s6011_s7 }
 0x505   :  { %v690_v25 = vpop.permute.xlu0 %689 }
 0x506   :  { %v692_v27 = vmul.f32 %v690_v25, %v687_v24 }
 0x508   :  { %v6311_v28 = vadd.f32 %v693_v26, %v692_v27  ;;  %v1087_v26 = vld [vmem:[#allocation2 + $0x18] sm:$0xff] }
 0x50a   :  { %696 = vrot.lane.b32.xlu0 %v6311_v28, %s6011_s7 }
 0x525   :  { %v795_v30 = vpop.permute.xlu1 %794 }
 0x526   :  { %v797_v33 = vmul.f32 %v795_v30, %v792_v29 }
 0x528   :  { %v6316_v34 = vadd.f32 %v798_v31, %v797_v33  ;;  %v1192_v31 = vld [vmem:[#allocation3 + $0x20] sm:$0xff] }
 0x52a   :  { %801 = vrot.lane.b32.xlu1 %v6316_v34, %s6011_s7 }
 0x57c   :  { %v697_v37 = vpop.permute.xlu0 %696 }
 0x57d   :  { %699 = vst.msk [vmem:[#allocation4 + $0x8] sm:$0xff] %vm75_vm1, %v697_v37  ;;  %5084 = vmatmul.mubr.msk.f32.vlgmr.msra.gmra.mrb[4].mxu0 %vm75_vm1, %v697_v37 }
 0x57e   :  { %5561 = vmatpush3.bf16.msra.mxu0 %v6133_v9  ;;  %5105 = vmatprep.mubr.msk.f32.mxu0 %vm6008_vm0, %v6009_v4 }
 0x57f   :  { %5562 = vmatprep.subr.bf16.mxu0 %v6007_v0 }
 0x582   :  { %5564 = vmatpush3.bf16.msra.mxu0 %v6152_v16 }
 0x583   :  { %5571 = vmatprep.subr.bf16.mxu0 %v6007_v0 }
 0x59c   :  { %v802_v38 = vpop.permute.xlu1 %801 }
 0x59d   :  { %804 = vst.msk [vmem:[#allocation5 + $0x30] sm:$0xff] %vm75_vm1, %v802_v38  ;;  %5095 = vmatmul.mubr.msk.f32.vlgmr.msra.gmra.mrb[20].mxu1 %vm75_vm1, %v802_v38 }
 0x59e   :  { %5567 = vmatpush3.bf16.msra.mxu1 %v6214_v32  ;;  %5116 = vmatprep.mubr.msk.f32.mxu1 %vm6008_vm0, %v6009_v4 }
 0x59f   :  { %5568 = vmatprep.subr.bf16.mxu1 %v6007_v0 }
 0x5a2   :  { %5570 = vmatpush3.bf16.msra.mxu1 %v6225_v35 }
 0x5a3   :  { %5577 = vmatprep.subr.bf16.mxu1 %v6007_v0 }
 0x650   :  { %v873_v39 = vpop.f32.mrb[4].mxu0 }
 0x651   :  { %v885_v40 = vadd.f32 %v873_v39, %v6244_v36  ;;  %v5085_v41 = vpop.f32.mrb[5].mxu0  ;;  %v878_v46 = vadd.f32 %v877_v45, %v873_v39 }
 0x653   :  { %887 = vrot.lane.b32.xlu0 %v885_v40, %s6010_s20  ;;  %v4645_v47 = vmul.f32 -1.442695, %v878_v46 }
 0x655   :  { %5839 = vpow2.f32 %v4645_v47 }
 0x65f   :  { %v5840_v48 = vpop.eup %5839 }
 0x660   :  { %v882_v49 = vadd.f32 1.0, %v5840_v48 }
 0x662   :  { %5841 = vrcp.f32 %v882_v49 }
 0x66c   :  { %v5842_v52 = vpop.eup %5841 }
 0x66d   :  { %v897_v5 = vsub.f32 1.0, %v5842_v52  ;;  %v903_v7 = vmul.f32 %v5842_v52, %v6311_v28 }
 0x670   :  { %v978_v42 = vpop.f32.mrb[20].mxu1 }
 0x671   :  { %v990_v43 = vadd.f32 %v978_v42, %v6268_v13  ;;  %v5096_v44 = vpop.f32.mrb[21].mxu1  ;;  %v983_v51 = vadd.f32 %v982_v50, %v978_v42 }
 0x673   :  { %992 = vrot.lane.b32.xlu1 %v990_v43, %s6010_s20  ;;  %v4647_v54 = vmul.f32 -1.442695, %v983_v51 }
 0x675   :  { %5843 = vpow2.f32 %v4647_v54 }
 0x67f   :  { %v5844_v56 = vpop.eup %5843 }
 0x680   :  { %v987_v57 = vadd.f32 1.0, %v5844_v56 }
 0x682   :  { %5845 = vrcp.f32 %v987_v57 }
 0x68c   :  { %v5846_v58 = vpop.eup %5845 }
 0x68d   :  { %v1002_v11 = vsub.f32 1.0, %v5846_v58  ;;  %v1008_v14 = vmul.f32 %v5846_v58, %v6316_v34 }
 0x6c5   :  { %v888_v53 = vpop.permute.xlu0 %887 }
 0x6c6   :  { %v890_v55 = vmul.f32 %v5842_v52, %v888_v53 }
 0x6c8   :  { %892 = vrot.lane.b32.xlu0 %v890_v55, %s6010_s20 }
 0x6e5   :  { %v993_v59 = vpop.permute.xlu1 %992 }
 0x6e6   :  { %v995_v60 = vmul.f32 %v5846_v58, %v993_v59 }
 0x6e8   :  { %997 = vrot.lane.b32.xlu1 %v995_v60, %s6010_s20 }
 0x73a   :  { %v893_v61 = vpop.permute.xlu0 %892 }
 0x73b   :  { %v895_v62 = vadd.f32 %v893_v61, %v877_v45 }
 0x73d   :  { %5847 = vtanh.f32 %v895_v62 }
 0x747   :  { %v5848_v63 = vpop.eup %5847 }
 0x748   :  { %899 = vrot.lane.b32.xlu0 %v5848_v63, %s6011_s7 }
 0x75a   :  { %v998_v1 = vpop.permute.xlu1 %997 }
 0x75b   :  { %v1000_v2 = vadd.f32 %v998_v1, %v982_v50 }
 0x75d   :  { %5849 = vtanh.f32 %v1000_v2 }
 0x767   :  { %v5850_v3 = vpop.eup %5849 }
 0x768   :  { %1004 = vrot.lane.b32.xlu1 %v5850_v3, %s6011_s7 }
 0x7ba   :  { %v900_v6 = vpop.permute.xlu0 %899 }
 0x7bb   :  { %v902_v8 = vmul.f32 %v900_v6, %v897_v5 }
 0x7bd   :  { %v6345_v10 = vadd.f32 %v903_v7, %v902_v8  ;;  %v1297_v7 = vld [vmem:[#allocation2 + $0x20] sm:$0xff] }
 0x7bf   :  { %906 = vrot.lane.b32.xlu0 %v6345_v10, %s6011_s7 }
 0x7da   :  { %v1005_v12 = vpop.permute.xlu1 %1004 }
 0x7db   :  { %v1007_v15 = vmul.f32 %v1005_v12, %v1002_v11 }
 0x7dd   :  { %v6350_v17 = vadd.f32 %v1008_v14, %v1007_v15  ;;  %v1402_v14 = vld [vmem:[#allocation3 + $0x18] sm:$0xff] }
 0x7df   :  { %1011 = vrot.lane.b32.xlu1 %v6350_v17, %s6011_s7 }
 0x831   :  { %v907_v18 = vpop.permute.xlu0 %906 }
 0x832   :  { %909 = vst.msk [vmem:[#allocation4 + $0x10] sm:$0xff] %vm75_vm1, %v907_v18  ;;  %5106 = vmatmul.mubr.msk.f32.vlgmr.msra.gmra.mrb[6].mxu0 %vm75_vm1, %v907_v18 }
 0x833   :  { %5573 = vmatpush3.bf16.msra.mxu0 %v6133_v9  ;;  %5127 = vmatprep.mubr.msk.f32.mxu0 %vm6008_vm0, %v6009_v4 }
 0x834   :  { %5574 = vmatprep.subr.bf16.mxu0 %v6007_v0 }
 0x837   :  { %5576 = vmatpush3.bf16.msra.mxu0 %v6152_v16 }
 0x838   :  { %5583 = vmatprep.subr.bf16.mxu0 %v6007_v0 }
 0x851   :  { %v1012_v19 = vpop.permute.xlu1 %1011 }
 0x852   :  { %1014 = vst.msk [vmem:[#allocation5 + $0x28] sm:$0xff] %vm75_vm1, %v1012_v19  ;;  %5117 = vmatmul.mubr.msk.f32.vlgmr.msra.gmra.mrb[22].mxu1 %vm75_vm1, %v1012_v19 }
 0x853   :  { %5579 = vmatpush3.bf16.msra.mxu1 %v6214_v32  ;;  %5138 = vmatprep.mubr.msk.f32.mxu1 %vm6008_vm0, %v6009_v4 }
 0x854   :  { %5580 = vmatprep.subr.bf16.mxu1 %v6007_v0 }
 0x857   :  { %5582 = vmatpush3.bf16.msra.mxu1 %v6225_v35 }
 0x858   :  { %5589 = vmatprep.subr.bf16.mxu1 %v6007_v0 }
 0x905   :  { %v1083_v20 = vpop.f32.mrb[6].mxu0 }
 0x906   :  { %v1095_v21 = vadd.f32 %v1083_v20, %v6244_v36  ;;  %v5107_v22 = vpop.f32.mrb[7].mxu0  ;;  %v1088_v27 = vadd.f32 %v1087_v26, %v1083_v20 }
 0x908   :  { %1097 = vrot.lane.b32.xlu0 %v1095_v21, %s6010_s20  ;;  %v4649_v28 = vmul.f32 -1.442695, %v1088_v27 }
 0x90a   :  { %5851 = vpow2.f32 %v4649_v28 }
 0x914   :  { %v5852_v29 = vpop.eup %5851 }
 0x915   :  { %v1092_v30 = vadd.f32 1.0, %v5852_v29 }
 0x917   :  { %5853 = vrcp.f32 %v1092_v30 }
 0x921   :  { %v5854_v34 = vpop.eup %5853 }
 0x922   :  { %v1107_v51 = vsub.f32 1.0, %v5854_v34  ;;  %v1113_v53 = vmul.f32 %v5854_v34, %v6345_v10 }
 0x925   :  { %v1188_v23 = vpop.f32.mrb[22].mxu1 }
 0x926   :  { %v1200_v24 = vadd.f32 %v1188_v23, %v6268_v13  ;;  %v5118_v25 = vpop.f32.mrb[23].mxu1  ;;  %v1193_v33 = vadd.f32 %v1192_v31, %v1188_v23 }
 0x928   :  { %1202 = vrot.lane.b32.xlu1 %v1200_v24, %s6010_s20  ;;  %v4651_v38 = vmul.f32 -1.442695, %v1193_v33 }
 0x92a   :  { %5855 = vpow2.f32 %v4651_v38 }
 0x934   :  { %v5856_v40 = vpop.eup %5855 }
 0x935   :  { %v1197_v41 = vadd.f32 1.0, %v5856_v40 }
 0x937   :  { %5857 = vrcp.f32 %v1197_v41 }
 0x941   :  { %v5858_v42 = vpop.eup %5857 }
 0x942   :  { %v1212_v56 = vsub.f32 1.0, %v5858_v42  ;;  %v1218_v58 = vmul.f32 %v5858_v42, %v6350_v17 }
 0x97a   :  { %v1098_v37 = vpop.permute.xlu0 %1097 }
 0x97b   :  { %v1100_v39 = vmul.f32 %v5854_v34, %v1098_v37 }
 0x97d   :  { %1102 = vrot.lane.b32.xlu0 %v1100_v39, %s6010_s20 }
 0x99a   :  { %v1203_v43 = vpop.permute.xlu1 %1202 }
 0x99b   :  { %v1205_v44 = vmul.f32 %v5858_v42, %v1203_v43 }
 0x99d   :  { %1207 = vrot.lane.b32.xlu1 %v1205_v44, %s6010_s20 }
 0x9ef   :  { %v1103_v45 = vpop.permute.xlu0 %1102 }
 0x9f0   :  { %v1105_v46 = vadd.f32 %v1103_v45, %v1087_v26 }
 0x9f2   :  { %5859 = vtanh.f32 %v1105_v46 }
 0x9fc   :  { %v5860_v47 = vpop.eup %5859 }
 0x9fd   :  { %1109 = vrot.lane.b32.xlu0 %v5860_v47, %s6011_s7 }
 0xa0f   :  { %v1208_v48 = vpop.permute.xlu1 %1207 }
 0xa10   :  { %v1210_v49 = vadd.f32 %v1208_v48, %v1192_v31 }
 0xa12   :  { %5861 = vtanh.f32 %v1210_v49 }
 0xa1c   :  { %v5862_v50 = vpop.eup %5861 }
 0xa1d   :  { %1214 = vrot.lane.b32.xlu1 %v5862_v50, %s6011_s7 }
 0xa6f   :  { %v1110_v52 = vpop.permute.xlu0 %1109 }
 0xa70   :  { %v1112_v54 = vmul.f32 %v1110_v52, %v1107_v51 }
 0xa72   :  { %v6379_v55 = vadd.f32 %v1113_v53, %v1112_v54  ;;  %v1507_v53 = vld [vmem:[#allocation2 + $0x28] sm:$0xff] }
 0xa74   :  { %1116 = vrot.lane.b32.xlu0 %v6379_v55, %s6011_s7 }
 0xa8f   :  { %v1215_v57 = vpop.permute.xlu1 %1214 }
 0xa90   :  { %v1217_v59 = vmul.f32 %v1215_v57, %v1212_v56 }
 0xa92   :  { %v6384_v60 = vadd.f32 %v1218_v58, %v1217_v59  ;;  %v1612_v58 = vld [vmem:[#allocation3 + $0x10] sm:$0xff] }
 0xa94   :  { %1221 = vrot.lane.b32.xlu1 %v6384_v60, %s6011_s7 }
 0xae6   :  { %v1117_v61 = vpop.permute.xlu0 %1116 }
 0xae7   :  { %1119 = vst.msk [vmem:[#allocation4 + $0x18] sm:$0xff] %vm75_vm1, %v1117_v61  ;;  %5128 = vmatmul.mubr.msk.f32.vlgmr.msra.gmra.mrb[8].mxu0 %vm75_vm1, %v1117_v61 }
 0xae8   :  { %5585 = vmatpush3.bf16.msra.mxu0 %v6133_v9  ;;  %5149 = vmatprep.mubr.msk.f32.mxu0 %vm6008_vm0, %v6009_v4 }
 0xae9   :  { %5586 = vmatprep.subr.bf16.mxu0 %v6007_v0 }
 0xaec   :  { %5588 = vmatpush3.bf16.msra.mxu0 %v6152_v16 }
 0xaed   :  { %5595 = vmatprep.subr.bf16.mxu0 %v6007_v0 }
 0xb06   :  { %v1222_v62 = vpop.permute.xlu1 %1221 }
 0xb07   :  { %1224 = vst.msk [vmem:[#allocation5 + $0x20] sm:$0xff] %vm75_vm1, %v1222_v62  ;;  %5139 = vmatmul.mubr.msk.f32.vlgmr.msra.gmra.mrb[24].mxu1 %vm75_vm1, %v1222_v62 }
 0xb08   :  { %5591 = vmatpush3.bf16.msra.mxu1 %v6214_v32  ;;  %5160 = vmatprep.mubr.msk.f32.mxu1 %vm6008_vm0, %v6009_v4 }
 0xb09   :  { %5592 = vmatprep.subr.bf16.mxu1 %v6007_v0 }
 0xb0c   :  { %5594 = vmatpush3.bf16.msra.mxu1 %v6225_v35 }
 0xb0d   :  { %5601 = vmatprep.subr.bf16.mxu1 %v6007_v0 }
 0xbba   :  { %v1293_v63 = vpop.f32.mrb[8].mxu0 }
 0xbbb   :  { %v1305_v1 = vadd.f32 %v1293_v63, %v6244_v36  ;;  %v5129_v2 = vpop.f32.mrb[9].mxu0  ;;  %v1298_v8 = vadd.f32 %v1297_v7, %v1293_v63 }
 0xbbd   :  { %1307 = vrot.lane.b32.xlu0 %v1305_v1, %s6010_s20  ;;  %v4653_v10 = vmul.f32 -1.442695, %v1298_v8 }
 0xbbf   :  { %5863 = vpow2.f32 %v4653_v10 }
 0xbc9   :  { %v5864_v11 = vpop.eup %5863 }
 0xbca   :  { %v1302_v12 = vadd.f32 1.0, %v5864_v11 }
 0xbcc   :  { %5865 = vrcp.f32 %v1302_v12 }
 0xbd6   :  { %v5866_v17 = vpop.eup %5865 }
 0xbd7   :  { %v1317_v33 = vsub.f32 1.0, %v5866_v17  ;;  %v1323_v37 = vmul.f32 %v5866_v17, %v6379_v55 }
 0xbda   :  { %v1398_v3 = vpop.f32.mrb[24].mxu1 }
 0xbdb   :  { %v1410_v5 = vadd.f32 %v1398_v3, %v6268_v13  ;;  %v5140_v6 = vpop.f32.mrb[25].mxu1  ;;  %v1403_v15 = vadd.f32 %v1402_v14, %v1398_v3 }
 0xbdd   :  { %1412 = vrot.lane.b32.xlu1 %v1410_v5, %s6010_s20  ;;  %v4655_v19 = vmul.f32 -1.442695, %v1403_v15 }
 0xbdf   :  { %5867 = vpow2.f32 %v4655_v19 }
 0xbe9   :  { %v5868_v21 = vpop.eup %5867 }
 0xbea   :  { %v1407_v22 = vadd.f32 1.0, %v5868_v21 }
 0xbec   :  { %5869 = vrcp.f32 %v1407_v22 }
 0xbf6   :  { %v5870_v23 = vpop.eup %5869 }
 0xbf7   :  { %v1422_v40 = vsub.f32 1.0, %v5870_v23  ;;  %v1428_v42 = vmul.f32 %v5870_v23, %v6384_v60 }
 0xc2f   :  { %v1308_v18 = vpop.permute.xlu0 %1307 }
 0xc30   :  { %v1310_v20 = vmul.f32 %v5866_v17, %v1308_v18 }
 0xc32   :  { %1312 = vrot.lane.b32.xlu0 %v1310_v20, %s6010_s20 }
 0xc4f   :  { %v1413_v24 = vpop.permute.xlu1 %1412 }
 0xc50   :  { %v1415_v25 = vmul.f32 %v5870_v23, %v1413_v24 }
 0xc52   :  { %1417 = vrot.lane.b32.xlu1 %v1415_v25, %s6010_s20 }
 0xca4   :  { %v1313_v26 = vpop.permute.xlu0 %1312 }
 0xca5   :  { %v1315_v27 = vadd.f32 %v1313_v26, %v1297_v7 }
 0xca7   :  { %5871 = vtanh.f32 %v1315_v27 }
 0xcb1   :  { %v5872_v28 = vpop.eup %5871 }
 0xcb2   :  { %1319 = vrot.lane.b32.xlu0 %v5872_v28, %s6011_s7 }
 0xcc4   :  { %v1418_v29 = vpop.permute.xlu1 %1417 }
 0xcc5   :  { %v1420_v30 = vadd.f32 %v1418_v29, %v1402_v14 }
 0xcc7   :  { %5873 = vtanh.f32 %v1420_v30 }
 0xcd1   :  { %v5874_v31 = vpop.eup %5873 }
 0xcd2   :  { %1424 = vrot.lane.b32.xlu1 %v5874_v31, %s6011_s7 }
 0xd24   :  { %v1320_v34 = vpop.permute.xlu0 %1319 }
 0xd25   :  { %v1322_v38 = vmul.f32 %v1320_v34, %v1317_v33 }
 0xd27   :  { %v6413_v39 = vadd.f32 %v1323_v37, %v1322_v38 }
 0xd29   :  { %1326 = vrot.lane.b32.xlu0 %v6413_v39, %s6011_s7 }
 0xd44   :  { %v1425_v41 = vpop.permute.xlu1 %1424 }
 0xd45   :  { %v1427_v43 = vmul.f32 %v1425_v41, %v1422_v40 }
 0xd47   :  { %v6418_v44 = vadd.f32 %v1428_v42, %v1427_v43 }
 0xd49   :  { %1431 = vrot.lane.b32.xlu1 %v6418_v44, %s6011_s7 }
 0xd9b   :  { %v1327_v45 = vpop.permute.xlu0 %1326 }
 0xd9c   :  { %1329 = vst.msk [vmem:[#allocation4 + $0x20] sm:$0xff] %vm75_vm1, %v1327_v45  ;;  %5150 = vmatmul.mubr.msk.f32.vlgmr.msra.gmra.mrb[10].mxu0 %vm75_vm1, %v1327_v45 }
 0xd9d   :  { %5597 = vmatpush3.bf16.msra.mxu0 %v6133_v9  ;;  %5171 = vmatprep.mubr.msk.f32.mxu0 %vm6008_vm0, %v6009_v4 }
 0xd9e   :  { %5598 = vmatprep.subr.bf16.mxu0 %v6007_v0 }
 0xda1   :  { %5600 = vmatpush3.bf16.msra.mxu0 %v6152_v16 }
 0xda2   :  { %5607 = vmatprep.subr.bf16.mxu0 %v6007_v0 }
 0xdbb   :  { %v1432_v46 = vpop.permute.xlu1 %1431 }
 0xdbc   :  { %1434 = vst.msk [vmem:[#allocation5 + $0x18] sm:$0xff] %vm75_vm1, %v1432_v46  ;;  %5161 = vmatmul.mubr.msk.f32.vlgmr.msra.gmra.mrb[26].mxu1 %vm75_vm1, %v1432_v46 }
 0xdbd   :  { %5603 = vmatpush3.bf16.msra.mxu1 %v6214_v32  ;;  %5182 = vmatprep.mubr.msk.f32.mxu1 %vm6008_vm0, %v6009_v4 }
 0xdbe   :  { %5604 = vmatprep.subr.bf16.mxu1 %v6007_v0 }
 0xdc1   :  { %5606 = vmatpush3.bf16.msra.mxu1 %v6225_v35 }
 0xdc2   :  { %5613 = vmatprep.subr.bf16.mxu1 %v6007_v0 }
 0xe6f   :  { %v1503_v47 = vpop.f32.mrb[10].mxu0 }
 0xe70   :  { %v1515_v48 = vadd.f32 %v1503_v47, %v6244_v36  ;;  %v5151_v49 = vpop.f32.mrb[11].mxu0  ;;  %v1508_v54 = vadd.f32 %v1507_v53, %v1503_v47 }
 0xe72   :  { %1517 = vrot.lane.b32.xlu0 %v1515_v48, %s6010_s20  ;;  %v4657_v55 = vmul.f32 -1.442695, %v1508_v54  ;;  %v2082_v54 = vld [vmem:[%s6963_s9] sm:$0xff] }
 0xe74   :  { %5875 = vpow2.f32 %v4657_v55  ;;  %v2083_v55 = vld [vmem:[%s6963_s9 + $0x8] sm:$0xff] }
 0xe7e   :  { %v5876_v56 = vpop.eup %5875 }
 0xe7f   :  { %v1512_v57 = vadd.f32 1.0, %v5876_v56  ;;  %v5619_v56 = vpack.c.bf16 %v2083_v55, %v2082_v54  ;;  %v2229_v54 = vld [vmem:[%s6963_s9 + $0x20] sm:$0xff]  ;;  %v2230_v55 = vld [vmem:[%s6963_s9 + $0x28] sm:$0xff] }
 0xe81   :  { %5877 = vrcp.f32 %v1512_v57 }
 0xe8b   :  { %v5878_v60 = vpop.eup %5877 }
 0xe8c   :  { %v1527_v15 = vsub.f32 1.0, %v5878_v60  ;;  %v1533_v18 = vmul.f32 %v5878_v60, %v6413_v39 }
 0xe8f   :  { %v1608_v50 = vpop.f32.mrb[26].mxu1 }
 0xe90   :  { %v1620_v51 = vadd.f32 %v1608_v50, %v6268_v13  ;;  %v5162_v52 = vpop.f32.mrb[27].mxu1  ;;  %v1613_v59 = vadd.f32 %v1612_v58, %v1608_v50 }
 0xe92   :  { %1622 = vrot.lane.b32.xlu1 %v1620_v51, %s6010_s20  ;;  %v4659_v62 = vmul.f32 -1.442695, %v1613_v59 }
 0xe94   :  { %5879 = vpow2.f32 %v4659_v62 }
 0xe9e   :  { %v5880_v1 = vpop.eup %5879 }
 0xe9f   :  { %v1617_v2 = vadd.f32 1.0, %v5880_v1  ;;  %v2385_v1 = vld [vmem:[%s6964_s13 + $0x8] sm:$0xff] }
 0xea1   :  { %5881 = vrcp.f32 %v1617_v2 }
 0xeab   :  { %v5882_v3 = vpop.eup %5881 }
 0xeac   :  { %v1632_v21 = vsub.f32 1.0, %v5882_v3  ;;  %v1638_v23 = vmul.f32 %v5882_v3, %v6418_v44 }
 0xee4   :  { %v1518_v61 = vpop.permute.xlu0 %1517 }
 0xee5   :  { %v1520_v63 = vmul.f32 %v5878_v60, %v1518_v61 }
 0xee7   :  { %1522 = vrot.lane.b32.xlu0 %v1520_v63, %s6010_s20  ;;  %v2384_v63 = vld [vmem:[%s6964_s13] sm:$0xff] }
 0xee8   :  { %v5635_v2 = vpack.c.bf16 %v2385_v1, %v2384_v63  ;;  %v2507_v63 = vld [vmem:[%s6964_s13 + $0x20] sm:$0xff]  ;;  %v2508_v1 = vld [vmem:[%s6964_s13 + $0x28] sm:$0xff] }
 0xf04   :  { %v1623_v5 = vpop.permute.xlu1 %1622 }
 0xf05   :  { %v1625_v6 = vmul.f32 %v5882_v3, %v1623_v5 }
 0xf07   :  { %1627 = vrot.lane.b32.xlu1 %v1625_v6, %s6010_s20 }
 0xf59   :  { %v1523_v7 = vpop.permute.xlu0 %1522 }
 0xf5a   :  { %v1525_v8 = vadd.f32 %v1523_v7, %v1507_v53 }
 0xf5c   :  { %5883 = vtanh.f32 %v1525_v8 }
 0xf66   :  { %v5884_v10 = vpop.eup %5883 }
 0xf67   :  { %1529 = vrot.lane.b32.xlu0 %v5884_v10, %s6011_s7  ;;  %v2084_v10 = vld [vmem:[%s6963_s9 + $0x10] sm:$0xff] }
 0xf79   :  { %v1628_v11 = vpop.permute.xlu1 %1627 }
 0xf7a   :  { %v1630_v12 = vadd.f32 %v1628_v11, %v1612_v58  ;;  %v2085_v11 = vld [vmem:[%s6963_s9 + $0x18] sm:$0xff] }
 0xf7c   :  { %5885 = vtanh.f32 %v1630_v12  ;;  %v5623_v12 = vpack.c.bf16 %v2085_v11, %v2084_v10 }
 0xf86   :  { %v5886_v14 = vpop.eup %5885 }
 0xf87   :  { %1634 = vrot.lane.b32.xlu1 %v5886_v14, %s6011_s7 }
 0xfd9   :  { %v1530_v17 = vpop.permute.xlu0 %1529 }
 0xfda   :  { %v1532_v19 = vmul.f32 %v1530_v17, %v1527_v15  ;;  %v2065_v15 = vld [vmem:[#allocation4] sm:$0xff]  ;;  %v2066_v17 = vld [vmem:[#allocation4 + $0x8] sm:$0xff] }
 0xfdc   :  { %v6447_v20 = vadd.f32 %v1533_v18, %v1532_v19  ;;  %v2067_v18 = vld [vmem:[#allocation4 + $0x10] sm:$0xff]  ;;  %v2068_v19 = vld [vmem:[#allocation4 + $0x18] sm:$0xff] }
 0xfde   :  { %1536 = vrot.lane.b32.xlu0 %v6447_v20, %s6011_s7 }
 0xff9   :  { %v1635_v22 = vpop.permute.xlu1 %1634 }
 0xffa   :  { %v1637_v24 = vmul.f32 %v1635_v22, %v1632_v21 }
 0xffc   :  { %v6452_v25 = vadd.f32 %v1638_v23, %v1637_v24  ;;  %v2386_v23 = vld [vmem:[%s6964_s13 + $0x10] sm:$0xff]  ;;  %v2387_v24 = vld [vmem:[%s6964_s13 + $0x18] sm:$0xff] }
 0xffe   :  { %1641 = vrot.lane.b32.xlu1 %v6452_v25, %s6011_s7 }
0x1050   :  { %v1537_v26 = vpop.permute.xlu0 %1536 }
0x1051   :  { %1539 = vst.msk [vmem:[#allocation4 + $0x28] sm:$0xff] %vm75_vm1, %v1537_v26  ;;  %5172 = vmatmul.mubr.msk.f32.vlgmr.msra.gmra.mrb[12].mxu0 %vm75_vm1, %v1537_v26 }
0x1052   :  { %5609 = vmatpush3.bf16.msra.mxu0 %v6133_v9  ;;  %5193 = vmatprep.mubr.msk.f32.mxu0 %vm6008_vm0, %v6009_v4 }
0x1053   :  { %5610 = vmatprep.subr.bf16.mxu0 %v6007_v0 }
0x1056   :  { %5612 = vmatpush3.bf16.msra.mxu0 %v6152_v16 }
0x1057   :  { %5620 = vmatprep.subr.bf16.mxu0 %v5619_v56 }
0x1058   :  { %v2070_v21 = vld [vmem:[#allocation4 + $0x28] sm:$0xff] }
0x1070   :  { %v1642_v27 = vpop.permute.xlu1 %1641 }
0x1071   :  { %1644 = vst.msk [vmem:[#allocation5 + $0x10] sm:$0xff] %vm75_vm1, %v1642_v27  ;;  %5183 = vmatmul.mubr.msk.f32.vlgmr.msra.gmra.mrb[28].mxu1 %vm75_vm1, %v1642_v27 }
0x1072   :  { %5615 = vmatpush3.bf16.msra.mxu1 %v6214_v32  ;;  %5204 = vmatprep.mubr.msk.f32.mxu1 %vm6008_vm0, %v6009_v4  ;;  %v1717_v32 = vld [vmem:[#allocation2 + $0x30] sm:$0xff] }
0x1073   :  { %5616 = vmatprep.subr.bf16.mxu1 %v6007_v0 }
0x1076   :  { %5618 = vmatpush3.bf16.msra.mxu1 %v6225_v35  ;;  %v1822_v35 = vld [vmem:[#allocation3 + $0x8] sm:$0xff] }
0x1077   :  { %5636 = vmatprep.subr.bf16.mxu1 %v5635_v2 }
0x1124   :  { %v1713_v9 = vpop.f32.mrb[12].mxu0 }
0x1125   :  { %v1725_v28 = vadd.f32 %v1713_v9, %v6244_v36  ;;  %v5173_v29 = vpop.f32.mrb[13].mxu0  ;;  %v1718_v33 = vadd.f32 %v1717_v32, %v1713_v9 }
0x1127   :  { %1727 = vrot.lane.b32.xlu0 %v1725_v28, %s6010_s20  ;;  %v4661_v34 = vmul.f32 -1.442695, %v1718_v33 }
0x1129   :  { %5887 = vpow2.f32 %v4661_v34 }
0x1133   :  { %v5888_v37 = vpop.eup %5887 }
0x1134   :  { %v1722_v38 = vadd.f32 1.0, %v5888_v37 }
0x1136   :  { %5889 = vrcp.f32 %v1722_v38  ;;  %v2032_v38 = vld [vmem:[#allocation3] sm:$0xff] }
0x1140   :  { %v5890_v40 = vpop.eup %5889 }
0x1141   :  { %v1737_v58 = vsub.f32 1.0, %v5890_v40  ;;  %v1743_v60 = vmul.f32 %v5890_v40, %v6447_v20  ;;  %v2069_v20 = vld [vmem:[#allocation4 + $0x20] sm:$0xff] }
0x1144   :  { %v1818_v16 = vpop.f32.mrb[28].mxu1 }
0x1145   :  { %v1830_v30 = vadd.f32 %v1818_v16, %v6268_v13  ;;  %v5184_v31 = vpop.f32.mrb[29].mxu1  ;;  %v1823_v39 = vadd.f32 %v1822_v35, %v1818_v16 }
0x1146   :  { %v1927_v31 = vld [vmem:[#allocation2 + $0x38] sm:$0xff] }
0x1147   :  { %1832 = vrot.lane.b32.xlu1 %v1830_v30, %s6010_s20  ;;  %v4663_v42 = vmul.f32 -1.442695, %v1823_v39 }
0x1149   :  { %5891 = vpow2.f32 %v4663_v42 }
0x1153   :  { %v5892_v44 = vpop.eup %5891 }
0x1154   :  { %v1827_v45 = vadd.f32 1.0, %v5892_v44 }
0x1156   :  { %5893 = vrcp.f32 %v1827_v45 }
0x1160   :  { %v5894_v46 = vpop.eup %5893 }
0x1161   :  { %v1842_v3 = vsub.f32 1.0, %v5894_v46  ;;  %v1848_v6 = vmul.f32 %v5894_v46, %v6452_v25  ;;  %v5639_v25 = vpack.c.bf16 %v2387_v24, %v2386_v23  ;;  %v2633_v23 = vld [vmem:[%s6968_s14 + $0x8] sm:$0xff] }
0x1199   :  { %v1728_v41 = vpop.permute.xlu0 %1727 }
0x119a   :  { %v1730_v43 = vmul.f32 %v5890_v40, %v1728_v41 }
0x119c   :  { %1732 = vrot.lane.b32.xlu0 %v1730_v43, %s6010_s20 }
0x11b9   :  { %v1833_v47 = vpop.permute.xlu1 %1832 }
0x11ba   :  { %v1835_v48 = vmul.f32 %v5894_v46, %v1833_v47 }
0x11bc   :  { %1837 = vrot.lane.b32.xlu1 %v1835_v48, %s6010_s20 }
0x120e   :  { %v1733_v49 = vpop.permute.xlu0 %1732 }
0x120f   :  { %v1735_v50 = vadd.f32 %v1733_v49, %v1717_v32 }
0x1211   :  { %5895 = vtanh.f32 %v1735_v50 }
0x121b   :  { %v5896_v51 = vpop.eup %5895 }
0x121c   :  { %1739 = vrot.lane.b32.xlu0 %v5896_v51, %s6011_s7 }
0x122e   :  { %v1838_v52 = vpop.permute.xlu1 %1837 }
0x122f   :  { %v1840_v53 = vadd.f32 %v1838_v52, %v1822_v35 }
0x1231   :  { %5897 = vtanh.f32 %v1840_v53 }
0x123b   :  { %v5898_v57 = vpop.eup %5897 }
0x123c   :  { %1844 = vrot.lane.b32.xlu1 %v5898_v57, %s6011_s7 }
0x128e   :  { %v1740_v59 = vpop.permute.xlu0 %1739 }
0x128f   :  { %v1742_v61 = vmul.f32 %v1740_v59, %v1737_v58  ;;  %v5627_v58 = vpack.c.bf16 %v2230_v55, %v2229_v54 }
0x1291   :  { %v6485_v62 = vadd.f32 %v1743_v60, %v1742_v61  ;;  %v2231_v60 = vld [vmem:[%s6963_s9 + $0x30] sm:$0xff]  ;;  %v2232_v61 = vld [vmem:[%s6963_s9 + $0x38] sm:$0xff] }
0x1293   :  { %1746 = vrot.lane.b32.xlu0 %v6485_v62, %s6011_s7 }
0x12ae   :  { %v1845_v5 = vpop.permute.xlu1 %1844 }
0x12af   :  { %v1847_v7 = vmul.f32 %v1845_v5, %v1842_v3  ;;  %v2510_v3 = vld [vmem:[%s6964_s13 + $0x38] sm:$0xff]  ;;  %v5643_v5 = vpack.c.bf16 %v2508_v1, %v2507_v63 }
0x12b1   :  { %v6496_v8 = vadd.f32 %v1848_v6, %v1847_v7 }
0x12b3   :  { %1851 = vrot.lane.b32.xlu1 %v6496_v8, %s6011_s7 }
0x1305   :  { %v1747_v14 = vpop.permute.xlu0 %1746 }
0x1306   :  { %1749 = vst.msk [vmem:[#allocation4 + $0x30] sm:$0xff] %vm75_vm1, %v1747_v14  ;;  %5194 = vmatmul.mubr.msk.f32.vlgmr.msra.gmra.mrb[14].mxu0 %vm75_vm1, %v1747_v14 }
0x1307   :  { %5622 = vmatpush3.bf16.msra.mxu0 %v5619_v56  ;;  %5215 = vmatprep.mubr.msk.f32.mxu0 %vm75_vm1, %v2065_v15 }
0x1308   :  { %5624 = vmatprep.subr.bf16.mxu0 %v5623_v12 }
0x130b   :  { %5626 = vmatpush3.bf16.msra.mxu0 %v5623_v12 }
0x130c   :  { %5628 = vmatprep.subr.bf16.mxu0 %v5627_v58 }
0x130d   :  { %v2071_v22 = vld [vmem:[#allocation4 + $0x30] sm:$0xff] }
0x130e   :  { %5216 = vmatmul.mubr.msk.f32.vlgmr.msra.gmra.mrb[16].mxu0 %vm75_vm1, %v2066_v17 }
0x130f   :  { %5218 = vmatprep.mubr.msk.f32.mxu0 %vm75_vm1, %v2067_v18  ;;  %5630 = vmatpush3.bf16.msra.mxu0 %v5627_v58 }
0x1312   :  { %5219 = vmatmul.mubr.msk.f32.gmra.mrb[18].mxu0 %vm75_vm1, %v2068_v19 }
0x1313   :  { %5221 = vmatprep.mubr.msk.f32.mxu0 %vm75_vm1, %v2069_v20 }
0x1316   :  { %5222 = vmatmul.mubr.msk.f32.gmra.mrb[20].mxu0 %vm75_vm1, %v2070_v21 }
0x1317   :  { %5224 = vmatprep.mubr.msk.f32.mxu0 %vm75_vm1, %v2071_v22 }
0x1325   :  { %v1852_v26 = vpop.permute.xlu1 %1851 }
0x1326   :  { %1854 = vst.msk [vmem:[#allocation5 + $0x8] sm:$0xff] %vm75_vm1, %v1852_v26  ;;  %5205 = vmatmul.mubr.msk.f32.vlgmr.msra.gmra.mrb[30].mxu1 %vm75_vm1, %v1852_v26 }
0x1327   :  { %5638 = vmatpush3.bf16.msra.mxu1 %v5635_v2  ;;  %5255 = vmatprep.mubr.msk.f32.mxu1 %vm75_vm1, %v2065_v15  ;;  %v2509_v2 = vld [vmem:[%s6964_s13 + $0x30] sm:$0xff]  ;;  %v4705_v15 = vld [vmem:[%s6965_s16] ss:$0 sm:$0xff] }
0x1328   :  { %5640 = vmatprep.subr.bf16.mxu1 %v5639_v25  ;;  %v5647_v6 = vpack.c.bf16 %v2510_v3, %v2509_v2 }
0x132b   :  { %5642 = vmatpush3.bf16.msra.mxu1 %v5639_v25 }
0x132c   :  { %5644 = vmatprep.subr.bf16.mxu1 %v5643_v5 }
0x132d   :  { %v2074_v25 = vld [vmem:[#allocation5 + $0x8] sm:$0xff] }
0x132e   :  { %5256 = vmatmul.mubr.msk.f32.vlgmr.msra.gmra.mrb[32].mxu1 %vm75_vm1, %v2066_v17  ;;  %v4703_v17 = vld [vmem:[%s6966_s12] ss:$0 sm:$0xff] }
0x132f   :  { %5258 = vmatprep.mubr.msk.f32.mxu1 %vm75_vm1, %v2067_v18  ;;  %5646 = vmatpush3.bf16.msra.mxu1 %v5643_v5 }
0x1330   :  { %5648 = vmatprep.subr.bf16.mxu1 %v5647_v6 }
0x1332   :  { %5259 = vmatmul.mubr.msk.f32.gmra.mrb[34].mxu1 %vm75_vm1, %v2068_v19 }
0x1333   :  { %5261 = vmatprep.mubr.msk.f32.mxu1 %vm75_vm1, %v2069_v20  ;;  %5650 = vmatpush3.bf16.msra.mxu1 %v5647_v6  ;;  %v2378_v20 = vld [vmem:[%s6967_s10] sm:$0xff] }
0x1334   :  { %5657 = vmatprep.subr.bf16.mxu1 %v6007_v0 }
0x1336   :  { %5262 = vmatmul.mubr.msk.f32.gmra.mrb[36].mxu1 %vm75_vm1, %v2070_v21  ;;  %v2379_v21 = vld [vmem:[%s6967_s10 + $0x8] sm:$0xff] }
0x1337   :  { %5264 = vmatprep.mubr.msk.f32.mxu1 %vm75_vm1, %v2071_v22  ;;  %v2632_v22 = vld [vmem:[%s6968_s14] sm:$0xff]  ;;  %v6598_v26 = vpack.c.bf16 %v2379_v21, %v2378_v20 }
0x13d9   :  { %v1923_v27 = vpop.f32.mrb[14].mxu0 }
0x13da   :  { %v1935_v9 = vadd.f32 %v1923_v27, %v6244_v36  ;;  %v5195_v28 = vpop.f32.mrb[15].mxu0  ;;  %v1928_v32 = vadd.f32 %v1927_v31, %v1923_v27  ;;  %v2380_v27 = vld [vmem:[%s6967_s10 + $0x10] sm:$0xff] }
0x13db   :  { %v2381_v28 = vld [vmem:[%s6967_s10 + $0x18] sm:$0xff] }
0x13dc   :  { %1937 = vrot.lane.b32.xlu0 %v1935_v9, %s6010_s20  ;;  %v4665_v33 = vmul.f32 -1.442695, %v1928_v32  ;;  %v6603_v9 = vpack.c.bf16 %v2633_v23, %v2632_v22 }
0x13de   :  { %5899 = vpow2.f32 %v4665_v33  ;;  %v2076_v33 = vld [vmem:[#allocation5 + $0x18] sm:$0xff] }
0x13e8   :  { %v5900_v34 = vpop.eup %5899 }
0x13e9   :  { %v1932_v37 = vadd.f32 1.0, %v5900_v34  ;;  %v2077_v34 = vld [vmem:[#allocation5 + $0x20] sm:$0xff] }
0x13eb   :  { %5901 = vrcp.f32 %v1932_v37  ;;  %v2078_v37 = vld [vmem:[#allocation5 + $0x28] sm:$0xff] }
0x13f5   :  { %v5902_v39 = vpop.eup %5901 }
0x13f6   :  { %v1947_v52 = vsub.f32 1.0, %v5902_v39  ;;  %v1953_v56 = vmul.f32 %v5902_v39, %v6485_v62  ;;  %v5631_v62 = vpack.c.bf16 %v2232_v61, %v2231_v60 }
0x13f8   :  { %5632 = vmatprep.subr.bf16.mxu0 %v5631_v62 }
0x13f9   :  { %v2028_v29 = vpop.f32.mrb[30].mxu1  ;;  %5634 = vmatpush3.bf16.msra.mxu0 %v5631_v62 }
0x13fa   :  { %v2040_v16 = vadd.f32 %v2028_v29, %v6268_v13  ;;  %v5206_v30 = vpop.f32.mrb[31].mxu1  ;;  %v2033_v35 = vadd.f32 %v2032_v38, %v2028_v29  ;;  %5651 = vmatprep.subr.bf16.mxu0 %v6007_v0  ;;  %v2634_v29 = vld [vmem:[%s6968_s14 + $0x10] sm:$0xff] }
0x13fb   :  { %v2075_v30 = vld [vmem:[#allocation5 + $0x10] sm:$0xff] }
0x13fc   :  { %2042 = vrot.lane.b32.xlu1 %v2040_v16, %s6010_s20  ;;  %v4667_v40 = vmul.f32 -1.442695, %v2033_v35  ;;  %v2635_v16 = vld [vmem:[%s6968_s14 + $0x18] sm:$0xff] }
0x13fd   :  { %v6624_v32 = vpack.c.bf16 %v2635_v16, %v2634_v29  ;;  %v2080_v35 = vld [vmem:[#allocation5 + $0x38] sm:$0xff] }
0x13fe   :  { %5903 = vpow2.f32 %v4667_v40 }
0x1408   :  { %v5904_v13 = vpop.eup %5903 }
0x1409   :  { %v2037_v42 = vadd.f32 1.0, %v5904_v13 }
0x140b   :  { %5905 = vrcp.f32 %v2037_v42 }
0x1415   :  { %v5906_v43 = vpop.eup %5905 }
0x1416   :  { %v2052_v7 = vsub.f32 1.0, %v5906_v43  ;;  %v2058_v11 = vmul.f32 %v5906_v43, %v6496_v8 }
0x144e   :  { %v1938_v36 = vpop.permute.xlu0 %1937 }
0x144f   :  { %v1940_v41 = vmul.f32 %v5902_v39, %v1938_v36  ;;  %v4676_v39 = vld [vmem:[%s6969_s11] ss:$0 sm:$0xff] }
0x1450   :  { %v4693_v36 = vld [vmem:[%s6970_s15] ss:$0 sm:$0xff] }
0x1451   :  { %1942 = vrot.lane.b32.xlu0 %v1940_v41, %s6010_s20 }
0x146e   :  { %v2043_v44 = vpop.permute.xlu1 %2042 }
0x146f   :  { %v2045_v45 = vmul.f32 %v5906_v43, %v2043_v44 }
0x1471   :  { %2047 = vrot.lane.b32.xlu1 %v2045_v45, %s6010_s20 }
0x14c3   :  { %v1943_v46 = vpop.permute.xlu0 %1942 }
0x14c4   :  { %v1945_v47 = vadd.f32 %v1943_v46, %v1927_v31  ;;  %v6621_v31 = vpack.c.bf16 %v2381_v28, %v2380_v27 }
0x14c6   :  { %5907 = vtanh.f32 %v1945_v47 }
0x14d0   :  { %v5908_v48 = vpop.eup %5907 }
0x14d1   :  { %1949 = vrot.lane.b32.xlu0 %v5908_v48, %s6011_s7 }
0x14e3   :  { %v2048_v49 = vpop.permute.xlu1 %2047 }
0x14e4   :  { %v2050_v50 = vadd.f32 %v2048_v49, %v2032_v38  ;;  %v2079_v38 = vld [vmem:[#allocation5 + $0x30] sm:$0xff] }
0x14e6   :  { %5909 = vtanh.f32 %v2050_v50 }
0x14f0   :  { %v5910_v51 = vpop.eup %5909 }
0x14f1   :  { %2054 = vrot.lane.b32.xlu1 %v5910_v51, %s6011_s7 }
0x1543   :  { %v1950_v53 = vpop.permute.xlu0 %1949 }
0x1544   :  { %v1952_v57 = vmul.f32 %v1950_v53, %v1947_v52 }
0x1546   :  { %v1954_v59 = vadd.f32 %v1953_v56, %v1952_v57 }
0x1548   :  { %1956 = vrot.lane.b32.xlu0 %v1954_v59, %s6011_s7 }
0x154c   :  { %2720 = vrot.lane.b32.xlu0 %v4703_v17, %s6010_s20 }
0x1563   :  { %v2055_v10 = vpop.permute.xlu1 %2054 }
0x1564   :  { %v2057_v12 = vmul.f32 %v2055_v10, %v2052_v7 }
0x1566   :  { %v2059_v14 = vadd.f32 %v2058_v11, %v2057_v12 }
0x1568   :  { %2061 = vrot.lane.b32.xlu1 %v2059_v14, %s6011_s7 }
0x156c   :  { %2826 = vrot.lane.b32.xlu1 %v4705_v15, %s6010_s20 }
0x15ba   :  { %v6576_v8 = vpop.permute.xlu0 %1956 }
0x15bb   :  { %1959 = vst.msk [vmem:[#allocation4 + $0x38] sm:$0xff] %vm75_vm1, %v6576_v8 }
0x15be   :  { %v6680_v12 = vpop.permute.xlu0 %2720 }
0x15c2   :  { %v2072_v18 = vld [vmem:[#allocation4 + $0x38] sm:$0xff] }
0x15c3   :  { %5225 = vmatmul.mubr.msk.f32.gmra.mrb[22].mxu0 %vm75_vm1, %v2072_v18  ;;  %5265 = vmatmul.mubr.msk.f32.gmra.mrb[38].mxu1 %vm75_vm1, %v2072_v18 }
0x15da   :  { %v6582_v19 = vpop.permute.xlu1 %2061 }
0x15db   :  { %2064 = vst.msk [vmem:[#allocation5] sm:$0xff] %vm75_vm1, %v6582_v19 }
0x15de   :  { %v6678_v11 = vpop.permute.xlu1 %2826 }
0x15e2   :  { %v2073_v24 = vld [vmem:[#allocation5] sm:$0xff] }
0x15e3   :  { %5235 = vmatprep.mubr.msk.f32.mxu0 %vm75_vm1, %v2073_v24  ;;  %5275 = vmatprep.mubr.msk.f32.mxu1 %vm75_vm1, %v2073_v24 }
0x15e4   :  { %5236 = vmatmul.mubr.msk.f32.vlgmr.msra.gmra.mrb[16].mxu0 %vm75_vm1, %v2074_v25  ;;  %5276 = vmatmul.mubr.msk.f32.vlgmr.msra.gmra.mrb[32].mxu1 %vm75_vm1, %v2074_v25 }
0x15e5   :  { %5238 = vmatprep.mubr.msk.f32.mxu0 %vm75_vm1, %v2075_v30  ;;  %5278 = vmatprep.mubr.msk.f32.mxu1 %vm75_vm1, %v2075_v30 }
0x15e6   :  { %5653 = vmatpush3.bf16.msra.mxu0 %v6598_v26  ;;  %5659 = vmatpush3.bf16.msra.mxu1 %v6603_v9 }
0x15e7   :  { %5654 = vmatprep.subr.bf16.mxu0 %v6007_v0  ;;  %5660 = vmatprep.subr.bf16.mxu1 %v6007_v0 }
0x15e8   :  { %5239 = vmatmul.mubr.msk.f32.gmra.mrb[18].mxu0 %vm75_vm1, %v2076_v33  ;;  %5279 = vmatmul.mubr.msk.f32.gmra.mrb[34].mxu1 %vm75_vm1, %v2076_v33 }
0x15e9   :  { %5241 = vmatprep.mubr.msk.f32.mxu0 %vm75_vm1, %v2077_v34  ;;  %5281 = vmatprep.mubr.msk.f32.mxu1 %vm75_vm1, %v2077_v34 }
0x15ea   :  { %5656 = vmatpush3.bf16.msra.mxu0 %v6621_v31  ;;  %5662 = vmatpush3.bf16.msra.mxu1 %v6624_v32 }
0x15eb   :  { %5663 = vmatprep.subr.bf16.mxu0 %v6007_v0  ;;  %5669 = vmatprep.subr.bf16.mxu1 %v6007_v0 }
0x15ec   :  { %5242 = vmatmul.mubr.msk.f32.gmra.mrb[20].mxu0 %vm75_vm1, %v2078_v37  ;;  %5282 = vmatmul.mubr.msk.f32.gmra.mrb[36].mxu1 %vm75_vm1, %v2078_v37 }
0x15ed   :  { %5244 = vmatprep.mubr.msk.f32.mxu0 %vm75_vm1, %v2079_v38  ;;  %5284 = vmatprep.mubr.msk.f32.mxu1 %vm75_vm1, %v2079_v38 }
0x15f0   :  { %5245 = vmatmul.mubr.msk.f32.gmra.mrb[22].mxu0 %vm75_vm1, %v2080_v35  ;;  %5285 = vmatmul.mubr.msk.f32.gmra.mrb[38].mxu1 %vm75_vm1, %v2080_v35 }
0x15f1   :  { %5295 = vmatprep.mubr.msk.f32.mxu0 %vm6008_vm0, %v6009_v4  ;;  %5306 = vmatprep.mubr.msk.f32.mxu1 %vm6008_vm0, %v6009_v4 }
0x15f4   :  { %5296 = vmatmul.mubr.f32.vlgmr.msra.gmra.mrb[24].mxu0 %v6009_v4  ;;  %5307 = vmatmul.mubr.f32.vlgmr.msra.gmra.mrb[40].mxu1 %v6009_v4 }
0x15f5   :  { %5665 = vmatpush3.bf16.msra.mxu0 %v6598_v26  ;;  %5671 = vmatpush3.bf16.msra.mxu1 %v6603_v9 }
0x15f6   :  { %5666 = vmatprep.subr.bf16.mxu0 %v6007_v0  ;;  %5672 = vmatprep.subr.bf16.mxu1 %v6007_v0 }
0x15f7   :  { %5328 = vmatprep.mubr.msk.f32.mxu1 %vm6008_vm0, %v6009_v4  ;;  %5317 = vmatprep.mubr.msk.f32.mxu0 %vm6008_vm0, %v6009_v4 }
0x15f9   :  { %5668 = vmatpush3.bf16.msra.mxu0 %v6621_v31  ;;  %5674 = vmatpush3.bf16.msra.mxu1 %v6624_v32 }
0x15fa   :  { %5675 = vmatprep.subr.bf16.mxu0 %v6007_v0  ;;  %5681 = vmatprep.subr.bf16.mxu1 %v6007_v0 }
0x16b7   :  { %v5237_v40 = vpop.f32.mrb[16].mxu0  ;;  %v5277_v41 = vpop.f32.mrb[32].mxu1 }
0x16b8   :  { %v5771_v13 = vadd.f32 %v5237_v40, %v4676_v39  ;;  %v5779_v42 = vadd.f32 %v5277_v41, %v4693_v36  ;;  %v2323_v43 = vpop.f32.mrb[17].mxu0  ;;  %v2577_v44 = vpop.f32.mrb[33].mxu1 }
0x16b9   :  { %v5772_v45 = vadd.f32 %v4676_v39, %v2323_v43  ;;  %v5780_v46 = vadd.f32 %v4693_v36, %v2577_v44 }
0x16ba   :  { %2371 = vst.msk [vmem:[#allocation2 + $0x8] sm:$0xff] %vm219_vm2, %v5771_v13  ;;  %2625 = vst.msk [vmem:[#allocation3 + $0x8] sm:$0xff] %vm219_vm2, %v5779_v42 }
0x16bb   :  { %2370 = vst.msk [vmem:[#allocation2] sm:$0xff] %vm219_vm2, %v5772_v45  ;;  %2624 = vst.msk [vmem:[#allocation3] sm:$0xff] %vm219_vm2, %v5780_v46  ;;  %v5240_v47 = vpop.f32.mrb[18].mxu0  ;;  %v5280_v48 = vpop.f32.mrb[34].mxu1 }
0x16bc   :  { %v5773_v49 = vadd.f32 %v5240_v47, %v4676_v39  ;;  %v5781_v50 = vadd.f32 %v5280_v48, %v4693_v36  ;;  %v2333_v51 = vpop.f32.mrb[19].mxu0  ;;  %v2587_v52 = vpop.f32.mrb[35].mxu1 }
0x16bd   :  { %v5774_v53 = vadd.f32 %v4676_v39, %v2333_v51  ;;  %v5782_v54 = vadd.f32 %v4693_v36, %v2587_v52 }
0x16be   :  { %2373 = vst.msk [vmem:[#allocation2 + $0x18] sm:$0xff] %vm219_vm2, %v5773_v49  ;;  %2627 = vst.msk [vmem:[#allocation3 + $0x18] sm:$0xff] %vm219_vm2, %v5781_v50 }
0x16bf   :  { %2372 = vst.msk [vmem:[#allocation2 + $0x10] sm:$0xff] %vm219_vm2, %v5774_v53  ;;  %2626 = vst.msk [vmem:[#allocation3 + $0x10] sm:$0xff] %vm219_vm2, %v5782_v54  ;;  %v5243_v55 = vpop.f32.mrb[20].mxu0  ;;  %v5283_v56 = vpop.f32.mrb[36].mxu1 }
0x16c0   :  { %v5775_v57 = vadd.f32 %v5243_v55, %v4676_v39  ;;  %v5783_v58 = vadd.f32 %v5283_v56, %v4693_v36  ;;  %v2343_v59 = vpop.f32.mrb[21].mxu0  ;;  %v2597_v60 = vpop.f32.mrb[37].mxu1 }
0x16c1   :  { %v5776_v61 = vadd.f32 %v4676_v39, %v2343_v59  ;;  %v5784_v63 = vadd.f32 %v4693_v36, %v2597_v60 }
0x16c2   :  { %2375 = vst.msk [vmem:[#allocation2 + $0x28] sm:$0xff] %vm219_vm2, %v5775_v57  ;;  %2629 = vst.msk [vmem:[#allocation3 + $0x28] sm:$0xff] %vm219_vm2, %v5783_v58  ;;  %v2707_v23 = vld [vmem:[#allocation2] sm:$0xff] }
0x16c3   :  { %2374 = vst.msk [vmem:[#allocation2 + $0x20] sm:$0xff] %vm219_vm2, %v5776_v61  ;;  %2628 = vst.msk [vmem:[#allocation3 + $0x20] sm:$0xff] %vm219_vm2, %v5784_v63  ;;  %v5246_v62 = vpop.f32.mrb[22].mxu0  ;;  %v5286_v1 = vpop.f32.mrb[38].mxu1 }
0x16c4   :  { %v5777_v2 = vadd.f32 %v5246_v62, %v4676_v39  ;;  %v5785_v3 = vadd.f32 %v5286_v1, %v4693_v36  ;;  %v2353_v5 = vpop.f32.mrb[23].mxu0  ;;  %v2607_v6 = vpop.f32.mrb[39].mxu1  ;;  %v2924_v1 = vld [vmem:[#allocation2 + $0x8] sm:$0xff] }
0x16c5   :  { %v5778_v7 = vadd.f32 %v4676_v39, %v2353_v5  ;;  %v5786_v10 = vadd.f32 %v4693_v36, %v2607_v6 }
0x16c6   :  { %2377 = vst.msk [vmem:[#allocation2 + $0x38] sm:$0xff] %vm219_vm2, %v5777_v2  ;;  %2631 = vst.msk [vmem:[#allocation3 + $0x38] sm:$0xff] %vm219_vm2, %v5785_v3 }
0x16c7   :  { %2376 = vst.msk [vmem:[#allocation2 + $0x30] sm:$0xff] %vm219_vm2, %v5778_v7  ;;  %2630 = vst.msk [vmem:[#allocation3 + $0x30] sm:$0xff] %vm219_vm2, %v5786_v10  ;;  %v2703_v14 = vpop.f32.mrb[24].mxu0  ;;  %v2809_v15 = vpop.f32.mrb[40].mxu1 }
0x16c8   :  { %v2723_v17 = vadd.f32 %v6680_v12, %v2703_v14  ;;  %v2829_v18 = vadd.f32 %v6678_v11, %v2809_v15  ;;  %v5297_v20 = vpop.f32.mrb[25].mxu0  ;;  %v5308_v21 = vpop.f32.mrb[41].mxu1  ;;  %v2708_v24 = vadd.f32 %v2707_v23, %v2703_v14 }
0x16ca   :  { %2831 = vrot.lane.b32.xlu1 %v2829_v18, %s6010_s20  ;;  %2725 = vrot.lane.b32.xlu0 %v2723_v17, %s6010_s20  ;;  %v4702_v27 = vmul.f32 -1.442695, %v2708_v24 }
0x16cc   :  { %5911 = vpow2.f32 %v4702_v27 }
0x16cd   :  { %v2813_v22 = vld [vmem:[#allocation3 + $0x38] sm:$0xff] }
0x16ce   :  { %v2814_v25 = vadd.f32 %v2813_v22, %v2809_v15  ;;  %v3027_v62 = vld [vmem:[#allocation3 + $0x30] sm:$0xff] }
0x16d0   :  { %v4704_v28 = vmul.f32 -1.442695, %v2814_v25 }
0x16d2   :  { %5913 = vpow2.f32 %v4704_v28 }
0x16d6   :  { %v5912_v29 = vpop.eup %5911 }
0x16d7   :  { %v2712_v30 = vadd.f32 1.0, %v5912_v29 }
0x16d9   :  { %5915 = vrcp.f32 %v2712_v30 }
0x16dc   :  { %v5914_v16 = vpop.eup %5913 }
0x16dd   :  { %v2818_v33 = vadd.f32 1.0, %v5914_v16 }
0x16df   :  { %5917 = vrcp.f32 %v2818_v33 }
0x16e3   :  { %v5916_v34 = vpop.eup %5915 }
0x16e4   :  { %v2735_v47 = vsub.f32 1.0, %v5916_v34  ;;  %v2741_v51 = vmul.f32 0.0, %v5916_v34 }
0x16e9   :  { %v5918_v37 = vpop.eup %5917 }
0x16ea   :  { %v2841_v45 = vsub.f32 1.0, %v5918_v37  ;;  %v2847_v48 = vmul.f32 0.0, %v5918_v37 }
0x173c   :  { %v2832_v38 = vpop.permute.xlu1 %2831  ;;  %v2726_v35 = vpop.permute.xlu0 %2725 }
0x173d   :  { %v2834_v39 = vmul.f32 %v5918_v37, %v2832_v38  ;;  %v2728_v36 = vmul.f32 %v5916_v34, %v2726_v35 }
0x173f   :  { %2836 = vrot.lane.b32.xlu1 %v2834_v39, %s6010_s20  ;;  %2730 = vrot.lane.b32.xlu0 %v2728_v36, %s6010_s20 }
0x17b1   :  { %v2837_v40 = vpop.permute.xlu1 %2836  ;;  %v2731_v41 = vpop.permute.xlu0 %2730 }
0x17b2   :  { %v2839_v13 = vadd.f32 %v2837_v40, %v2813_v22  ;;  %v2733_v42 = vadd.f32 %v2731_v41, %v2707_v23 }
0x17b4   :  { %5919 = vtanh.f32 %v2839_v13 }
0x17b5   :  { %5921 = vtanh.f32 %v2733_v42 }
0x17be   :  { %v5920_v43 = vpop.eup %5919 }
0x17bf   :  { %v5922_v44 = vpop.eup %5921  ;;  %2843 = vrot.lane.b32.xlu1 %v5920_v43, %s6011_s7 }
0x17c0   :  { %2737 = vrot.lane.b32.xlu0 %v5922_v44, %s6011_s7 }
0x1831   :  { %v2844_v46 = vpop.permute.xlu1 %2843 }
0x1832   :  { %v2846_v49 = vmul.f32 %v2844_v46, %v2841_v45  ;;  %v2738_v50 = vpop.permute.xlu0 %2737 }
0x1833   :  { %v2740_v52 = vmul.f32 %v2738_v50, %v2735_v47  ;;  %v3130_v50 = vld [vmem:[#allocation2 + $0x10] sm:$0xff] }
0x1834   :  { %v2848_v53 = vadd.f32 %v2847_v48, %v2846_v49  ;;  %v3233_v49 = vld [vmem:[#allocation3 + $0x28] sm:$0xff] }
0x1835   :  { %v6694_v54 = vadd.f32 %v2741_v51, %v2740_v52 }
0x1836   :  { %2953 = vrot.lane.b32.xlu1 %v2848_v53, %s6011_s7 }
0x1837   :  { %2850 = vrot.lane.b32.xlu0 %v6694_v54, %s6011_s7 }
0x18a8   :  { %v2954_v55 = vpop.permute.xlu1 %2953 }
0x18a9   :  { %v2851_v56 = vpop.permute.xlu0 %2850  ;;  %5329 = vmatmul.mubr.msk.f32.vlgmr.msra.gmra.mrb[42].mxu1 %vm75_vm1, %v2954_v55 }
0x18aa   :  { %5318 = vmatmul.mubr.msk.f32.vlgmr.msra.gmra.mrb[26].mxu0 %vm75_vm1, %v2851_v56  ;;  %5683 = vmatpush3.bf16.msra.mxu1 %v6603_v9 }
0x18ab   :  { %5677 = vmatpush3.bf16.msra.mxu0 %v6598_v26  ;;  %5684 = vmatprep.subr.bf16.mxu1 %v6007_v0 }
0x18ac   :  { %5678 = vmatprep.subr.bf16.mxu0 %v6007_v0  ;;  %5350 = vmatprep.mubr.msk.f32.mxu1 %vm6008_vm0, %v6009_v4 }
0x18ad   :  { %5339 = vmatprep.mubr.msk.f32.mxu0 %vm6008_vm0, %v6009_v4 }
0x18ae   :  { %5686 = vmatpush3.bf16.msra.mxu1 %v6624_v32 }
0x18af   :  { %5680 = vmatpush3.bf16.msra.mxu0 %v6621_v31  ;;  %5693 = vmatprep.subr.bf16.mxu1 %v6007_v0 }
0x18b0   :  { %5687 = vmatprep.subr.bf16.mxu0 %v6007_v0 }
0x197c   :  { %v3023_v57 = vpop.f32.mrb[42].mxu1 }
0x197d   :  { %v2920_v58 = vpop.f32.mrb[26].mxu0  ;;  %v3035_v59 = vadd.f32 %v3023_v57, %v6678_v11  ;;  %v5330_v60 = vpop.f32.mrb[43].mxu1  ;;  %v3028_v2 = vadd.f32 %v3027_v62, %v3023_v57 }
0x197e   :  { %v2932_v61 = vadd.f32 %v2920_v58, %v6680_v12  ;;  %v5319_v63 = vpop.f32.mrb[27].mxu0  ;;  %v2925_v3 = vadd.f32 %v2924_v1, %v2920_v58 }
0x197f   :  { %3037 = vrot.lane.b32.xlu1 %v3035_v59, %s6010_s20  ;;  %v4709_v5 = vmul.f32 -1.442695, %v3028_v2 }
0x1980   :  { %2934 = vrot.lane.b32.xlu0 %v2932_v61, %s6010_s20  ;;  %v4707_v6 = vmul.f32 -1.442695, %v2925_v3 }
0x1981   :  { %5923 = vpow2.f32 %v4709_v5 }
0x1982   :  { %5925 = vpow2.f32 %v4707_v6 }
0x198b   :  { %v5924_v7 = vpop.eup %5923 }
0x198c   :  { %v5926_v10 = vpop.eup %5925  ;;  %v3032_v14 = vadd.f32 1.0, %v5924_v7 }
0x198d   :  { %v2929_v15 = vadd.f32 1.0, %v5926_v10 }
0x198e   :  { %5927 = vrcp.f32 %v3032_v14 }
0x198f   :  { %5929 = vrcp.f32 %v2929_v15 }
0x1998   :  { %v5928_v17 = vpop.eup %5927 }
0x1999   :  { %v5930_v20 = vpop.eup %5929  ;;  %v3047_v30 = vsub.f32 1.0, %v5928_v17  ;;  %v3053_v37 = vmul.f32 %v5928_v17, %v2848_v53 }
0x199a   :  { %v2944_v34 = vsub.f32 1.0, %v5930_v20  ;;  %v2950_v39 = vmul.f32 %v5930_v20, %v6694_v54 }
0x19f1   :  { %v3038_v18 = vpop.permute.xlu1 %3037 }
0x19f2   :  { %v3040_v21 = vmul.f32 %v5928_v17, %v3038_v18  ;;  %v2935_v22 = vpop.permute.xlu0 %2934 }
0x19f3   :  { %v2937_v23 = vmul.f32 %v5930_v20, %v2935_v22 }
0x19f4   :  { %3042 = vrot.lane.b32.xlu1 %v3040_v21, %s6010_s20 }
0x19f5   :  { %2939 = vrot.lane.b32.xlu0 %v2937_v23, %s6010_s20 }
0x1a66   :  { %v3043_v24 = vpop.permute.xlu1 %3042 }
0x1a67   :  { %v3045_v25 = vadd.f32 %v3043_v24, %v3027_v62  ;;  %v2940_v27 = vpop.permute.xlu0 %2939 }
0x1a68   :  { %v2942_v28 = vadd.f32 %v2940_v27, %v2924_v1 }
0x1a69   :  { %5931 = vtanh.f32 %v3045_v25 }
0x1a6a   :  { %5933 = vtanh.f32 %v2942_v28 }
0x1a73   :  { %v5932_v29 = vpop.eup %5931 }
0x1a74   :  { %v5934_v16 = vpop.eup %5933  ;;  %3049 = vrot.lane.b32.xlu1 %v5932_v29, %s6011_s7 }
0x1a75   :  { %2946 = vrot.lane.b32.xlu0 %v5934_v16, %s6011_s7 }
0x1ae6   :  { %v3050_v33 = vpop.permute.xlu1 %3049 }
0x1ae7   :  { %v3052_v38 = vmul.f32 %v3050_v33, %v3047_v30  ;;  %v2947_v35 = vpop.permute.xlu0 %2946 }
0x1ae8   :  { %v2949_v36 = vmul.f32 %v2947_v35, %v2944_v34  ;;  %v3336_v35 = vld [vmem:[#allocation2 + $0x18] sm:$0xff] }
0x1ae9   :  { %v3054_v40 = vadd.f32 %v3053_v37, %v3052_v38  ;;  %v3439_v38 = vld [vmem:[#allocation3 + $0x20] sm:$0xff] }
0x1aea   :  { %v6722_v41 = vadd.f32 %v2950_v39, %v2949_v36 }
0x1aeb   :  { %3159 = vrot.lane.b32.xlu1 %v3054_v40, %s6011_s7 }
0x1aec   :  { %3056 = vrot.lane.b32.xlu0 %v6722_v41, %s6011_s7 }
0x1b5d   :  { %v3160_v13 = vpop.permute.xlu1 %3159 }
0x1b5e   :  { %v3057_v42 = vpop.permute.xlu0 %3056  ;;  %5351 = vmatmul.mubr.msk.f32.vlgmr.msra.gmra.mrb[44].mxu1 %vm75_vm1, %v3160_v13 }
0x1b5f   :  { %5340 = vmatmul.mubr.msk.f32.vlgmr.msra.gmra.mrb[28].mxu0 %vm75_vm1, %v3057_v42  ;;  %5695 = vmatpush3.bf16.msra.mxu1 %v6603_v9 }
0x1b60   :  { %5689 = vmatpush3.bf16.msra.mxu0 %v6598_v26  ;;  %5696 = vmatprep.subr.bf16.mxu1 %v6007_v0 }
0x1b61   :  { %5690 = vmatprep.subr.bf16.mxu0 %v6007_v0  ;;  %5372 = vmatprep.mubr.msk.f32.mxu1 %vm6008_vm0, %v6009_v4 }
0x1b62   :  { %5361 = vmatprep.mubr.msk.f32.mxu0 %vm6008_vm0, %v6009_v4 }
0x1b63   :  { %5698 = vmatpush3.bf16.msra.mxu1 %v6624_v32 }
0x1b64   :  { %5692 = vmatpush3.bf16.msra.mxu0 %v6621_v31  ;;  %5705 = vmatprep.subr.bf16.mxu1 %v6007_v0 }
0x1b65   :  { %5699 = vmatprep.subr.bf16.mxu0 %v6007_v0 }
0x1c31   :  { %v3229_v43 = vpop.f32.mrb[44].mxu1 }
0x1c32   :  { %v3126_v44 = vpop.f32.mrb[28].mxu0  ;;  %v3241_v45 = vadd.f32 %v3229_v43, %v6678_v11  ;;  %v5352_v46 = vpop.f32.mrb[45].mxu1  ;;  %v3234_v51 = vadd.f32 %v3233_v49, %v3229_v43 }
0x1c33   :  { %v3138_v47 = vadd.f32 %v3126_v44, %v6680_v12  ;;  %v5341_v48 = vpop.f32.mrb[29].mxu0  ;;  %v3131_v52 = vadd.f32 %v3130_v50, %v3126_v44 }
0x1c34   :  { %3243 = vrot.lane.b32.xlu1 %v3241_v45, %s6010_s20  ;;  %v4713_v53 = vmul.f32 -1.442695, %v3234_v51 }
0x1c35   :  { %3140 = vrot.lane.b32.xlu0 %v3138_v47, %s6010_s20  ;;  %v4711_v54 = vmul.f32 -1.442695, %v3131_v52 }
0x1c36   :  { %5935 = vpow2.f32 %v4713_v53 }
0x1c37   :  { %5937 = vpow2.f32 %v4711_v54 }
0x1c40   :  { %v5936_v55 = vpop.eup %5935 }
0x1c41   :  { %v5938_v56 = vpop.eup %5937  ;;  %v3238_v57 = vadd.f32 1.0, %v5936_v55 }
0x1c42   :  { %v3135_v58 = vadd.f32 1.0, %v5938_v56 }
0x1c43   :  { %5939 = vrcp.f32 %v3238_v57 }
0x1c44   :  { %5941 = vrcp.f32 %v3135_v58 }
0x1c4d   :  { %v5940_v59 = vpop.eup %5939 }
0x1c4e   :  { %v5942_v61 = vpop.eup %5941  ;;  %v3253_v14 = vsub.f32 1.0, %v5940_v59  ;;  %v3259_v18 = vmul.f32 %v5940_v59, %v3054_v40 }
0x1c4f   :  { %v3150_v17 = vsub.f32 1.0, %v5942_v61  ;;  %v3156_v22 = vmul.f32 %v5942_v61, %v6722_v41 }
0x1ca6   :  { %v3244_v60 = vpop.permute.xlu1 %3243 }
0x1ca7   :  { %v3246_v63 = vmul.f32 %v5940_v59, %v3244_v60  ;;  %v3141_v62 = vpop.permute.xlu0 %3140 }
0x1ca8   :  { %v3143_v1 = vmul.f32 %v5942_v61, %v3141_v62 }
0x1ca9   :  { %3248 = vrot.lane.b32.xlu1 %v3246_v63, %s6010_s20 }
0x1caa   :  { %3145 = vrot.lane.b32.xlu0 %v3143_v1, %s6010_s20 }
0x1d1b   :  { %v3249_v2 = vpop.permute.xlu1 %3248 }
0x1d1c   :  { %v3251_v3 = vadd.f32 %v3249_v2, %v3233_v49  ;;  %v3146_v5 = vpop.permute.xlu0 %3145 }
0x1d1d   :  { %v3148_v6 = vadd.f32 %v3146_v5, %v3130_v50 }
0x1d1e   :  { %5943 = vtanh.f32 %v3251_v3 }
0x1d1f   :  { %5945 = vtanh.f32 %v3148_v6 }
0x1d28   :  { %v5944_v7 = vpop.eup %5943 }
0x1d29   :  { %v5946_v10 = vpop.eup %5945  ;;  %3255 = vrot.lane.b32.xlu1 %v5944_v7, %s6011_s7 }
0x1d2a   :  { %3152 = vrot.lane.b32.xlu0 %v5946_v10, %s6011_s7 }
0x1d9b   :  { %v3256_v15 = vpop.permute.xlu1 %3255 }
0x1d9c   :  { %v3258_v20 = vmul.f32 %v3256_v15, %v3253_v14  ;;  %v3153_v21 = vpop.permute.xlu0 %3152 }
0x1d9d   :  { %v3155_v23 = vmul.f32 %v3153_v21, %v3150_v17  ;;  %v3542_v21 = vld [vmem:[#allocation2 + $0x20] sm:$0xff] }
0x1d9e   :  { %v3260_v24 = vadd.f32 %v3259_v18, %v3258_v20  ;;  %v3645_v20 = vld [vmem:[#allocation3 + $0x18] sm:$0xff] }
0x1d9f   :  { %v6750_v25 = vadd.f32 %v3156_v22, %v3155_v23 }
0x1da0   :  { %3365 = vrot.lane.b32.xlu1 %v3260_v24, %s6011_s7 }
0x1da1   :  { %3262 = vrot.lane.b32.xlu0 %v6750_v25, %s6011_s7 }
0x1e12   :  { %v3366_v27 = vpop.permute.xlu1 %3365 }
0x1e13   :  { %v3263_v28 = vpop.permute.xlu0 %3262  ;;  %5373 = vmatmul.mubr.msk.f32.vlgmr.msra.gmra.mrb[46].mxu1 %vm75_vm1, %v3366_v27 }
0x1e14   :  { %5362 = vmatmul.mubr.msk.f32.vlgmr.msra.gmra.mrb[30].mxu0 %vm75_vm1, %v3263_v28  ;;  %5707 = vmatpush3.bf16.msra.mxu1 %v6603_v9 }
0x1e15   :  { %5701 = vmatpush3.bf16.msra.mxu0 %v6598_v26  ;;  %5708 = vmatprep.subr.bf16.mxu1 %v6007_v0 }
0x1e16   :  { %5702 = vmatprep.subr.bf16.mxu0 %v6007_v0  ;;  %5394 = vmatprep.mubr.msk.f32.mxu1 %vm6008_vm0, %v6009_v4 }
0x1e17   :  { %5383 = vmatprep.mubr.msk.f32.mxu0 %vm6008_vm0, %v6009_v4 }
0x1e18   :  { %5710 = vmatpush3.bf16.msra.mxu1 %v6624_v32 }
0x1e19   :  { %5704 = vmatpush3.bf16.msra.mxu0 %v6621_v31  ;;  %5717 = vmatprep.subr.bf16.mxu1 %v6007_v0 }
0x1e1a   :  { %5711 = vmatprep.subr.bf16.mxu0 %v6007_v0 }
0x1ee6   :  { %v3435_v29 = vpop.f32.mrb[46].mxu1 }
0x1ee7   :  { %v3332_v16 = vpop.f32.mrb[30].mxu0  ;;  %v3447_v30 = vadd.f32 %v3435_v29, %v6678_v11  ;;  %v5374_v33 = vpop.f32.mrb[47].mxu1  ;;  %v3440_v39 = vadd.f32 %v3439_v38, %v3435_v29 }
0x1ee8   :  { %v3344_v34 = vadd.f32 %v3332_v16, %v6680_v12  ;;  %v5363_v37 = vpop.f32.mrb[31].mxu0  ;;  %v3337_v36 = vadd.f32 %v3336_v35, %v3332_v16 }
0x1ee9   :  { %3449 = vrot.lane.b32.xlu1 %v3447_v30, %s6010_s20  ;;  %v4717_v40 = vmul.f32 -1.442695, %v3440_v39 }
0x1eea   :  { %3346 = vrot.lane.b32.xlu0 %v3344_v34, %s6010_s20  ;;  %v4715_v41 = vmul.f32 -1.442695, %v3337_v36 }
0x1eeb   :  { %5947 = vpow2.f32 %v4717_v40 }
0x1eec   :  { %5949 = vpow2.f32 %v4715_v41 }
0x1ef5   :  { %v5948_v13 = vpop.eup %5947 }
0x1ef6   :  { %v5950_v42 = vpop.eup %5949  ;;  %v3444_v43 = vadd.f32 1.0, %v5948_v13 }
0x1ef7   :  { %v3341_v44 = vadd.f32 1.0, %v5950_v42 }
0x1ef8   :  { %5951 = vrcp.f32 %v3444_v43 }
0x1ef9   :  { %5953 = vrcp.f32 %v3341_v44 }
0x1f02   :  { %v5952_v45 = vpop.eup %5951 }
0x1f03   :  { %v5954_v47 = vpop.eup %5953  ;;  %v3459_v57 = vsub.f32 1.0, %v5952_v45  ;;  %v3465_v60 = vmul.f32 %v5952_v45, %v3260_v24 }
0x1f04   :  { %v3356_v59 = vsub.f32 1.0, %v5954_v47  ;;  %v3362_v62 = vmul.f32 %v5954_v47, %v6750_v25 }
0x1f5b   :  { %v3450_v46 = vpop.permute.xlu1 %3449 }
0x1f5c   :  { %v3452_v48 = vmul.f32 %v5952_v45, %v3450_v46  ;;  %v3347_v49 = vpop.permute.xlu0 %3346 }
0x1f5d   :  { %v3349_v50 = vmul.f32 %v5954_v47, %v3347_v49 }
0x1f5e   :  { %3454 = vrot.lane.b32.xlu1 %v3452_v48, %s6010_s20 }
0x1f5f   :  { %3351 = vrot.lane.b32.xlu0 %v3349_v50, %s6010_s20 }
0x1fd0   :  { %v3455_v51 = vpop.permute.xlu1 %3454 }
0x1fd1   :  { %v3457_v52 = vadd.f32 %v3455_v51, %v3439_v38  ;;  %v3352_v53 = vpop.permute.xlu0 %3351 }
0x1fd2   :  { %v3354_v54 = vadd.f32 %v3352_v53, %v3336_v35 }
0x1fd3   :  { %5955 = vtanh.f32 %v3457_v52 }
0x1fd4   :  { %5957 = vtanh.f32 %v3354_v54 }
0x1fdd   :  { %v5956_v55 = vpop.eup %5955 }
0x1fde   :  { %v5958_v56 = vpop.eup %5957  ;;  %3461 = vrot.lane.b32.xlu1 %v5956_v55, %s6011_s7 }
0x1fdf   :  { %3358 = vrot.lane.b32.xlu0 %v5958_v56, %s6011_s7 }
0x2050   :  { %v3462_v58 = vpop.permute.xlu1 %3461 }
0x2051   :  { %v3464_v61 = vmul.f32 %v3462_v58, %v3459_v57  ;;  %v3359_v63 = vpop.permute.xlu0 %3358 }
0x2052   :  { %v3361_v1 = vmul.f32 %v3359_v63, %v3356_v59  ;;  %v3748_v63 = vld [vmem:[#allocation2 + $0x28] sm:$0xff] }
0x2053   :  { %v3466_v2 = vadd.f32 %v3465_v60, %v3464_v61  ;;  %v3851_v61 = vld [vmem:[#allocation3 + $0x10] sm:$0xff] }
0x2054   :  { %v6778_v3 = vadd.f32 %v3362_v62, %v3361_v1 }
0x2055   :  { %3571 = vrot.lane.b32.xlu1 %v3466_v2, %s6011_s7 }
0x2056   :  { %3468 = vrot.lane.b32.xlu0 %v6778_v3, %s6011_s7 }
0x20c7   :  { %v3572_v5 = vpop.permute.xlu1 %3571 }
0x20c8   :  { %v3469_v6 = vpop.permute.xlu0 %3468  ;;  %5395 = vmatmul.mubr.msk.f32.vlgmr.msra.gmra.mrb[48].mxu1 %vm75_vm1, %v3572_v5 }
0x20c9   :  { %5384 = vmatmul.mubr.msk.f32.vlgmr.msra.gmra.mrb[32].mxu0 %vm75_vm1, %v3469_v6  ;;  %5719 = vmatpush3.bf16.msra.mxu1 %v6603_v9 }
0x20ca   :  { %5713 = vmatpush3.bf16.msra.mxu0 %v6598_v26  ;;  %5720 = vmatprep.subr.bf16.mxu1 %v6007_v0 }
0x20cb   :  { %5714 = vmatprep.subr.bf16.mxu0 %v6007_v0  ;;  %5416 = vmatprep.mubr.msk.f32.mxu1 %vm6008_vm0, %v6009_v4 }
0x20cc   :  { %5405 = vmatprep.mubr.msk.f32.mxu0 %vm6008_vm0, %v6009_v4 }
0x20cd   :  { %5722 = vmatpush3.bf16.msra.mxu1 %v6624_v32 }
0x20ce   :  { %5716 = vmatpush3.bf16.msra.mxu0 %v6621_v31  ;;  %5729 = vmatprep.subr.bf16.mxu1 %v6007_v0 }
0x20cf   :  { %5723 = vmatprep.subr.bf16.mxu0 %v6007_v0 }
0x219b   :  { %v3641_v7 = vpop.f32.mrb[48].mxu1 }
0x219c   :  { %v3538_v10 = vpop.f32.mrb[32].mxu0  ;;  %v3653_v14 = vadd.f32 %v3641_v7, %v6678_v11  ;;  %v5396_v15 = vpop.f32.mrb[49].mxu1  ;;  %v3646_v22 = vadd.f32 %v3645_v20, %v3641_v7 }
0x219d   :  { %v3550_v17 = vadd.f32 %v3538_v10, %v6680_v12  ;;  %v5385_v18 = vpop.f32.mrb[33].mxu0  ;;  %v3543_v23 = vadd.f32 %v3542_v21, %v3538_v10 }
0x219e   :  { %3655 = vrot.lane.b32.xlu1 %v3653_v14, %s6010_s20  ;;  %v4721_v24 = vmul.f32 -1.442695, %v3646_v22 }
0x219f   :  { %3552 = vrot.lane.b32.xlu0 %v3550_v17, %s6010_s20  ;;  %v4719_v25 = vmul.f32 -1.442695, %v3543_v23 }
0x21a0   :  { %5959 = vpow2.f32 %v4721_v24 }
0x21a1   :  { %5961 = vpow2.f32 %v4719_v25 }
0x21aa   :  { %v5960_v27 = vpop.eup %5959 }
0x21ab   :  { %v5962_v28 = vpop.eup %5961  ;;  %v3650_v29 = vadd.f32 1.0, %v5960_v27 }
0x21ac   :  { %v3547_v16 = vadd.f32 1.0, %v5962_v28 }
0x21ad   :  { %5963 = vrcp.f32 %v3650_v29 }
0x21ae   :  { %5965 = vrcp.f32 %v3547_v16 }
0x21b7   :  { %v5964_v30 = vpop.eup %5963 }
0x21b8   :  { %v5966_v34 = vpop.eup %5965  ;;  %v3665_v43 = vsub.f32 1.0, %v5964_v30  ;;  %v3671_v46 = vmul.f32 %v5964_v30, %v3466_v2 }
0x21b9   :  { %v3562_v45 = vsub.f32 1.0, %v5966_v34  ;;  %v3568_v49 = vmul.f32 %v5966_v34, %v6778_v3 }
0x2210   :  { %v3656_v33 = vpop.permute.xlu1 %3655 }
0x2211   :  { %v3658_v37 = vmul.f32 %v5964_v30, %v3656_v33  ;;  %v3553_v38 = vpop.permute.xlu0 %3552 }
0x2212   :  { %v3555_v35 = vmul.f32 %v5966_v34, %v3553_v38 }
0x2213   :  { %3660 = vrot.lane.b32.xlu1 %v3658_v37, %s6010_s20 }
0x2214   :  { %3557 = vrot.lane.b32.xlu0 %v3555_v35, %s6010_s20 }
0x2285   :  { %v3661_v39 = vpop.permute.xlu1 %3660 }
0x2286   :  { %v3663_v36 = vadd.f32 %v3661_v39, %v3645_v20  ;;  %v3558_v40 = vpop.permute.xlu0 %3557 }
0x2287   :  { %v3560_v41 = vadd.f32 %v3558_v40, %v3542_v21 }
0x2288   :  { %5967 = vtanh.f32 %v3663_v36 }
0x2289   :  { %5969 = vtanh.f32 %v3560_v41 }
0x2292   :  { %v5968_v13 = vpop.eup %5967 }
0x2293   :  { %v5970_v42 = vpop.eup %5969  ;;  %3667 = vrot.lane.b32.xlu1 %v5968_v13, %s6011_s7 }
0x2294   :  { %3564 = vrot.lane.b32.xlu0 %v5970_v42, %s6011_s7 }
0x2305   :  { %v3668_v44 = vpop.permute.xlu1 %3667 }
0x2306   :  { %v3670_v47 = vmul.f32 %v3668_v44, %v3665_v43  ;;  %v3565_v48 = vpop.permute.xlu0 %3564 }
0x2307   :  { %v3567_v50 = vmul.f32 %v3565_v48, %v3562_v45  ;;  %v4057_v45 = vld [vmem:[#allocation3 + $0x8] sm:$0xff] }
0x2308   :  { %v3672_v51 = vadd.f32 %v3671_v46, %v3670_v47  ;;  %v3954_v46 = vld [vmem:[#allocation2 + $0x30] sm:$0xff] }
0x2309   :  { %v6806_v52 = vadd.f32 %v3568_v49, %v3567_v50 }
0x230a   :  { %3777 = vrot.lane.b32.xlu1 %v3672_v51, %s6011_s7 }
0x230b   :  { %3674 = vrot.lane.b32.xlu0 %v6806_v52, %s6011_s7 }
0x237c   :  { %v3778_v53 = vpop.permute.xlu1 %3777 }
0x237d   :  { %v3675_v54 = vpop.permute.xlu0 %3674  ;;  %5417 = vmatmul.mubr.msk.f32.vlgmr.msra.gmra.mrb[50].mxu1 %vm75_vm1, %v3778_v53 }
0x237e   :  { %5406 = vmatmul.mubr.msk.f32.vlgmr.msra.gmra.mrb[34].mxu0 %vm75_vm1, %v3675_v54  ;;  %5731 = vmatpush3.bf16.msra.mxu1 %v6603_v9 }
0x237f   :  { %5725 = vmatpush3.bf16.msra.mxu0 %v6598_v26  ;;  %5732 = vmatprep.subr.bf16.mxu1 %v6007_v0 }
0x2380   :  { %5726 = vmatprep.subr.bf16.mxu0 %v6007_v0  ;;  %5438 = vmatprep.mubr.msk.f32.mxu1 %vm6008_vm0, %v6009_v4 }
0x2381   :  { %5427 = vmatprep.mubr.msk.f32.mxu0 %vm6008_vm0, %v6009_v4 }
0x2382   :  { %5734 = vmatpush3.bf16.msra.mxu1 %v6624_v32 }
0x2383   :  { %5728 = vmatpush3.bf16.msra.mxu0 %v6621_v31  ;;  %5741 = vmatprep.subr.bf16.mxu1 %v6007_v0 }
0x2384   :  { %5735 = vmatprep.subr.bf16.mxu0 %v6007_v0 }
0x2450   :  { %v3847_v55 = vpop.f32.mrb[50].mxu1 }
0x2451   :  { %v3744_v56 = vpop.f32.mrb[34].mxu0  ;;  %v3859_v57 = vadd.f32 %v3847_v55, %v6678_v11  ;;  %v5418_v58 = vpop.f32.mrb[51].mxu1  ;;  %v3852_v62 = vadd.f32 %v3851_v61, %v3847_v55 }
0x2452   :  { %v3756_v59 = vadd.f32 %v3744_v56, %v6680_v12  ;;  %v5407_v60 = vpop.f32.mrb[35].mxu0  ;;  %v3749_v1 = vadd.f32 %v3748_v63, %v3744_v56 }
0x2453   :  { %3861 = vrot.lane.b32.xlu1 %v3859_v57, %s6010_s20  ;;  %v4725_v2 = vmul.f32 -1.442695, %v3852_v62 }
0x2454   :  { %3758 = vrot.lane.b32.xlu0 %v3756_v59, %s6010_s20  ;;  %v4723_v3 = vmul.f32 -1.442695, %v3749_v1 }
0x2455   :  { %5971 = vpow2.f32 %v4725_v2 }
0x2456   :  { %5973 = vpow2.f32 %v4723_v3 }
0x245f   :  { %v5972_v5 = vpop.eup %5971 }
0x2460   :  { %v5974_v6 = vpop.eup %5973  ;;  %v3856_v7 = vadd.f32 1.0, %v5972_v5 }
0x2461   :  { %v3753_v10 = vadd.f32 1.0, %v5974_v6 }
0x2462   :  { %5975 = vrcp.f32 %v3856_v7 }
0x2463   :  { %5977 = vrcp.f32 %v3753_v10 }
0x246c   :  { %v5976_v14 = vpop.eup %5975 }
0x246d   :  { %v5978_v17 = vpop.eup %5977  ;;  %v3871_v29 = vsub.f32 1.0, %v5976_v14  ;;  %v3877_v33 = vmul.f32 %v5976_v14, %v3672_v51 }
0x246e   :  { %v3768_v30 = vsub.f32 1.0, %v5978_v17  ;;  %v3774_v38 = vmul.f32 %v5978_v17, %v6806_v52 }
0x24c5   :  { %v3862_v15 = vpop.permute.xlu1 %3861 }
0x24c6   :  { %v3864_v18 = vmul.f32 %v5976_v14, %v3862_v15  ;;  %v3759_v20 = vpop.permute.xlu0 %3758 }
0x24c7   :  { %v3761_v21 = vmul.f32 %v5978_v17, %v3759_v20  ;;  %v4292_v20 = vld [vmem:[%s6971_s17] sm:$0xff] }
0x24c8   :  { %3866 = vrot.lane.b32.xlu1 %v3864_v18, %s6010_s20 }
0x24c9   :  { %3763 = vrot.lane.b32.xlu0 %v3761_v21, %s6010_s20  ;;  %v4293_v21 = vld [vmem:[%s6971_s17 + $0x8] sm:$0xff] }
0x253a   :  { %v3867_v22 = vpop.permute.xlu1 %3866 }
0x253b   :  { %v3869_v23 = vadd.f32 %v3867_v22, %v3851_v61  ;;  %v3764_v24 = vpop.permute.xlu0 %3763  ;;  %v5748_v22 = vpack.c.bf16 %v4293_v21, %v4292_v20  ;;  %v4535_v20 = vld [vmem:[%s6971_s17 + $0x78] sm:$0xff] }
0x253c   :  { %v3766_v25 = vadd.f32 %v3764_v24, %v3748_v63  ;;  %v4294_v24 = vld [vmem:[%s6971_s17 + $0x10] sm:$0xff] }
0x253d   :  { %5979 = vtanh.f32 %v3869_v23 }
0x253e   :  { %5981 = vtanh.f32 %v3766_v25  ;;  %v4295_v25 = vld [vmem:[%s6971_s17 + $0x18] sm:$0xff] }
0x2547   :  { %v5980_v27 = vpop.eup %5979 }
0x2548   :  { %v5982_v28 = vpop.eup %5981  ;;  %3873 = vrot.lane.b32.xlu1 %v5980_v27, %s6011_s7 }
0x2549   :  { %3770 = vrot.lane.b32.xlu0 %v5982_v28, %s6011_s7  ;;  %v5751_v28 = vpack.c.bf16 %v4295_v25, %v4294_v24  ;;  %v4735_v24 = vld [vmem:[%s6972_s18] ss:$0 sm:$0xff] }
0x25ba   :  { %v3874_v16 = vpop.permute.xlu1 %3873 }
0x25bb   :  { %v3876_v34 = vmul.f32 %v3874_v16, %v3871_v29  ;;  %v3771_v37 = vpop.permute.xlu0 %3770  ;;  %v4375_v29 = vld [vmem:[%s6971_s17 + $0x20] sm:$0xff]  ;;  %v4376_v16 = vld [vmem:[%s6971_s17 + $0x28] sm:$0xff] }
0x25bc   :  { %v3773_v35 = vmul.f32 %v3771_v37, %v3768_v30  ;;  %v5754_v30 = vpack.c.bf16 %v4376_v16, %v4375_v29 }
0x25bd   :  { %v3878_v39 = vadd.f32 %v3877_v33, %v3876_v34  ;;  %v4377_v33 = vld [vmem:[%s6971_s17 + $0x30] sm:$0xff]  ;;  %v4378_v34 = vld [vmem:[%s6971_s17 + $0x38] sm:$0xff] }
0x25be   :  { %v3775_v36 = vadd.f32 %v3774_v38, %v3773_v35  ;;  %v5757_v37 = vpack.c.bf16 %v4378_v34, %v4377_v33 }
0x25bf   :  { %3983 = vrot.lane.b32.xlu1 %v3878_v39, %s6011_s7 }
0x25c0   :  { %3880 = vrot.lane.b32.xlu0 %v3775_v36, %s6011_s7 }
0x2631   :  { %v3984_v40 = vpop.permute.xlu1 %3983 }
0x2632   :  { %v3881_v41 = vpop.permute.xlu0 %3880  ;;  %5439 = vmatmul.mubr.msk.f32.vlgmr.msra.gmra.mrb[52].mxu1 %vm75_vm1, %v3984_v40 }
0x2633   :  { %5428 = vmatmul.mubr.msk.f32.vlgmr.msra.gmra.mrb[36].mxu0 %vm75_vm1, %v3881_v41  ;;  %5743 = vmatpush3.bf16.msra.mxu1 %v6603_v9  ;;  %v4263_v41 = vld [vmem:[#allocation3] sm:$0xff] }
0x2634   :  { %5737 = vmatpush3.bf16.msra.mxu0 %v6598_v26  ;;  %5744 = vmatprep.subr.bf16.mxu1 %v6007_v0 }
0x2635   :  { %5738 = vmatprep.subr.bf16.mxu0 %v6007_v0  ;;  %5460 = vmatprep.mubr.msk.f32.mxu1 %vm6008_vm0, %v6009_v4 }
0x2636   :  { %5449 = vmatprep.mubr.msk.f32.mxu0 %vm6008_vm0, %v6009_v4 }
0x2637   :  { %5746 = vmatpush3.bf16.msra.mxu1 %v6624_v32 }
0x2638   :  { %5740 = vmatpush3.bf16.msra.mxu0 %v6621_v31 }
0x2639   :  { %5747 = vmatprep.subr.bf16.mxu0 %v6007_v0 }
0x2705   :  { %v4053_v13 = vpop.f32.mrb[52].mxu1 }
0x2706   :  { %v3950_v9 = vpop.f32.mrb[36].mxu0  ;;  %v4065_v26 = vadd.f32 %v4053_v13, %v6678_v11  ;;  %v5440_v42 = vpop.f32.mrb[53].mxu1  ;;  %v4058_v47 = vadd.f32 %v4057_v45, %v4053_v13  ;;  %v4160_v13 = vld [vmem:[#allocation2 + $0x38] sm:$0xff] }
0x2707   :  { %v3962_v43 = vadd.f32 %v3950_v9, %v6680_v12  ;;  %v5429_v44 = vpop.f32.mrb[37].mxu0  ;;  %v3955_v32 = vadd.f32 %v3954_v46, %v3950_v9 }
0x2708   :  { %4067 = vrot.lane.b32.xlu1 %v4065_v26, %s6010_s20  ;;  %v4729_v48 = vmul.f32 -1.442695, %v4058_v47 }
0x2709   :  { %3964 = vrot.lane.b32.xlu0 %v3962_v43, %s6010_s20  ;;  %v4727_v31 = vmul.f32 -1.442695, %v3955_v32 }
0x270a   :  { %5983 = vpow2.f32 %v4729_v48 }
0x270b   :  { %5985 = vpow2.f32 %v4727_v31 }
0x2714   :  { %v5984_v49 = vpop.eup %5983 }
0x2715   :  { %v5986_v50 = vpop.eup %5985  ;;  %v4062_v51 = vadd.f32 1.0, %v5984_v49 }
0x2716   :  { %v3959_v52 = vadd.f32 1.0, %v5986_v50 }
0x2717   :  { %5987 = vrcp.f32 %v4062_v51 }
0x2718   :  { %5989 = vrcp.f32 %v3959_v52 }
0x2721   :  { %v5988_v53 = vpop.eup %5987 }
0x2722   :  { %v5990_v55 = vpop.eup %5989  ;;  %v4077_v2 = vsub.f32 1.0, %v5988_v53  ;;  %v4083_v6 = vmul.f32 %v5988_v53, %v3878_v39 }
0x2723   :  { %v3974_v5 = vsub.f32 1.0, %v5990_v55  ;;  %v3980_v14 = vmul.f32 %v5990_v55, %v3775_v36 }
0x277a   :  { %v4068_v54 = vpop.permute.xlu1 %4067 }
0x277b   :  { %v4070_v56 = vmul.f32 %v5988_v53, %v4068_v54  ;;  %v3965_v57 = vpop.permute.xlu0 %3964  ;;  %v4452_v53 = vld [vmem:[%s6971_s17 + $0x40] sm:$0xff]  ;;  %v4453_v54 = vld [vmem:[%s6971_s17 + $0x48] sm:$0xff] }
0x277c   :  { %v3967_v58 = vmul.f32 %v5990_v55, %v3965_v57  ;;  %v4454_v55 = vld [vmem:[%s6971_s17 + $0x50] sm:$0xff]  ;;  %v4455_v57 = vld [vmem:[%s6971_s17 + $0x58] sm:$0xff] }
0x277d   :  { %4072 = vrot.lane.b32.xlu1 %v4070_v56, %s6010_s20  ;;  %v5760_v56 = vpack.c.bf16 %v4453_v54, %v4452_v53 }
0x277e   :  { %3969 = vrot.lane.b32.xlu0 %v3967_v58, %s6010_s20  ;;  %v5763_v58 = vpack.c.bf16 %v4455_v57, %v4454_v55 }
0x27ef   :  { %v4073_v59 = vpop.permute.xlu1 %4072 }
0x27f0   :  { %v4075_v60 = vadd.f32 %v4073_v59, %v4057_v45  ;;  %v3970_v61 = vpop.permute.xlu0 %3969 }
0x27f1   :  { %v3972_v63 = vadd.f32 %v3970_v61, %v3954_v46 }
0x27f2   :  { %5991 = vtanh.f32 %v4075_v60 }
0x27f3   :  { %5993 = vtanh.f32 %v3972_v63 }
0x27fc   :  { %v5992_v62 = vpop.eup %5991 }
0x27fd   :  { %v5994_v1 = vpop.eup %5993  ;;  %4079 = vrot.lane.b32.xlu1 %v5992_v62, %s6011_s7 }
0x27fe   :  { %3976 = vrot.lane.b32.xlu0 %v5994_v1, %s6011_s7 }
0x286f   :  { %v4080_v3 = vpop.permute.xlu1 %4079 }
0x2870   :  { %v4082_v7 = vmul.f32 %v4080_v3, %v4077_v2  ;;  %v3977_v10 = vpop.permute.xlu0 %3976 }
0x2871   :  { %v3979_v15 = vmul.f32 %v3977_v10, %v3974_v5 }
0x2872   :  { %v6857_v17 = vadd.f32 %v4083_v6, %v4082_v7 }
0x2873   :  { %v6859_v18 = vadd.f32 %v3980_v14, %v3979_v15  ;;  %v4532_v14 = vld [vmem:[%s6971_s17 + $0x60] sm:$0xff]  ;;  %v4533_v15 = vld [vmem:[%s6971_s17 + $0x68] sm:$0xff] }
0x2874   :  { %4189 = vrot.lane.b32.xlu1 %v6857_v17, %s6011_s7 }
0x2875   :  { %4086 = vrot.lane.b32.xlu0 %v6859_v18, %s6011_s7 }
0x28e6   :  { %v4190_v23 = vpop.permute.xlu1 %4189 }
0x28e7   :  { %v4087_v27 = vpop.permute.xlu0 %4086  ;;  %5461 = vmatmul.mubr.msk.f32.vlgmr.msra.gmra.mrb[54].mxu1 %vm75_vm1, %v4190_v23 }
0x28e8   :  { %5450 = vmatmul.mubr.msk.f32.vlgmr.msra.gmra.mrb[38].mxu0 %vm75_vm1, %v4087_v27 }
0x28e9   :  { %5749 = vmatpush3.bf16.msra.mxu0 %v5748_v22  ;;  %5471 = vmatprep.mubr.msk.f32.mxu0 %vm6008_vm0, %v6009_v4 }
0x28ea   :  { %5750 = vmatprep.subr.bf16.mxu0 %v6007_v0 }
0x28ed   :  { %5752 = vmatpush3.bf16.msra.mxu0 %v5751_v28 }
0x28ee   :  { %5753 = vmatprep.subr.bf16.mxu0 %v6007_v0 }
0x28f0   :  { %5472 = vmatmul.mubr.msk.f32.vlgmr.msra.gmra.mrb[40].mxu0 %vm75_vm1, %v6576_v8 }
0x28f1   :  { %5755 = vmatpush3.bf16.msra.mxu0 %v5754_v30  ;;  %5482 = vmatprep.mubr.msk.f32.mxu0 %vm6008_vm0, %v6009_v4 }
0x28f2   :  { %5756 = vmatprep.subr.bf16.mxu0 %v6007_v0 }
0x28f5   :  { %5758 = vmatpush3.bf16.msra.mxu0 %v5757_v37 }
0x28f6   :  { %5759 = vmatprep.subr.bf16.mxu0 %v6007_v0 }
0x28f8   :  { %5483 = vmatmul.mubr.msk.f32.vlgmr.msra.gmra.mrb[40].mxu0 %vm75_vm1, %v6582_v19 }
0x28f9   :  { %5493 = vmatprep.mubr.msk.f32.mxu0 %vm6008_vm0, %v6009_v4  ;;  %5761 = vmatpush3.bf16.msra.mxu0 %v5760_v56 }
0x28fa   :  { %5762 = vmatprep.subr.bf16.mxu0 %v6007_v0 }
0x28fd   :  { %5764 = vmatpush3.bf16.msra.mxu0 %v5763_v58 }
0x28fe   :  { %5765 = vmatprep.subr.bf16.mxu0 %v6007_v0 }
0x29ba   :  { %v4259_v38 = vpop.f32.mrb[54].mxu1 }
0x29bb   :  { %v4156_v35 = vpop.f32.mrb[38].mxu0  ;;  %v4271_v8 = vadd.f32 %v4259_v38, %v6678_v11  ;;  %v5462_v39 = vpop.f32.mrb[55].mxu1  ;;  %v4264_v9 = vadd.f32 %v4263_v41, %v4259_v38 }
0x29bc   :  { %v4168_v36 = vadd.f32 %v4156_v35, %v6680_v12  ;;  %v5451_v40 = vpop.f32.mrb[39].mxu0  ;;  %v4161_v26 = vadd.f32 %v4160_v13, %v4156_v35 }
0x29bd   :  { %4273 = vrot.lane.b32.xlu1 %v4271_v8, %s6010_s20  ;;  %v4733_v19 = vmul.f32 -1.442695, %v4264_v9 }
0x29be   :  { %4170 = vrot.lane.b32.xlu0 %v4168_v36, %s6010_s20  ;;  %v4731_v42 = vmul.f32 -1.442695, %v4161_v26 }
0x29bf   :  { %5995 = vpow2.f32 %v4733_v19 }
0x29c0   :  { %5997 = vpow2.f32 %v4731_v42 }
0x29c9   :  { %v5996_v43 = vpop.eup %5995 }
0x29ca   :  { %v5998_v44 = vpop.eup %5997  ;;  %v4268_v45 = vadd.f32 1.0, %v5996_v43 }
0x29cb   :  { %v4165_v11 = vadd.f32 1.0, %v5998_v44 }
0x29cc   :  { %5999 = vrcp.f32 %v4268_v45 }
0x29cd   :  { %6001 = vrcp.f32 %v4165_v11 }
0x29d6   :  { %v6000_v12 = vpop.eup %5999 }
0x29d7   :  { %v6002_v47 = vpop.eup %6001  ;;  %v4283_v61 = vsub.f32 1.0, %v6000_v12  ;;  %v4289_v1 = vmul.f32 %v6000_v12, %v6857_v17  ;;  %v5766_v17 = vpack.c.bf16 %v4533_v15, %v4532_v14 }
0x29d8   :  { %v4180_v62 = vsub.f32 1.0, %v6002_v47  ;;  %v4186_v5 = vmul.f32 %v6002_v47, %v6859_v18  ;;  %v4534_v18 = vld [vmem:[%s6971_s17 + $0x70] sm:$0xff] }
0x29d9   :  { %v5769_v22 = vpack.c.bf16 %v4535_v20, %v4534_v18 }
0x2a2f   :  { %v4274_v46 = vpop.permute.xlu1 %4273 }
0x2a30   :  { %v4276_v32 = vmul.f32 %v6000_v12, %v4274_v46  ;;  %v4171_v48 = vpop.permute.xlu0 %4170 }
0x2a31   :  { %v4173_v31 = vmul.f32 %v6002_v47, %v4171_v48 }
0x2a32   :  { %4278 = vrot.lane.b32.xlu1 %v4276_v32, %s6010_s20 }
0x2a33   :  { %4175 = vrot.lane.b32.xlu0 %v4173_v31, %s6010_s20 }
0x2aa4   :  { %v4279_v49 = vpop.permute.xlu1 %4278 }
0x2aa5   :  { %v4281_v50 = vadd.f32 %v4279_v49, %v4263_v41  ;;  %v4176_v51 = vpop.permute.xlu0 %4175 }
0x2aa6   :  { %v4178_v52 = vadd.f32 %v4176_v51, %v4160_v13 }
0x2aa7   :  { %6003 = vtanh.f32 %v4281_v50 }
0x2aa8   :  { %6005 = vtanh.f32 %v4178_v52 }
0x2ab1   :  { %v6004_v59 = vpop.eup %6003 }
0x2ab2   :  { %v6006_v60 = vpop.eup %6005  ;;  %4285 = vrot.lane.b32.xlu1 %v6004_v59, %s6011_s7 }
0x2ab3   :  { %4182 = vrot.lane.b32.xlu0 %v6006_v60, %s6011_s7 }
0x2b24   :  { %v4286_v63 = vpop.permute.xlu1 %4285 }
0x2b25   :  { %v4288_v2 = vmul.f32 %v4286_v63, %v4283_v61  ;;  %v4183_v3 = vpop.permute.xlu0 %4182 }
0x2b26   :  { %v4185_v6 = vmul.f32 %v4183_v3, %v4180_v62 }
0x2b27   :  { %v4290_v7 = vadd.f32 %v4289_v1, %v4288_v2 }
0x2b28   :  { %v4187_v10 = vadd.f32 %v4186_v5, %v4185_v6 }
0x2b29   :  { %4537 = vrot.lane.b32.xlu1 %v4290_v7, %s6011_s7 }
0x2b2a   :  { %4457 = vrot.lane.b32.xlu0 %v4187_v10, %s6011_s7 }
0x2b9b   :  { %v4538_v23 = vpop.permute.xlu1 %4537 }
0x2b9c   :  { %v4458_v21 = vpop.permute.xlu0 %4457 }
0x2b9d   :  { %5494 = vmatmul.mubr.msk.f32.vlgmr.msra.gmra.mrb[40].mxu0 %vm75_vm1, %v4458_v21 }
0x2b9e   :  { %5767 = vmatpush3.bf16.msra.mxu0 %v5766_v17  ;;  %5504 = vmatprep.mubr.msk.f32.mxu0 %vm6008_vm0, %v6009_v4 }
0x2b9f   :  { %5768 = vmatprep.subr.bf16.mxu0 %v6007_v0 }
0x2ba2   :  { %5770 = vmatpush3.bf16.msra.mxu0 %v5769_v22 }
0x2ba5   :  { %5505 = vmatmul.mubr.msk.f32.vlgmr.msra.gmra.mrb[40].mxu0 %vm75_vm1, %v4538_v23 }
0x2c78   :  { %v4607_v25 = vpop.f32.mrb[40].mxu0 }
0x2c79   :  { %v5787_v27 = vadd.f32 %v4735_v24, %v4607_v25  ;;  %v5506_v28 = vpop.f32.mrb[41].mxu0 }
0x2c7b   :  { %4613 = vst.msk [vmem:[%s6973_s19] sm:$0xff] %vm4612_vm3, %v5787_v27 }

</bundles_post_ra>
